<compile_context>
chip_gen: v7x
topology: tpu7x:2x2x1
jax: 0.10.0
libtpu: 0.0.40
codegen_flags: <defaults>
</compile_context>

<pallas_src>
import jax
import jax.numpy as jnp
from jax.experimental import pallas as pl
from jax.experimental.pallas import tpu as pltpu


def _round_up(n, m):
    return (n + m - 1) // m * m


# ----------------------------------------------------------------------------
# Pallas kernels
# ----------------------------------------------------------------------------
def feature_kernel(patches_ref, w1_ref, s1_ref, t1_ref, w2_ref, s2_ref, t2_ref,
                   out_ref, act1_ref):
    """Fused feature extractor for one image.

    patches_ref: (1, 576, 128) bf16  conv1 im2col patches, rows ordered
                 (pool corner, ph, pw), K padded 75 -> 128.
    w1_ref:      (128, 128)    bf16  conv1 weight (K x Cout), zero padded.
    w2_ref:      (25, 128, 128) bf16 conv2 weight per (kh, kw) tap (Cin x Cout).
    s*/t*_ref:   (1, 128)      f32   folded conv-bias + BatchNorm scale/shift.
    out_ref:     (1, 32, 128)  bf16  conv2 output after BN/ReLU and H-direction
                 2x2 pooling; rows ordered (ph, ow).
    act1_ref:    (144, 128)    f32   VMEM scratch: pooled conv1 map (12x12, C).
    """
    # ---- conv1 (single 576x128x128 matmul over im2col patches) + BN + ReLU ----
    y1 = jnp.dot(patches_ref[0], w1_ref[...], preferred_element_type=jnp.float32)
    y1 = jnp.maximum(y1 * s1_ref[...] + t1_ref[...], 0.0)            # (576,128)

    # ---- maxpool 2x2 #1: the four corners of each window live in four
    #      contiguous 144-row blocks (row order chosen by the wrapper) --------
    p1 = jnp.maximum(jnp.maximum(y1[0:144], y1[144:288]),
                     jnp.maximum(y1[288:432], y1[432:576]))           # (144,128)
    act1_ref[...] = p1                                                # 12x12 spatial, C in lanes

    # ---- conv2 as 25 shifted matmuls over the VMEM-resident 12x12 map -------
    acc = jnp.zeros((64, 128), jnp.float32)
    for dh in range(5):
        for dw in range(5):
            # rows (oh*8 + ow) <- input pixel (oh+dh, ow+dw); per oh these are
            # 8 contiguous rows of act1, so the gather is 8 aligned-size reads.
            lhs = jnp.concatenate(
                [act1_ref[pl.ds((oh + dh) * 12 + dw, 8), :] for oh in range(8)],
                axis=0)                                               # (64,128) f32
            acc = acc + jnp.dot(lhs.astype(jnp.bfloat16),
                                w2_ref[dh * 5 + dw],
                                preferred_element_type=jnp.float32)
    y2 = jnp.maximum(acc * s2_ref[...] + t2_ref[...], 0.0)            # (64,128) rows=(oh,ow)

    # ---- maxpool 2x2 #2, H direction only (aligned 8-row block maxes);
    #      the W direction is finished lane-wise in the head kernel ----------
    mh = jnp.concatenate(
        [jnp.maximum(y2[16 * ph:16 * ph + 8], y2[16 * ph + 8:16 * ph + 16])
         for ph in range(4)], axis=0)                                 # (32,128) rows=(ph,ow)
    out_ref[0] = mh.astype(jnp.bfloat16)


def head_kernel(feat_ref, w3_ref, s3_ref, t3_ref, w4_ref, t4_ref, o_ref):
    """W-direction of pool #2 + Linear(1024,100) + BN1d + ReLU + Linear(100,100).

    feat_ref: (tm, 4096) bf16 -- 32 lane-blocks of 128 (rows (ph,ow), C padded).
    w3_ref:   (2048, 128) bf16 -- fc1 weight, rows pre-permuted to (ph*4+pw, c).
    w4_ref:   (128, 128) bf16  -- fc2 weight, zero padded.
    """
    f = feat_ref[...].astype(jnp.float32)                             # (tm, 32*128)
    # finish maxpool #2 along W: adjacent 128-lane blocks (2k, 2k+1) are the two
    # W-neighbours of pooling window k = ph*4 + pw.
    p2 = jnp.concatenate(
        [jnp.maximum(f[:, (2 * k) * 128:(2 * k + 1) * 128],
                     f[:, (2 * k + 1) * 128:(2 * k + 2) * 128])
         for k in range(16)], axis=1)                                 # (tm, 2048)
    h = jnp.dot(p2.astype(jnp.bfloat16), w3_ref[...],
                preferred_element_type=jnp.float32)                   # fc1
    h = jnp.maximum(h * s3_ref[...] + t3_ref[...], 0.0)               # BN1d + ReLU (f32)
    y = jnp.dot(h.astype(jnp.bfloat16), w4_ref[...],
                preferred_element_type=jnp.float32)                   # fc2
    o_ref[...] = y + t4_ref[...]


# ----------------------------------------------------------------------------
# Pallas wrappers
# ----------------------------------------------------------------------------
def feature_extractor(patches, w1, s1, t1, w2, s2, t2):
    B = patches.shape[0]
    return pl.pallas_call(
        feature_kernel,
        out_shape=jax.ShapeDtypeStruct((B, 32, 128), jnp.bfloat16),
        grid=(B,),
        in_specs=[
            pl.BlockSpec((1, 576, 128), lambda b: (b, 0, 0)),
            pl.BlockSpec((128, 128), lambda b: (0, 0)),
            pl.BlockSpec((1, 128), lambda b: (0, 0)),
            pl.BlockSpec((1, 128), lambda b: (0, 0)),
            pl.BlockSpec((25, 128, 128), lambda b: (0, 0, 0)),
            pl.BlockSpec((1, 128), lambda b: (0, 0)),
            pl.BlockSpec((1, 128), lambda b: (0, 0)),
        ],
        out_specs=pl.BlockSpec((1, 32, 128), lambda b: (b, 0, 0)),
        scratch_shapes=[pltpu.VMEM((144, 128), jnp.float32)],
        compiler_params=pltpu.CompilerParams(
            dimension_semantics=("parallel",),
            vmem_limit_bytes=32 * 1024 * 1024),
    )(patches, w1, s1, t1, w2, s2, t2)


def label_head(feat, w3, s3, t3, w4, t4):
    Mp = feat.shape[0]
    tm = Mp if Mp <= 512 else 256       # caller pads Mp to a multiple of tm
    return pl.pallas_call(
        head_kernel,
        out_shape=jax.ShapeDtypeStruct((Mp, 128), jnp.float32),
        grid=(Mp // tm,),
        in_specs=[
            pl.BlockSpec((tm, 4096), lambda i: (i, 0)),
            pl.BlockSpec((2048, 128), lambda i: (0, 0)),
            pl.BlockSpec((1, 128), lambda i: (0, 0)),
            pl.BlockSpec((1, 128), lambda i: (0, 0)),
            pl.BlockSpec((128, 128), lambda i: (0, 0)),
            pl.BlockSpec((1, 128), lambda i: (0, 0)),
        ],
        out_specs=pl.BlockSpec((tm, 128), lambda i: (i, 0)),
        compiler_params=pltpu.CompilerParams(
            dimension_semantics=("parallel",),
            vmem_limit_bytes=32 * 1024 * 1024),
    )(feat, w3, s3, t3, w4, t4)


# ----------------------------------------------------------------------------
# Plain-JAX glue (input patch building + one-time parameter prep)
# ----------------------------------------------------------------------------
def build_conv1_patches(x_nhwc):
    """x: (B,28,28,3) f32 -> (B,576,128) bf16 conv1 im2col patches.

    Row ordering is (corner=a*2+b, ph, pw) with output pixel (2ph+a, 2pw+b), so
    the fused kernel's first 2x2 max-pool is a max over four contiguous 144-row
    blocks.  Column ordering is (kh, kw, cin), zero-padded 75 -> 128.
    """
    B = x_nhwc.shape[0]
    cols = []
    for dh in range(5):
        for dw in range(5):
            cols.append(x_nhwc[:, dh:dh + 24, dw:dw + 24, :])          # (B,24,24,3)
    pt = jnp.stack(cols, axis=3).reshape(B, 24, 24, 75)
    pt = pt.reshape(B, 12, 2, 12, 2, 75)                               # (B,ph,a,pw,b,75)
    pt = jnp.transpose(pt, (0, 2, 4, 1, 3, 5)).reshape(B, 576, 75)     # rows (a,b,ph,pw)
    pt = jnp.pad(pt, ((0, 0), (0, 0), (0, 53)))                        # K 75 -> 128
    return pt.astype(jnp.bfloat16)


def fold_bn(gamma, beta, mean, var, bias, eps=1e-5):
    """Fold (x + bias -> BatchNorm(running stats)) into y*scale + shift."""
    scale = gamma * jax.lax.rsqrt(var + eps)
    shift = beta + (bias - mean) * scale
    return scale, shift


def prepare_params(p):
    """One-time conversion of torch-layout params into kernel layouts (padded,
    pre-permuted, bf16 matmul operands, folded BN affine)."""
    f32, bf16 = jnp.float32, jnp.bfloat16

    # conv1: (O=48,I=3,kH,kW) -> (K=75 rows ordered (kh,kw,ci), N=48), pad (128,128)
    w1 = jnp.transpose(p["conv1_w"], (2, 3, 1, 0)).reshape(75, 48)
    w1p = jnp.zeros((128, 128), f32).at[:75, :48].set(w1).astype(bf16)
    s1, t1 = fold_bn(p["bn1_gamma"], p["bn1_beta"], p["bn1_mean"],
                     p["bn1_var"], p["conv1_b"])
    s1p = jnp.zeros((1, 128), f32).at[0, :48].set(s1)
    t1p = jnp.zeros((1, 128), f32).at[0, :48].set(t1)

    # conv2: per-tap (Cin=48, Cout=64) weights, padded to (25,128,128)
    w2 = jnp.transpose(p["conv2_w"], (2, 3, 1, 0)).reshape(25, 48, 64)
    w2p = jnp.zeros((25, 128, 128), f32).at[:, :48, :64].set(w2).astype(bf16)
    s2, t2 = fold_bn(p["bn2_gamma"], p["bn2_beta"], p["bn2_mean"],
                     p["bn2_var"], p["conv2_b"])
    s2p = jnp.zeros((1, 128), f32).at[0, :64].set(s2)
    t2p = jnp.zeros((1, 128), f32).at[0, :64].set(t2)

    # fc1: torch rows are (c, ph, pw); kernel feeds features ordered
    # (ph*4+pw, c-padded-to-128) -> permute rows and zero-pad to (2048, 128).
    w3 = jnp.transpose(p["fc1_w"].reshape(64, 16, 100), (1, 0, 2))     # (16,64,100)
    w3p = (jnp.zeros((16, 128, 128), f32).at[:, :64, :100].set(w3)
           .reshape(2048, 128).astype(bf16))
    s3, t3 = fold_bn(p["bnf_gamma"], p["bnf_beta"], p["bnf_mean"],
                     p["bnf_var"], p["fc1_b"])
    s3p = jnp.zeros((1, 128), f32).at[0, :100].set(s3)
    t3p = jnp.zeros((1, 128), f32).at[0, :100].set(t3)

    # fc2: pad (100,100) -> (128,128); bias -> (1,128)
    w4p = jnp.zeros((128, 128), f32).at[:100, :100].set(p["fc2_w"]).astype(bf16)
    t4p = jnp.zeros((1, 128), f32).at[0, :100].set(p["fc2_b"])

    return {"w1": w1p, "s1": s1p, "t1": t1p,
            "w2": w2p, "s2": s2p, "t2": t2p,
            "w3": w3p, "s3": s3p, "t3": t3p,
            "w4": w4p, "t4": t4p}


def init_params(key):
    """Deterministic synthetic parameters matching the PyTorch module shapes."""
    ks = jax.random.split(key, 16)
    f32 = jnp.float32
    return {
        "conv1_w": 0.05 * jax.random.normal(ks[0], (48, 3, 5, 5), f32),
        "conv1_b": 0.01 * jax.random.normal(ks[1], (48,), f32),
        "bn1_gamma": 1.0 + 0.1 * jax.random.normal(ks[2], (48,), f32),
        "bn1_beta": 0.1 * jax.random.normal(ks[3], (48,), f32),
        "bn1_mean": 0.05 * jax.random.normal(ks[4], (48,), f32),
        "bn1_var": 1.0 + 0.1 * jax.random.uniform(ks[5], (48,), f32),
        "conv2_w": 0.05 * jax.random.normal(ks[6], (64, 48, 5, 5), f32),
        "conv2_b": 0.01 * jax.random.normal(ks[7], (64,), f32),
        "bn2_gamma": 1.0 + 0.1 * jax.random.normal(ks[8], (64,), f32),
        "bn2_beta": 0.1 * jax.random.normal(ks[9], (64,), f32),
        "bn2_mean": 0.05 * jax.random.normal(ks[10], (64,), f32),
        "bn2_var": 1.0 + 0.1 * jax.random.uniform(ks[11], (64,), f32),
        "fc1_w": 0.05 * jax.random.normal(ks[12], (64 * 4 * 4, 100), f32),
        "fc1_b": 0.01 * jax.random.normal(ks[13], (100,), f32),
        "bnf_gamma": jnp.ones((100,), f32),
        "bnf_beta": jnp.zeros((100,), f32),
        "bnf_mean": jnp.zeros((100,), f32),
        "bnf_var": jnp.ones((100,), f32),
        "fc2_w": 0.05 * jax.random.normal(ks[14], (100, 100), f32),
        "fc2_b": 0.01 * jax.random.normal(ks[15], (100,), f32),
    }


def dann_forward(x_nchw, q):
    """DANN.forward: feature_extractor -> flatten -> label_pred[0:5]."""
    B = x_nchw.shape[0]
    x = jnp.transpose(x_nchw, (0, 2, 3, 1))                    # NCHW -> NHWC
    patches = build_conv1_patches(x)                           # (B,576,128) bf16

    pooled = feature_extractor(patches, q["w1"], q["s1"], q["t1"],
                               q["w2"], q["s2"], q["t2"])      # (B,32,128) bf16
    feat = pooled.reshape(B, 32 * 128)                         # free reshape

    Mp = _round_up(B, 8)
    if Mp > 512:
        Mp = _round_up(B, 256)
    feat = jnp.pad(feat, ((0, Mp - B), (0, 0)))                # sublane-pad rows

    out = label_head(feat, q["w3"], q["s3"], q["t3"], q["w4"], q["t4"])  # (Mp,128)
    return out[:B, :100]                                       # (B, 100) f32


# ----------------------------------------------------------------------------
# Pure-JAX reference (eval-mode), used only for a loose sanity check.
# ----------------------------------------------------------------------------
def dann_reference(x_nchw, p):
    def bn2d(x, g, b, m, v):
        s = g * jax.lax.rsqrt(v + 1e-5)
        return x * s[None, :, None, None] + (b - m * s)[None, :, None, None]

    dn = ("NCHW", "OIHW", "NCHW")
    y = jax.lax.conv_general_dilated(x_nchw, p["conv1_w"], (1, 1), "VALID",
                                     dimension_numbers=dn)
    y = bn2d(y + p["conv1_b"][None, :, None, None],
             p["bn1_gamma"], p["bn1_beta"], p["bn1_mean"], p["bn1_var"])
    y = jnp.maximum(y, 0.0)
    y = jax.lax.reduce_window(y, -jnp.inf, jax.lax.max,
                              (1, 1, 2, 2), (1, 1, 2, 2), "VALID")
    y = jax.lax.conv_general_dilated(y, p["conv2_w"], (1, 1), "VALID",
                                     dimension_numbers=dn)
    y = bn2d(y + p["conv2_b"][None, :, None, None],
             p["bn2_gamma"], p["bn2_beta"], p["bn2_mean"], p["bn2_var"])
    y = jnp.maximum(y, 0.0)
    y = jax.lax.reduce_window(y, -jnp.inf, jax.lax.max,
                              (1, 1, 2, 2), (1, 1, 2, 2), "VALID")
    feat = y.reshape(y.shape[0], 64 * 4 * 4)
    s3 = p["bnf_gamma"] * jax.lax.rsqrt(p["bnf_var"] + 1e-5)
    h = feat @ p["fc1_w"] + p["fc1_b"]
    h = (h - p["bnf_mean"]) * s3 + p["bnf_beta"]
    h = jnp.maximum(h, 0.0)
    return h @ p["fc2_w"] + p["fc2_b"]


if __name__ == "__main__":
    key = jax.random.PRNGKey(0)
    pkey, xkey = jax.random.split(key)
    params = init_params(pkey)
    prepped = prepare_params(params)            # one-time layout/pad/bf16 prep
    # 64*4*4 flatten implies 28x28 input: 28 -5+1=24 ->12 -5+1=8 ->4.
    x = jax.random.normal(xkey, (2, 3, 28, 28), jnp.float32)

    out = jax.block_until_ready(jax.jit(dann_forward)(x, prepped))
    assert out.shape == (2, 100) and out.dtype == jnp.float32
    assert bool(jnp.all(jnp.isfinite(out)))

    ref = dann_reference(x, params)
    assert bool(jnp.allclose(out, ref, rtol=2e-1, atol=2e-1)), "mismatch vs reference"
    print("KERNEL_OK")
</pallas_src>

<mosaic_0001>
module attributes {stable_mosaic.version = 11 : i64} {
  func.func @feature_kernel(%arg0: i32, %arg1: memref<1x576x128xbf16, #tpu.memory_space<vmem>>, %arg2: memref<128x128xbf16, #tpu.memory_space<vmem>>, %arg3: memref<1x128xf32, #tpu.memory_space<vmem>>, %arg4: memref<1x128xf32, #tpu.memory_space<vmem>>, %arg5: memref<25x128x128xbf16, #tpu.memory_space<vmem>>, %arg6: memref<1x128xf32, #tpu.memory_space<vmem>>, %arg7: memref<1x128xf32, #tpu.memory_space<vmem>>, %arg8: memref<1x32x128xbf16, #tpu.memory_space<vmem>>, %arg9: memref<144x128xf32, #tpu.memory_space<vmem>>) attributes {dimension_semantics = [#tpu.dimension_semantics<parallel>], iteration_bounds = array<i64: 2>, scalar_prefetch = 0 : i64, scratch_operands = 1 : i64, tpu.core_type = #tpu.core_type<tc>, window_params = [{transform_indices = @transform_0, window_bounds = array<i64: 1, 576, 128>}, {pipeline_mode = #tpu.pipeline_mode<synchronous>, transform_indices = @transform_1, window_bounds = array<i64: 128, 128>}, {pipeline_mode = #tpu.pipeline_mode<synchronous>, transform_indices = @transform_2, window_bounds = array<i64: 1, 128>}, {pipeline_mode = #tpu.pipeline_mode<synchronous>, transform_indices = @transform_3, window_bounds = array<i64: 1, 128>}, {pipeline_mode = #tpu.pipeline_mode<synchronous>, transform_indices = @transform_4, window_bounds = array<i64: 25, 128, 128>}, {pipeline_mode = #tpu.pipeline_mode<synchronous>, transform_indices = @transform_5, window_bounds = array<i64: 1, 128>}, {pipeline_mode = #tpu.pipeline_mode<synchronous>, transform_indices = @transform_6, window_bounds = array<i64: 1, 128>}, {transform_indices = @transform_7, window_bounds = array<i64: 1, 32, 128>}]} {
    %c0 = arith.constant 0 : index
    %c0_0 = arith.constant 0 : index
    %c0_1 = arith.constant 0 : index
    %0 = vector.load %arg1[%c0, %c0_0, %c0_1] : memref<1x576x128xbf16, #tpu.memory_space<vmem>>, vector<1x576x128xbf16>
    %1 = vector.shape_cast %0 : vector<1x576x128xbf16> to vector<576x128xbf16>
    %c0_2 = arith.constant 0 : index
    %c0_3 = arith.constant 0 : index
    %2 = vector.load %arg2[%c0_2, %c0_3] : memref<128x128xbf16, #tpu.memory_space<vmem>>, vector<128x128xbf16>
    %cst = arith.constant dense<0.000000e+00> : vector<576x128xf32>
    %3 = tpu.matmul %1, %2, %cst {dimension_numbers = #tpu.dot_dimension_numbers<[1], [0], [0], [1], [0, 0, 1, 1], [], []>} : vector<576x128xbf16>, vector<128x128xbf16>, vector<576x128xf32> -> vector<576x128xf32>
    %c0_4 = arith.constant 0 : index
    %c0_5 = arith.constant 0 : index
    %4 = vector.load %arg3[%c0_4, %c0_5] : memref<1x128xf32, #tpu.memory_space<vmem>>, vector<1x128xf32>
    %5 = vector.broadcast %4 : vector<1x128xf32> to vector<576x128xf32>
    %6 = arith.mulf %3, %5 : vector<576x128xf32>
    %c0_6 = arith.constant 0 : index
    %c0_7 = arith.constant 0 : index
    %7 = vector.load %arg4[%c0_6, %c0_7] : memref<1x128xf32, #tpu.memory_space<vmem>>, vector<1x128xf32>
    %8 = vector.broadcast %7 : vector<1x128xf32> to vector<576x128xf32>
    %9 = arith.addf %6, %8 : vector<576x128xf32>
    %cst_8 = arith.constant 0.000000e+00 : f32
    %10 = vector.broadcast %cst_8 : f32 to vector<576x128xf32>
    %11 = arith.maximumf %9, %10 : vector<576x128xf32>
    %12 = vector.extract_strided_slice %11 {offsets = [0, 0], sizes = [144, 128], strides = [1, 1]} : vector<576x128xf32> to vector<144x128xf32>
    %13 = vector.extract_strided_slice %11 {offsets = [144, 0], sizes = [144, 128], strides = [1, 1]} : vector<576x128xf32> to vector<144x128xf32>
    %14 = arith.maximumf %12, %13 : vector<144x128xf32>
    %15 = vector.extract_strided_slice %11 {offsets = [288, 0], sizes = [144, 128], strides = [1, 1]} : vector<576x128xf32> to vector<144x128xf32>
    %16 = vector.extract_strided_slice %11 {offsets = [432, 0], sizes = [144, 128], strides = [1, 1]} : vector<576x128xf32> to vector<144x128xf32>
    %17 = arith.maximumf %15, %16 : vector<144x128xf32>
    %18 = arith.maximumf %14, %17 : vector<144x128xf32>
    %c0_9 = arith.constant 0 : index
    %c0_10 = arith.constant 0 : index
    %19 = vector.load %arg9[%c0_9, %c0_10] : memref<144x128xf32, #tpu.memory_space<vmem>>, vector<144x128xf32>
    tpu.vector_store %arg9[%c0_9, %c0_10], %18 {strides = array<i32>} : memref<144x128xf32, #tpu.memory_space<vmem>>, vector<144x128xf32>,
    %cst_11 = arith.constant 0.000000e+00 : f32
    %20 = vector.broadcast %cst_11 : f32 to vector<64x128xf32>
    %c0_12 = arith.constant 0 : index
    %c0_13 = arith.constant 0 : index
    %21 = vector.load %arg9[%c0_12, %c0_13] : memref<144x128xf32, #tpu.memory_space<vmem>>, vector<8x128xf32>
    %c12 = arith.constant 12 : index
    %c0_14 = arith.constant 0 : index
    %22 = vector.load %arg9[%c12, %c0_14] : memref<144x128xf32, #tpu.memory_space<vmem>>, vector<8x128xf32>
    %c24 = arith.constant 24 : index
    %c0_15 = arith.constant 0 : index
    %23 = vector.load %arg9[%c24, %c0_15] : memref<144x128xf32, #tpu.memory_space<vmem>>, vector<8x128xf32>
    %c36 = arith.constant 36 : index
    %c0_16 = arith.constant 0 : index
    %24 = vector.load %arg9[%c36, %c0_16] : memref<144x128xf32, #tpu.memory_space<vmem>>, vector<8x128xf32>
    %c48 = arith.constant 48 : index
    %c0_17 = arith.constant 0 : index
    %25 = vector.load %arg9[%c48, %c0_17] : memref<144x128xf32, #tpu.memory_space<vmem>>, vector<8x128xf32>
    %c60 = arith.constant 60 : index
    %c0_18 = arith.constant 0 : index
    %26 = vector.load %arg9[%c60, %c0_18] : memref<144x128xf32, #tpu.memory_space<vmem>>, vector<8x128xf32>
    %c72 = arith.constant 72 : index
    %c0_19 = arith.constant 0 : index
    %27 = vector.load %arg9[%c72, %c0_19] : memref<144x128xf32, #tpu.memory_space<vmem>>, vector<8x128xf32>
    %c84 = arith.constant 84 : index
    %c0_20 = arith.constant 0 : index
    %28 = vector.load %arg9[%c84, %c0_20] : memref<144x128xf32, #tpu.memory_space<vmem>>, vector<8x128xf32>
    %29 = tpu.concatenate %21, %22, %23, %24, %25, %26, %27, %28 in 0 : vector<8x128xf32>, vector<8x128xf32>, vector<8x128xf32>, vector<8x128xf32>, vector<8x128xf32>, vector<8x128xf32>, vector<8x128xf32>, vector<8x128xf32> -> vector<64x128xf32>
    %30 = arith.truncf %29 : vector<64x128xf32> to vector<64x128xbf16>
    %c0_21 = arith.constant 0 : index
    %c0_22 = arith.constant 0 : index
    %c0_23 = arith.constant 0 : index
    %31 = vector.load %arg5[%c0_21, %c0_22, %c0_23] : memref<25x128x128xbf16, #tpu.memory_space<vmem>>, vector<1x128x128xbf16>
    %32 = vector.shape_cast %31 : vector<1x128x128xbf16> to vector<128x128xbf16>
    %cst_24 = arith.constant dense<0.000000e+00> : vector<64x128xf32>
    %33 = tpu.matmul %30, %32, %cst_24 {dimension_numbers = #tpu.dot_dimension_numbers<[1], [0], [0], [1], [0, 0, 1, 1], [], []>} : vector<64x128xbf16>, vector<128x128xbf16>, vector<64x128xf32> -> vector<64x128xf32>
    %34 = arith.addf %20, %33 : vector<64x128xf32>
    %c1 = arith.constant 1 : index
    %c0_25 = arith.constant 0 : index
    %35 = vector.load %arg9[%c1, %c0_25] : memref<144x128xf32, #tpu.memory_space<vmem>>, vector<8x128xf32>
    %c13 = arith.constant 13 : index
    %c0_26 = arith.constant 0 : index
    %36 = vector.load %arg9[%c13, %c0_26] : memref<144x128xf32, #tpu.memory_space<vmem>>, vector<8x128xf32>
    %c25 = arith.constant 25 : index
    %c0_27 = arith.constant 0 : index
    %37 = vector.load %arg9[%c25, %c0_27] : memref<144x128xf32, #tpu.memory_space<vmem>>, vector<8x128xf32>
    %c37 = arith.constant 37 : index
    %c0_28 = arith.constant 0 : index
    %38 = vector.load %arg9[%c37, %c0_28] : memref<144x128xf32, #tpu.memory_space<vmem>>, vector<8x128xf32>
    %c49 = arith.constant 49 : index
    %c0_29 = arith.constant 0 : index
    %39 = vector.load %arg9[%c49, %c0_29] : memref<144x128xf32, #tpu.memory_space<vmem>>, vector<8x128xf32>
    %c61 = arith.constant 61 : index
    %c0_30 = arith.constant 0 : index
    %40 = vector.load %arg9[%c61, %c0_30] : memref<144x128xf32, #tpu.memory_space<vmem>>, vector<8x128xf32>
    %c73 = arith.constant 73 : index
    %c0_31 = arith.constant 0 : index
    %41 = vector.load %arg9[%c73, %c0_31] : memref<144x128xf32, #tpu.memory_space<vmem>>, vector<8x128xf32>
    %c85 = arith.constant 85 : index
    %c0_32 = arith.constant 0 : index
    %42 = vector.load %arg9[%c85, %c0_32] : memref<144x128xf32, #tpu.memory_space<vmem>>, vector<8x128xf32>
    %43 = tpu.concatenate %35, %36, %37, %38, %39, %40, %41, %42 in 0 : vector<8x128xf32>, vector<8x128xf32>, vector<8x128xf32>, vector<8x128xf32>, vector<8x128xf32>, vector<8x128xf32>, vector<8x128xf32>, vector<8x128xf32> -> vector<64x128xf32>
    %44 = arith.truncf %43 : vector<64x128xf32> to vector<64x128xbf16>
    %c1_33 = arith.constant 1 : index
    %c0_34 = arith.constant 0 : index
    %c0_35 = arith.constant 0 : index
    %45 = vector.load %arg5[%c1_33, %c0_34, %c0_35] : memref<25x128x128xbf16, #tpu.memory_space<vmem>>, vector<1x128x128xbf16>
    %46 = vector.shape_cast %45 : vector<1x128x128xbf16> to vector<128x128xbf16>
    %cst_36 = arith.constant dense<0.000000e+00> : vector<64x128xf32>
    %47 = tpu.matmul %44, %46, %cst_36 {dimension_numbers = #tpu.dot_dimension_numbers<[1], [0], [0], [1], [0, 0, 1, 1], [], []>} : vector<64x128xbf16>, vector<128x128xbf16>, vector<64x128xf32> -> vector<64x128xf32>
    %48 = arith.addf %34, %47 : vector<64x128xf32>
    %c2 = arith.constant 2 : index
    %c0_37 = arith.constant 0 : index
    %49 = vector.load %arg9[%c2, %c0_37] : memref<144x128xf32, #tpu.memory_space<vmem>>, vector<8x128xf32>
    %c14 = arith.constant 14 : index
    %c0_38 = arith.constant 0 : index
    %50 = vector.load %arg9[%c14, %c0_38] : memref<144x128xf32, #tpu.memory_space<vmem>>, vector<8x128xf32>
    %c26 = arith.constant 26 : index
    %c0_39 = arith.constant 0 : index
    %51 = vector.load %arg9[%c26, %c0_39] : memref<144x128xf32, #tpu.memory_space<vmem>>, vector<8x128xf32>
    %c38 = arith.constant 38 : index
    %c0_40 = arith.constant 0 : index
    %52 = vector.load %arg9[%c38, %c0_40] : memref<144x128xf32, #tpu.memory_space<vmem>>, vector<8x128xf32>
    %c50 = arith.constant 50 : index
    %c0_41 = arith.constant 0 : index
    %53 = vector.load %arg9[%c50, %c0_41] : memref<144x128xf32, #tpu.memory_space<vmem>>, vector<8x128xf32>
    %c62 = arith.constant 62 : index
    %c0_42 = arith.constant 0 : index
    %54 = vector.load %arg9[%c62, %c0_42] : memref<144x128xf32, #tpu.memory_space<vmem>>, vector<8x128xf32>
    %c74 = arith.constant 74 : index
    %c0_43 = arith.constant 0 : index
    %55 = vector.load %arg9[%c74, %c0_43] : memref<144x128xf32, #tpu.memory_space<vmem>>, vector<8x128xf32>
    %c86 = arith.constant 86 : index
    %c0_44 = arith.constant 0 : index
    %56 = vector.load %arg9[%c86, %c0_44] : memref<144x128xf32, #tpu.memory_space<vmem>>, vector<8x128xf32>
    %57 = tpu.concatenate %49, %50, %51, %52, %53, %54, %55, %56 in 0 : vector<8x128xf32>, vector<8x128xf32>, vector<8x128xf32>, vector<8x128xf32>, vector<8x128xf32>, vector<8x128xf32>, vector<8x128xf32>, vector<8x128xf32> -> vector<64x128xf32>
    %58 = arith.truncf %57 : vector<64x128xf32> to vector<64x128xbf16>
    %c2_45 = arith.constant 2 : index
    %c0_46 = arith.constant 0 : index
    %c0_47 = arith.constant 0 : index
    %59 = vector.load %arg5[%c2_45, %c0_46, %c0_47] : memref<25x128x128xbf16, #tpu.memory_space<vmem>>, vector<1x128x128xbf16>
    %60 = vector.shape_cast %59 : vector<1x128x128xbf16> to vector<128x128xbf16>
    %cst_48 = arith.constant dense<0.000000e+00> : vector<64x128xf32>
    %61 = tpu.matmul %58, %60, %cst_48 {dimension_numbers = #tpu.dot_dimension_numbers<[1], [0], [0], [1], [0, 0, 1, 1], [], []>} : vector<64x128xbf16>, vector<128x128xbf16>, vector<64x128xf32> -> vector<64x128xf32>
    %62 = arith.addf %48, %61 : vector<64x128xf32>
    %c3 = arith.constant 3 : index
    %c0_49 = arith.constant 0 : index
    %63 = vector.load %arg9[%c3, %c0_49] : memref<144x128xf32, #tpu.memory_space<vmem>>, vector<8x128xf32>
    %c15 = arith.constant 15 : index
    %c0_50 = arith.constant 0 : index
    %64 = vector.load %arg9[%c15, %c0_50] : memref<144x128xf32, #tpu.memory_space<vmem>>, vector<8x128xf32>
    %c27 = arith.constant 27 : index
    %c0_51 = arith.constant 0 : index
    %65 = vector.load %arg9[%c27, %c0_51] : memref<144x128xf32, #tpu.memory_space<vmem>>, vector<8x128xf32>
    %c39 = arith.constant 39 : index
    %c0_52 = arith.constant 0 : index
    %66 = vector.load %arg9[%c39, %c0_52] : memref<144x128xf32, #tpu.memory_space<vmem>>, vector<8x128xf32>
    %c51 = arith.constant 51 : index
    %c0_53 = arith.constant 0 : index
    %67 = vector.load %arg9[%c51, %c0_53] : memref<144x128xf32, #tpu.memory_space<vmem>>, vector<8x128xf32>
    %c63 = arith.constant 63 : index
    %c0_54 = arith.constant 0 : index
    %68 = vector.load %arg9[%c63, %c0_54] : memref<144x128xf32, #tpu.memory_space<vmem>>, vector<8x128xf32>
    %c75 = arith.constant 75 : index
    %c0_55 = arith.constant 0 : index
    %69 = vector.load %arg9[%c75, %c0_55] : memref<144x128xf32, #tpu.memory_space<vmem>>, vector<8x128xf32>
    %c87 = arith.constant 87 : index
    %c0_56 = arith.constant 0 : index
    %70 = vector.load %arg9[%c87, %c0_56] : memref<144x128xf32, #tpu.memory_space<vmem>>, vector<8x128xf32>
    %71 = tpu.concatenate %63, %64, %65, %66, %67, %68, %69, %70 in 0 : vector<8x128xf32>, vector<8x128xf32>, vector<8x128xf32>, vector<8x128xf32>, vector<8x128xf32>, vector<8x128xf32>, vector<8x128xf32>, vector<8x128xf32> -> vector<64x128xf32>
    %72 = arith.truncf %71 : vector<64x128xf32> to vector<64x128xbf16>
    %c3_57 = arith.constant 3 : index
    %c0_58 = arith.constant 0 : index
    %c0_59 = arith.constant 0 : index
    %73 = vector.load %arg5[%c3_57, %c0_58, %c0_59] : memref<25x128x128xbf16, #tpu.memory_space<vmem>>, vector<1x128x128xbf16>
    %74 = vector.shape_cast %73 : vector<1x128x128xbf16> to vector<128x128xbf16>
    %cst_60 = arith.constant dense<0.000000e+00> : vector<64x128xf32>
    %75 = tpu.matmul %72, %74, %cst_60 {dimension_numbers = #tpu.dot_dimension_numbers<[1], [0], [0], [1], [0, 0, 1, 1], [], []>} : vector<64x128xbf16>, vector<128x128xbf16>, vector<64x128xf32> -> vector<64x128xf32>
    %76 = arith.addf %62, %75 : vector<64x128xf32>
    %c4 = arith.constant 4 : index
    %c0_61 = arith.constant 0 : index
    %77 = vector.load %arg9[%c4, %c0_61] : memref<144x128xf32, #tpu.memory_space<vmem>>, vector<8x128xf32>
    %c16 = arith.constant 16 : index
    %c0_62 = arith.constant 0 : index
    %78 = vector.load %arg9[%c16, %c0_62] : memref<144x128xf32, #tpu.memory_space<vmem>>, vector<8x128xf32>
    %c28 = arith.constant 28 : index
    %c0_63 = arith.constant 0 : index
    %79 = vector.load %arg9[%c28, %c0_63] : memref<144x128xf32, #tpu.memory_space<vmem>>, vector<8x128xf32>
    %c40 = arith.constant 40 : index
    %c0_64 = arith.constant 0 : index
    %80 = vector.load %arg9[%c40, %c0_64] : memref<144x128xf32, #tpu.memory_space<vmem>>, vector<8x128xf32>
    %c52 = arith.constant 52 : index
    %c0_65 = arith.constant 0 : index
    %81 = vector.load %arg9[%c52, %c0_65] : memref<144x128xf32, #tpu.memory_space<vmem>>, vector<8x128xf32>
    %c64 = arith.constant 64 : index
    %c0_66 = arith.constant 0 : index
    %82 = vector.load %arg9[%c64, %c0_66] : memref<144x128xf32, #tpu.memory_space<vmem>>, vector<8x128xf32>
    %c76 = arith.constant 76 : index
    %c0_67 = arith.constant 0 : index
    %83 = vector.load %arg9[%c76, %c0_67] : memref<144x128xf32, #tpu.memory_space<vmem>>, vector<8x128xf32>
    %c88 = arith.constant 88 : index
    %c0_68 = arith.constant 0 : index
    %84 = vector.load %arg9[%c88, %c0_68] : memref<144x128xf32, #tpu.memory_space<vmem>>, vector<8x128xf32>
    %85 = tpu.concatenate %77, %78, %79, %80, %81, %82, %83, %84 in 0 : vector<8x128xf32>, vector<8x128xf32>, vector<8x128xf32>, vector<8x128xf32>, vector<8x128xf32>, vector<8x128xf32>, vector<8x128xf32>, vector<8x128xf32> -> vector<64x128xf32>
    %86 = arith.truncf %85 : vector<64x128xf32> to vector<64x128xbf16>
    %c4_69 = arith.constant 4 : index
    %c0_70 = arith.constant 0 : index
    %c0_71 = arith.constant 0 : index
    %87 = vector.load %arg5[%c4_69, %c0_70, %c0_71] : memref<25x128x128xbf16, #tpu.memory_space<vmem>>, vector<1x128x128xbf16>
    %88 = vector.shape_cast %87 : vector<1x128x128xbf16> to vector<128x128xbf16>
    %cst_72 = arith.constant dense<0.000000e+00> : vector<64x128xf32>
    %89 = tpu.matmul %86, %88, %cst_72 {dimension_numbers = #tpu.dot_dimension_numbers<[1], [0], [0], [1], [0, 0, 1, 1], [], []>} : vector<64x128xbf16>, vector<128x128xbf16>, vector<64x128xf32> -> vector<64x128xf32>
    %90 = arith.addf %76, %89 : vector<64x128xf32>
    %c12_73 = arith.constant 12 : index
    %c0_74 = arith.constant 0 : index
    %91 = vector.load %arg9[%c12_73, %c0_74] : memref<144x128xf32, #tpu.memory_space<vmem>>, vector<8x128xf32>
    %c24_75 = arith.constant 24 : index
    %c0_76 = arith.constant 0 : index
    %92 = vector.load %arg9[%c24_75, %c0_76] : memref<144x128xf32, #tpu.memory_space<vmem>>, vector<8x128xf32>
    %c36_77 = arith.constant 36 : index
    %c0_78 = arith.constant 0 : index
    %93 = vector.load %arg9[%c36_77, %c0_78] : memref<144x128xf32, #tpu.memory_space<vmem>>, vector<8x128xf32>
    %c48_79 = arith.constant 48 : index
    %c0_80 = arith.constant 0 : index
    %94 = vector.load %arg9[%c48_79, %c0_80] : memref<144x128xf32, #tpu.memory_space<vmem>>, vector<8x128xf32>
    %c60_81 = arith.constant 60 : index
    %c0_82 = arith.constant 0 : index
    %95 = vector.load %arg9[%c60_81, %c0_82] : memref<144x128xf32, #tpu.memory_space<vmem>>, vector<8x128xf32>
    %c72_83 = arith.constant 72 : index
    %c0_84 = arith.constant 0 : index
    %96 = vector.load %arg9[%c72_83, %c0_84] : memref<144x128xf32, #tpu.memory_space<vmem>>, vector<8x128xf32>
    %c84_85 = arith.constant 84 : index
    %c0_86 = arith.constant 0 : index
    %97 = vector.load %arg9[%c84_85, %c0_86] : memref<144x128xf32, #tpu.memory_space<vmem>>, vector<8x128xf32>
    %c96 = arith.constant 96 : index
    %c0_87 = arith.constant 0 : index
    %98 = vector.load %arg9[%c96, %c0_87] : memref<144x128xf32, #tpu.memory_space<vmem>>, vector<8x128xf32>
    %99 = tpu.concatenate %91, %92, %93, %94, %95, %96, %97, %98 in 0 : vector<8x128xf32>, vector<8x128xf32>, vector<8x128xf32>, vector<8x128xf32>, vector<8x128xf32>, vector<8x128xf32>, vector<8x128xf32>, vector<8x128xf32> -> vector<64x128xf32>
    %100 = arith.truncf %99 : vector<64x128xf32> to vector<64x128xbf16>
    %c5 = arith.constant 5 : index
    %c0_88 = arith.constant 0 : index
    %c0_89 = arith.constant 0 : index
    %101 = vector.load %arg5[%c5, %c0_88, %c0_89] : memref<25x128x128xbf16, #tpu.memory_space<vmem>>, vector<1x128x128xbf16>
    %102 = vector.shape_cast %101 : vector<1x128x128xbf16> to vector<128x128xbf16>
    %cst_90 = arith.constant dense<0.000000e+00> : vector<64x128xf32>
    %103 = tpu.matmul %100, %102, %cst_90 {dimension_numbers = #tpu.dot_dimension_numbers<[1], [0], [0], [1], [0, 0, 1, 1], [], []>} : vector<64x128xbf16>, vector<128x128xbf16>, vector<64x128xf32> -> vector<64x128xf32>
    %104 = arith.addf %90, %103 : vector<64x128xf32>
    %c13_91 = arith.constant 13 : index
    %c0_92 = arith.constant 0 : index
    %105 = vector.load %arg9[%c13_91, %c0_92] : memref<144x128xf32, #tpu.memory_space<vmem>>, vector<8x128xf32>
    %c25_93 = arith.constant 25 : index
    %c0_94 = arith.constant 0 : index
    %106 = vector.load %arg9[%c25_93, %c0_94] : memref<144x128xf32, #tpu.memory_space<vmem>>, vector<8x128xf32>
    %c37_95 = arith.constant 37 : index
    %c0_96 = arith.constant 0 : index
    %107 = vector.load %arg9[%c37_95, %c0_96] : memref<144x128xf32, #tpu.memory_space<vmem>>, vector<8x128xf32>
    %c49_97 = arith.constant 49 : index
    %c0_98 = arith.constant 0 : index
    %108 = vector.load %arg9[%c49_97, %c0_98] : memref<144x128xf32, #tpu.memory_space<vmem>>, vector<8x128xf32>
    %c61_99 = arith.constant 61 : index
    %c0_100 = arith.constant 0 : index
    %109 = vector.load %arg9[%c61_99, %c0_100] : memref<144x128xf32, #tpu.memory_space<vmem>>, vector<8x128xf32>
    %c73_101 = arith.constant 73 : index
    %c0_102 = arith.constant 0 : index
    %110 = vector.load %arg9[%c73_101, %c0_102] : memref<144x128xf32, #tpu.memory_space<vmem>>, vector<8x128xf32>
    %c85_103 = arith.constant 85 : index
    %c0_104 = arith.constant 0 : index
    %111 = vector.load %arg9[%c85_103, %c0_104] : memref<144x128xf32, #tpu.memory_space<vmem>>, vector<8x128xf32>
    %c97 = arith.constant 97 : index
    %c0_105 = arith.constant 0 : index
    %112 = vector.load %arg9[%c97, %c0_105] : memref<144x128xf32, #tpu.memory_space<vmem>>, vector<8x128xf32>
    %113 = tpu.concatenate %105, %106, %107, %108, %109, %110, %111, %112 in 0 : vector<8x128xf32>, vector<8x128xf32>, vector<8x128xf32>, vector<8x128xf32>, vector<8x128xf32>, vector<8x128xf32>, vector<8x128xf32>, vector<8x128xf32> -> vector<64x128xf32>
    %114 = arith.truncf %113 : vector<64x128xf32> to vector<64x128xbf16>
    %c6 = arith.constant 6 : index
    %c0_106 = arith.constant 0 : index
    %c0_107 = arith.constant 0 : index
    %115 = vector.load %arg5[%c6, %c0_106, %c0_107] : memref<25x128x128xbf16, #tpu.memory_space<vmem>>, vector<1x128x128xbf16>
    %116 = vector.shape_cast %115 : vector<1x128x128xbf16> to vector<128x128xbf16>
    %cst_108 = arith.constant dense<0.000000e+00> : vector<64x128xf32>
    %117 = tpu.matmul %114, %116, %cst_108 {dimension_numbers = #tpu.dot_dimension_numbers<[1], [0], [0], [1], [0, 0, 1, 1], [], []>} : vector<64x128xbf16>, vector<128x128xbf16>, vector<64x128xf32> -> vector<64x128xf32>
    %118 = arith.addf %104, %117 : vector<64x128xf32>
    %c14_109 = arith.constant 14 : index
    %c0_110 = arith.constant 0 : index
    %119 = vector.load %arg9[%c14_109, %c0_110] : memref<144x128xf32, #tpu.memory_space<vmem>>, vector<8x128xf32>
    %c26_111 = arith.constant 26 : index
    %c0_112 = arith.constant 0 : index
    %120 = vector.load %arg9[%c26_111, %c0_112] : memref<144x128xf32, #tpu.memory_space<vmem>>, vector<8x128xf32>
    %c38_113 = arith.constant 38 : index
    %c0_114 = arith.constant 0 : index
    %121 = vector.load %arg9[%c38_113, %c0_114] : memref<144x128xf32, #tpu.memory_space<vmem>>, vector<8x128xf32>
    %c50_115 = arith.constant 50 : index
    %c0_116 = arith.constant 0 : index
    %122 = vector.load %arg9[%c50_115, %c0_116] : memref<144x128xf32, #tpu.memory_space<vmem>>, vector<8x128xf32>
    %c62_117 = arith.constant 62 : index
    %c0_118 = arith.constant 0 : index
    %123 = vector.load %arg9[%c62_117, %c0_118] : memref<144x128xf32, #tpu.memory_space<vmem>>, vector<8x128xf32>
    %c74_119 = arith.constant 74 : index
    %c0_120 = arith.constant 0 : index
    %124 = vector.load %arg9[%c74_119, %c0_120] : memref<144x128xf32, #tpu.memory_space<vmem>>, vector<8x128xf32>
    %c86_121 = arith.constant 86 : index
    %c0_122 = arith.constant 0 : index
    %125 = vector.load %arg9[%c86_121, %c0_122] : memref<144x128xf32, #tpu.memory_space<vmem>>, vector<8x128xf32>
    %c98 = arith.constant 98 : index
    %c0_123 = arith.constant 0 : index
    %126 = vector.load %arg9[%c98, %c0_123] : memref<144x128xf32, #tpu.memory_space<vmem>>, vector<8x128xf32>
    %127 = tpu.concatenate %119, %120, %121, %122, %123, %124, %125, %126 in 0 : vector<8x128xf32>, vector<8x128xf32>, vector<8x128xf32>, vector<8x128xf32>, vector<8x128xf32>, vector<8x128xf32>, vector<8x128xf32>, vector<8x128xf32> -> vector<64x128xf32>
    %128 = arith.truncf %127 : vector<64x128xf32> to vector<64x128xbf16>
    %c7 = arith.constant 7 : index
    %c0_124 = arith.constant 0 : index
    %c0_125 = arith.constant 0 : index
    %129 = vector.load %arg5[%c7, %c0_124, %c0_125] : memref<25x128x128xbf16, #tpu.memory_space<vmem>>, vector<1x128x128xbf16>
    %130 = vector.shape_cast %129 : vector<1x128x128xbf16> to vector<128x128xbf16>
    %cst_126 = arith.constant dense<0.000000e+00> : vector<64x128xf32>
    %131 = tpu.matmul %128, %130, %cst_126 {dimension_numbers = #tpu.dot_dimension_numbers<[1], [0], [0], [1], [0, 0, 1, 1], [], []>} : vector<64x128xbf16>, vector<128x128xbf16>, vector<64x128xf32> -> vector<64x128xf32>
    %132 = arith.addf %118, %131 : vector<64x128xf32>
    %c15_127 = arith.constant 15 : index
    %c0_128 = arith.constant 0 : index
    %133 = vector.load %arg9[%c15_127, %c0_128] : memref<144x128xf32, #tpu.memory_space<vmem>>, vector<8x128xf32>
    %c27_129 = arith.constant 27 : index
    %c0_130 = arith.constant 0 : index
    %134 = vector.load %arg9[%c27_129, %c0_130] : memref<144x128xf32, #tpu.memory_space<vmem>>, vector<8x128xf32>
    %c39_131 = arith.constant 39 : index
    %c0_132 = arith.constant 0 : index
    %135 = vector.load %arg9[%c39_131, %c0_132] : memref<144x128xf32, #tpu.memory_space<vmem>>, vector<8x128xf32>
    %c51_133 = arith.constant 51 : index
    %c0_134 = arith.constant 0 : index
    %136 = vector.load %arg9[%c51_133, %c0_134] : memref<144x128xf32, #tpu.memory_space<vmem>>, vector<8x128xf32>
    %c63_135 = arith.constant 63 : index
    %c0_136 = arith.constant 0 : index
    %137 = vector.load %arg9[%c63_135, %c0_136] : memref<144x128xf32, #tpu.memory_space<vmem>>, vector<8x128xf32>
    %c75_137 = arith.constant 75 : index
    %c0_138 = arith.constant 0 : index
    %138 = vector.load %arg9[%c75_137, %c0_138] : memref<144x128xf32, #tpu.memory_space<vmem>>, vector<8x128xf32>
    %c87_139 = arith.constant 87 : index
    %c0_140 = arith.constant 0 : index
    %139 = vector.load %arg9[%c87_139, %c0_140] : memref<144x128xf32, #tpu.memory_space<vmem>>, vector<8x128xf32>
    %c99 = arith.constant 99 : index
    %c0_141 = arith.constant 0 : index
    %140 = vector.load %arg9[%c99, %c0_141] : memref<144x128xf32, #tpu.memory_space<vmem>>, vector<8x128xf32>
    %141 = tpu.concatenate %133, %134, %135, %136, %137, %138, %139, %140 in 0 : vector<8x128xf32>, vector<8x128xf32>, vector<8x128xf32>, vector<8x128xf32>, vector<8x128xf32>, vector<8x128xf32>, vector<8x128xf32>, vector<8x128xf32> -> vector<64x128xf32>
    %142 = arith.truncf %141 : vector<64x128xf32> to vector<64x128xbf16>
    %c8 = arith.constant 8 : index
    %c0_142 = arith.constant 0 : index
    %c0_143 = arith.constant 0 : index
    %143 = vector.load %arg5[%c8, %c0_142, %c0_143] : memref<25x128x128xbf16, #tpu.memory_space<vmem>>, vector<1x128x128xbf16>
    %144 = vector.shape_cast %143 : vector<1x128x128xbf16> to vector<128x128xbf16>
    %cst_144 = arith.constant dense<0.000000e+00> : vector<64x128xf32>
    %145 = tpu.matmul %142, %144, %cst_144 {dimension_numbers = #tpu.dot_dimension_numbers<[1], [0], [0], [1], [0, 0, 1, 1], [], []>} : vector<64x128xbf16>, vector<128x128xbf16>, vector<64x128xf32> -> vector<64x128xf32>
    %146 = arith.addf %132, %145 : vector<64x128xf32>
    %c16_145 = arith.constant 16 : index
    %c0_146 = arith.constant 0 : index
    %147 = vector.load %arg9[%c16_145, %c0_146] : memref<144x128xf32, #tpu.memory_space<vmem>>, vector<8x128xf32>
    %c28_147 = arith.constant 28 : index
    %c0_148 = arith.constant 0 : index
    %148 = vector.load %arg9[%c28_147, %c0_148] : memref<144x128xf32, #tpu.memory_space<vmem>>, vector<8x128xf32>
    %c40_149 = arith.constant 40 : index
    %c0_150 = arith.constant 0 : index
    %149 = vector.load %arg9[%c40_149, %c0_150] : memref<144x128xf32, #tpu.memory_space<vmem>>, vector<8x128xf32>
    %c52_151 = arith.constant 52 : index
    %c0_152 = arith.constant 0 : index
    %150 = vector.load %arg9[%c52_151, %c0_152] : memref<144x128xf32, #tpu.memory_space<vmem>>, vector<8x128xf32>
    %c64_153 = arith.constant 64 : index
    %c0_154 = arith.constant 0 : index
    %151 = vector.load %arg9[%c64_153, %c0_154] : memref<144x128xf32, #tpu.memory_space<vmem>>, vector<8x128xf32>
    %c76_155 = arith.constant 76 : index
    %c0_156 = arith.constant 0 : index
    %152 = vector.load %arg9[%c76_155, %c0_156] : memref<144x128xf32, #tpu.memory_space<vmem>>, vector<8x128xf32>
    %c88_157 = arith.constant 88 : index
    %c0_158 = arith.constant 0 : index
    %153 = vector.load %arg9[%c88_157, %c0_158] : memref<144x128xf32, #tpu.memory_space<vmem>>, vector<8x128xf32>
    %c100 = arith.constant 100 : index
    %c0_159 = arith.constant 0 : index
    %154 = vector.load %arg9[%c100, %c0_159] : memref<144x128xf32, #tpu.memory_space<vmem>>, vector<8x128xf32>
    %155 = tpu.concatenate %147, %148, %149, %150, %151, %152, %153, %154 in 0 : vector<8x128xf32>, vector<8x128xf32>, vector<8x128xf32>, vector<8x128xf32>, vector<8x128xf32>, vector<8x128xf32>, vector<8x128xf32>, vector<8x128xf32> -> vector<64x128xf32>
    %156 = arith.truncf %155 : vector<64x128xf32> to vector<64x128xbf16>
    %c9 = arith.constant 9 : index
    %c0_160 = arith.constant 0 : index
    %c0_161 = arith.constant 0 : index
    %157 = vector.load %arg5[%c9, %c0_160, %c0_161] : memref<25x128x128xbf16, #tpu.memory_space<vmem>>, vector<1x128x128xbf16>
    %158 = vector.shape_cast %157 : vector<1x128x128xbf16> to vector<128x128xbf16>
    %cst_162 = arith.constant dense<0.000000e+00> : vector<64x128xf32>
    %159 = tpu.matmul %156, %158, %cst_162 {dimension_numbers = #tpu.dot_dimension_numbers<[1], [0], [0], [1], [0, 0, 1, 1], [], []>} : vector<64x128xbf16>, vector<128x128xbf16>, vector<64x128xf32> -> vector<64x128xf32>
    %160 = arith.addf %146, %159 : vector<64x128xf32>
    %c24_163 = arith.constant 24 : index
    %c0_164 = arith.constant 0 : index
    %161 = vector.load %arg9[%c24_163, %c0_164] : memref<144x128xf32, #tpu.memory_space<vmem>>, vector<8x128xf32>
    %c36_165 = arith.constant 36 : index
    %c0_166 = arith.constant 0 : index
    %162 = vector.load %arg9[%c36_165, %c0_166] : memref<144x128xf32, #tpu.memory_space<vmem>>, vector<8x128xf32>
    %c48_167 = arith.constant 48 : index
    %c0_168 = arith.constant 0 : index
    %163 = vector.load %arg9[%c48_167, %c0_168] : memref<144x128xf32, #tpu.memory_space<vmem>>, vector<8x128xf32>
    %c60_169 = arith.constant 60 : index
    %c0_170 = arith.constant 0 : index
    %164 = vector.load %arg9[%c60_169, %c0_170] : memref<144x128xf32, #tpu.memory_space<vmem>>, vector<8x128xf32>
    %c72_171 = arith.constant 72 : index
    %c0_172 = arith.constant 0 : index
    %165 = vector.load %arg9[%c72_171, %c0_172] : memref<144x128xf32, #tpu.memory_space<vmem>>, vector<8x128xf32>
    %c84_173 = arith.constant 84 : index
    %c0_174 = arith.constant 0 : index
    %166 = vector.load %arg9[%c84_173, %c0_174] : memref<144x128xf32, #tpu.memory_space<vmem>>, vector<8x128xf32>
    %c96_175 = arith.constant 96 : index
    %c0_176 = arith.constant 0 : index
    %167 = vector.load %arg9[%c96_175, %c0_176] : memref<144x128xf32, #tpu.memory_space<vmem>>, vector<8x128xf32>
    %c108 = arith.constant 108 : index
    %c0_177 = arith.constant 0 : index
    %168 = vector.load %arg9[%c108, %c0_177] : memref<144x128xf32, #tpu.memory_space<vmem>>, vector<8x128xf32>
    %169 = tpu.concatenate %161, %162, %163, %164, %165, %166, %167, %168 in 0 : vector<8x128xf32>, vector<8x128xf32>, vector<8x128xf32>, vector<8x128xf32>, vector<8x128xf32>, vector<8x128xf32>, vector<8x128xf32>, vector<8x128xf32> -> vector<64x128xf32>
    %170 = arith.truncf %169 : vector<64x128xf32> to vector<64x128xbf16>
    %c10 = arith.constant 10 : index
    %c0_178 = arith.constant 0 : index
    %c0_179 = arith.constant 0 : index
    %171 = vector.load %arg5[%c10, %c0_178, %c0_179] : memref<25x128x128xbf16, #tpu.memory_space<vmem>>, vector<1x128x128xbf16>
    %172 = vector.shape_cast %171 : vector<1x128x128xbf16> to vector<128x128xbf16>
    %cst_180 = arith.constant dense<0.000000e+00> : vector<64x128xf32>
    %173 = tpu.matmul %170, %172, %cst_180 {dimension_numbers = #tpu.dot_dimension_numbers<[1], [0], [0], [1], [0, 0, 1, 1], [], []>} : vector<64x128xbf16>, vector<128x128xbf16>, vector<64x128xf32> -> vector<64x128xf32>
    %174 = arith.addf %160, %173 : vector<64x128xf32>
    %c25_181 = arith.constant 25 : index
    %c0_182 = arith.constant 0 : index
    %175 = vector.load %arg9[%c25_181, %c0_182] : memref<144x128xf32, #tpu.memory_space<vmem>>, vector<8x128xf32>
    %c37_183 = arith.constant 37 : index
    %c0_184 = arith.constant 0 : index
    %176 = vector.load %arg9[%c37_183, %c0_184] : memref<144x128xf32, #tpu.memory_space<vmem>>, vector<8x128xf32>
    %c49_185 = arith.constant 49 : index
    %c0_186 = arith.constant 0 : index
    %177 = vector.load %arg9[%c49_185, %c0_186] : memref<144x128xf32, #tpu.memory_space<vmem>>, vector<8x128xf32>
    %c61_187 = arith.constant 61 : index
    %c0_188 = arith.constant 0 : index
    %178 = vector.load %arg9[%c61_187, %c0_188] : memref<144x128xf32, #tpu.memory_space<vmem>>, vector<8x128xf32>
    %c73_189 = arith.constant 73 : index
    %c0_190 = arith.constant 0 : index
    %179 = vector.load %arg9[%c73_189, %c0_190] : memref<144x128xf32, #tpu.memory_space<vmem>>, vector<8x128xf32>
    %c85_191 = arith.constant 85 : index
    %c0_192 = arith.constant 0 : index
    %180 = vector.load %arg9[%c85_191, %c0_192] : memref<144x128xf32, #tpu.memory_space<vmem>>, vector<8x128xf32>
    %c97_193 = arith.constant 97 : index
    %c0_194 = arith.constant 0 : index
    %181 = vector.load %arg9[%c97_193, %c0_194] : memref<144x128xf32, #tpu.memory_space<vmem>>, vector<8x128xf32>
    %c109 = arith.constant 109 : index
    %c0_195 = arith.constant 0 : index
    %182 = vector.load %arg9[%c109, %c0_195] : memref<144x128xf32, #tpu.memory_space<vmem>>, vector<8x128xf32>
    %183 = tpu.concatenate %175, %176, %177, %178, %179, %180, %181, %182 in 0 : vector<8x128xf32>, vector<8x128xf32>, vector<8x128xf32>, vector<8x128xf32>, vector<8x128xf32>, vector<8x128xf32>, vector<8x128xf32>, vector<8x128xf32> -> vector<64x128xf32>
    %184 = arith.truncf %183 : vector<64x128xf32> to vector<64x128xbf16>
    %c11 = arith.constant 11 : index
    %c0_196 = arith.constant 0 : index
    %c0_197 = arith.constant 0 : index
    %185 = vector.load %arg5[%c11, %c0_196, %c0_197] : memref<25x128x128xbf16, #tpu.memory_space<vmem>>, vector<1x128x128xbf16>
    %186 = vector.shape_cast %185 : vector<1x128x128xbf16> to vector<128x128xbf16>
    %cst_198 = arith.constant dense<0.000000e+00> : vector<64x128xf32>
    %187 = tpu.matmul %184, %186, %cst_198 {dimension_numbers = #tpu.dot_dimension_numbers<[1], [0], [0], [1], [0, 0, 1, 1], [], []>} : vector<64x128xbf16>, vector<128x128xbf16>, vector<64x128xf32> -> vector<64x128xf32>
    %188 = arith.addf %174, %187 : vector<64x128xf32>
    %c26_199 = arith.constant 26 : index
    %c0_200 = arith.constant 0 : index
    %189 = vector.load %arg9[%c26_199, %c0_200] : memref<144x128xf32, #tpu.memory_space<vmem>>, vector<8x128xf32>
    %c38_201 = arith.constant 38 : index
    %c0_202 = arith.constant 0 : index
    %190 = vector.load %arg9[%c38_201, %c0_202] : memref<144x128xf32, #tpu.memory_space<vmem>>, vector<8x128xf32>
    %c50_203 = arith.constant 50 : index
    %c0_204 = arith.constant 0 : index
    %191 = vector.load %arg9[%c50_203, %c0_204] : memref<144x128xf32, #tpu.memory_space<vmem>>, vector<8x128xf32>
    %c62_205 = arith.constant 62 : index
    %c0_206 = arith.constant 0 : index
    %192 = vector.load %arg9[%c62_205, %c0_206] : memref<144x128xf32, #tpu.memory_space<vmem>>, vector<8x128xf32>
    %c74_207 = arith.constant 74 : index
    %c0_208 = arith.constant 0 : index
    %193 = vector.load %arg9[%c74_207, %c0_208] : memref<144x128xf32, #tpu.memory_space<vmem>>, vector<8x128xf32>
    %c86_209 = arith.constant 86 : index
    %c0_210 = arith.constant 0 : index
    %194 = vector.load %arg9[%c86_209, %c0_210] : memref<144x128xf32, #tpu.memory_space<vmem>>, vector<8x128xf32>
    %c98_211 = arith.constant 98 : index
    %c0_212 = arith.constant 0 : index
    %195 = vector.load %arg9[%c98_211, %c0_212] : memref<144x128xf32, #tpu.memory_space<vmem>>, vector<8x128xf32>
    %c110 = arith.constant 110 : index
    %c0_213 = arith.constant 0 : index
    %196 = vector.load %arg9[%c110, %c0_213] : memref<144x128xf32, #tpu.memory_space<vmem>>, vector<8x128xf32>
    %197 = tpu.concatenate %189, %190, %191, %192, %193, %194, %195, %196 in 0 : vector<8x128xf32>, vector<8x128xf32>, vector<8x128xf32>, vector<8x128xf32>, vector<8x128xf32>, vector<8x128xf32>, vector<8x128xf32>, vector<8x128xf32> -> vector<64x128xf32>
    %198 = arith.truncf %197 : vector<64x128xf32> to vector<64x128xbf16>
    %c12_214 = arith.constant 12 : index
    %c0_215 = arith.constant 0 : index
    %c0_216 = arith.constant 0 : index
    %199 = vector.load %arg5[%c12_214, %c0_215, %c0_216] : memref<25x128x128xbf16, #tpu.memory_space<vmem>>, vector<1x128x128xbf16>
    %200 = vector.shape_cast %199 : vector<1x128x128xbf16> to vector<128x128xbf16>
    %cst_217 = arith.constant dense<0.000000e+00> : vector<64x128xf32>
    %201 = tpu.matmul %198, %200, %cst_217 {dimension_numbers = #tpu.dot_dimension_numbers<[1], [0], [0], [1], [0, 0, 1, 1], [], []>} : vector<64x128xbf16>, vector<128x128xbf16>, vector<64x128xf32> -> vector<64x128xf32>
    %202 = arith.addf %188, %201 : vector<64x128xf32>
    %c27_218 = arith.constant 27 : index
    %c0_219 = arith.constant 0 : index
    %203 = vector.load %arg9[%c27_218, %c0_219] : memref<144x128xf32, #tpu.memory_space<vmem>>, vector<8x128xf32>
    %c39_220 = arith.constant 39 : index
    %c0_221 = arith.constant 0 : index
    %204 = vector.load %arg9[%c39_220, %c0_221] : memref<144x128xf32, #tpu.memory_space<vmem>>, vector<8x128xf32>
    %c51_222 = arith.constant 51 : index
    %c0_223 = arith.constant 0 : index
    %205 = vector.load %arg9[%c51_222, %c0_223] : memref<144x128xf32, #tpu.memory_space<vmem>>, vector<8x128xf32>
    %c63_224 = arith.constant 63 : index
    %c0_225 = arith.constant 0 : index
    %206 = vector.load %arg9[%c63_224, %c0_225] : memref<144x128xf32, #tpu.memory_space<vmem>>, vector<8x128xf32>
    %c75_226 = arith.constant 75 : index
    %c0_227 = arith.constant 0 : index
    %207 = vector.load %arg9[%c75_226, %c0_227] : memref<144x128xf32, #tpu.memory_space<vmem>>, vector<8x128xf32>
    %c87_228 = arith.constant 87 : index
    %c0_229 = arith.constant 0 : index
    %208 = vector.load %arg9[%c87_228, %c0_229] : memref<144x128xf32, #tpu.memory_space<vmem>>, vector<8x128xf32>
    %c99_230 = arith.constant 99 : index
    %c0_231 = arith.constant 0 : index
    %209 = vector.load %arg9[%c99_230, %c0_231] : memref<144x128xf32, #tpu.memory_space<vmem>>, vector<8x128xf32>
    %c111 = arith.constant 111 : index
    %c0_232 = arith.constant 0 : index
    %210 = vector.load %arg9[%c111, %c0_232] : memref<144x128xf32, #tpu.memory_space<vmem>>, vector<8x128xf32>
    %211 = tpu.concatenate %203, %204, %205, %206, %207, %208, %209, %210 in 0 : vector<8x128xf32>, vector<8x128xf32>, vector<8x128xf32>, vector<8x128xf32>, vector<8x128xf32>, vector<8x128xf32>, vector<8x128xf32>, vector<8x128xf32> -> vector<64x128xf32>
    %212 = arith.truncf %211 : vector<64x128xf32> to vector<64x128xbf16>
    %c13_233 = arith.constant 13 : index
    %c0_234 = arith.constant 0 : index
    %c0_235 = arith.constant 0 : index
    %213 = vector.load %arg5[%c13_233, %c0_234, %c0_235] : memref<25x128x128xbf16, #tpu.memory_space<vmem>>, vector<1x128x128xbf16>
    %214 = vector.shape_cast %213 : vector<1x128x128xbf16> to vector<128x128xbf16>
    %cst_236 = arith.constant dense<0.000000e+00> : vector<64x128xf32>
    %215 = tpu.matmul %212, %214, %cst_236 {dimension_numbers = #tpu.dot_dimension_numbers<[1], [0], [0], [1], [0, 0, 1, 1], [], []>} : vector<64x128xbf16>, vector<128x128xbf16>, vector<64x128xf32> -> vector<64x128xf32>
    %216 = arith.addf %202, %215 : vector<64x128xf32>
    %c28_237 = arith.constant 28 : index
    %c0_238 = arith.constant 0 : index
    %217 = vector.load %arg9[%c28_237, %c0_238] : memref<144x128xf32, #tpu.memory_space<vmem>>, vector<8x128xf32>
    %c40_239 = arith.constant 40 : index
    %c0_240 = arith.constant 0 : index
    %218 = vector.load %arg9[%c40_239, %c0_240] : memref<144x128xf32, #tpu.memory_space<vmem>>, vector<8x128xf32>
    %c52_241 = arith.constant 52 : index
    %c0_242 = arith.constant 0 : index
    %219 = vector.load %arg9[%c52_241, %c0_242] : memref<144x128xf32, #tpu.memory_space<vmem>>, vector<8x128xf32>
    %c64_243 = arith.constant 64 : index
    %c0_244 = arith.constant 0 : index
    %220 = vector.load %arg9[%c64_243, %c0_244] : memref<144x128xf32, #tpu.memory_space<vmem>>, vector<8x128xf32>
    %c76_245 = arith.constant 76 : index
    %c0_246 = arith.constant 0 : index
    %221 = vector.load %arg9[%c76_245, %c0_246] : memref<144x128xf32, #tpu.memory_space<vmem>>, vector<8x128xf32>
    %c88_247 = arith.constant 88 : index
    %c0_248 = arith.constant 0 : index
    %222 = vector.load %arg9[%c88_247, %c0_248] : memref<144x128xf32, #tpu.memory_space<vmem>>, vector<8x128xf32>
    %c100_249 = arith.constant 100 : index
    %c0_250 = arith.constant 0 : index
    %223 = vector.load %arg9[%c100_249, %c0_250] : memref<144x128xf32, #tpu.memory_space<vmem>>, vector<8x128xf32>
    %c112 = arith.constant 112 : index
    %c0_251 = arith.constant 0 : index
    %224 = vector.load %arg9[%c112, %c0_251] : memref<144x128xf32, #tpu.memory_space<vmem>>, vector<8x128xf32>
    %225 = tpu.concatenate %217, %218, %219, %220, %221, %222, %223, %224 in 0 : vector<8x128xf32>, vector<8x128xf32>, vector<8x128xf32>, vector<8x128xf32>, vector<8x128xf32>, vector<8x128xf32>, vector<8x128xf32>, vector<8x128xf32> -> vector<64x128xf32>
    %226 = arith.truncf %225 : vector<64x128xf32> to vector<64x128xbf16>
    %c14_252 = arith.constant 14 : index
    %c0_253 = arith.constant 0 : index
    %c0_254 = arith.constant 0 : index
    %227 = vector.load %arg5[%c14_252, %c0_253, %c0_254] : memref<25x128x128xbf16, #tpu.memory_space<vmem>>, vector<1x128x128xbf16>
    %228 = vector.shape_cast %227 : vector<1x128x128xbf16> to vector<128x128xbf16>
    %cst_255 = arith.constant dense<0.000000e+00> : vector<64x128xf32>
    %229 = tpu.matmul %226, %228, %cst_255 {dimension_numbers = #tpu.dot_dimension_numbers<[1], [0], [0], [1], [0, 0, 1, 1], [], []>} : vector<64x128xbf16>, vector<128x128xbf16>, vector<64x128xf32> -> vector<64x128xf32>
    %230 = arith.addf %216, %229 : vector<64x128xf32>
    %c36_256 = arith.constant 36 : index
    %c0_257 = arith.constant 0 : index
    %231 = vector.load %arg9[%c36_256, %c0_257] : memref<144x128xf32, #tpu.memory_space<vmem>>, vector<8x128xf32>
    %c48_258 = arith.constant 48 : index
    %c0_259 = arith.constant 0 : index
    %232 = vector.load %arg9[%c48_258, %c0_259] : memref<144x128xf32, #tpu.memory_space<vmem>>, vector<8x128xf32>
    %c60_260 = arith.constant 60 : index
    %c0_261 = arith.constant 0 : index
    %233 = vector.load %arg9[%c60_260, %c0_261] : memref<144x128xf32, #tpu.memory_space<vmem>>, vector<8x128xf32>
    %c72_262 = arith.constant 72 : index
    %c0_263 = arith.constant 0 : index
    %234 = vector.load %arg9[%c72_262, %c0_263] : memref<144x128xf32, #tpu.memory_space<vmem>>, vector<8x128xf32>
    %c84_264 = arith.constant 84 : index
    %c0_265 = arith.constant 0 : index
    %235 = vector.load %arg9[%c84_264, %c0_265] : memref<144x128xf32, #tpu.memory_space<vmem>>, vector<8x128xf32>
    %c96_266 = arith.constant 96 : index
    %c0_267 = arith.constant 0 : index
    %236 = vector.load %arg9[%c96_266, %c0_267] : memref<144x128xf32, #tpu.memory_space<vmem>>, vector<8x128xf32>
    %c108_268 = arith.constant 108 : index
    %c0_269 = arith.constant 0 : index
    %237 = vector.load %arg9[%c108_268, %c0_269] : memref<144x128xf32, #tpu.memory_space<vmem>>, vector<8x128xf32>
    %c120 = arith.constant 120 : index
    %c0_270 = arith.constant 0 : index
    %238 = vector.load %arg9[%c120, %c0_270] : memref<144x128xf32, #tpu.memory_space<vmem>>, vector<8x128xf32>
    %239 = tpu.concatenate %231, %232, %233, %234, %235, %236, %237, %238 in 0 : vector<8x128xf32>, vector<8x128xf32>, vector<8x128xf32>, vector<8x128xf32>, vector<8x128xf32>, vector<8x128xf32>, vector<8x128xf32>, vector<8x128xf32> -> vector<64x128xf32>
    %240 = arith.truncf %239 : vector<64x128xf32> to vector<64x128xbf16>
    %c15_271 = arith.constant 15 : index
    %c0_272 = arith.constant 0 : index
    %c0_273 = arith.constant 0 : index
    %241 = vector.load %arg5[%c15_271, %c0_272, %c0_273] : memref<25x128x128xbf16, #tpu.memory_space<vmem>>, vector<1x128x128xbf16>
    %242 = vector.shape_cast %241 : vector<1x128x128xbf16> to vector<128x128xbf16>
    %cst_274 = arith.constant dense<0.000000e+00> : vector<64x128xf32>
    %243 = tpu.matmul %240, %242, %cst_274 {dimension_numbers = #tpu.dot_dimension_numbers<[1], [0], [0], [1], [0, 0, 1, 1], [], []>} : vector<64x128xbf16>, vector<128x128xbf16>, vector<64x128xf32> -> vector<64x128xf32>
    %244 = arith.addf %230, %243 : vector<64x128xf32>
    %c37_275 = arith.constant 37 : index
    %c0_276 = arith.constant 0 : index
    %245 = vector.load %arg9[%c37_275, %c0_276] : memref<144x128xf32, #tpu.memory_space<vmem>>, vector<8x128xf32>
    %c49_277 = arith.constant 49 : index
    %c0_278 = arith.constant 0 : index
    %246 = vector.load %arg9[%c49_277, %c0_278] : memref<144x128xf32, #tpu.memory_space<vmem>>, vector<8x128xf32>
    %c61_279 = arith.constant 61 : index
    %c0_280 = arith.constant 0 : index
    %247 = vector.load %arg9[%c61_279, %c0_280] : memref<144x128xf32, #tpu.memory_space<vmem>>, vector<8x128xf32>
    %c73_281 = arith.constant 73 : index
    %c0_282 = arith.constant 0 : index
    %248 = vector.load %arg9[%c73_281, %c0_282] : memref<144x128xf32, #tpu.memory_space<vmem>>, vector<8x128xf32>
    %c85_283 = arith.constant 85 : index
    %c0_284 = arith.constant 0 : index
    %249 = vector.load %arg9[%c85_283, %c0_284] : memref<144x128xf32, #tpu.memory_space<vmem>>, vector<8x128xf32>
    %c97_285 = arith.constant 97 : index
    %c0_286 = arith.constant 0 : index
    %250 = vector.load %arg9[%c97_285, %c0_286] : memref<144x128xf32, #tpu.memory_space<vmem>>, vector<8x128xf32>
    %c109_287 = arith.constant 109 : index
    %c0_288 = arith.constant 0 : index
    %251 = vector.load %arg9[%c109_287, %c0_288] : memref<144x128xf32, #tpu.memory_space<vmem>>, vector<8x128xf32>
    %c121 = arith.constant 121 : index
    %c0_289 = arith.constant 0 : index
    %252 = vector.load %arg9[%c121, %c0_289] : memref<144x128xf32, #tpu.memory_space<vmem>>, vector<8x128xf32>
    %253 = tpu.concatenate %245, %246, %247, %248, %249, %250, %251, %252 in 0 : vector<8x128xf32>, vector<8x128xf32>, vector<8x128xf32>, vector<8x128xf32>, vector<8x128xf32>, vector<8x128xf32>, vector<8x128xf32>, vector<8x128xf32> -> vector<64x128xf32>
    %254 = arith.truncf %253 : vector<64x128xf32> to vector<64x128xbf16>
    %c16_290 = arith.constant 16 : index
    %c0_291 = arith.constant 0 : index
    %c0_292 = arith.constant 0 : index
    %255 = vector.load %arg5[%c16_290, %c0_291, %c0_292] : memref<25x128x128xbf16, #tpu.memory_space<vmem>>, vector<1x128x128xbf16>
    %256 = vector.shape_cast %255 : vector<1x128x128xbf16> to vector<128x128xbf16>
    %cst_293 = arith.constant dense<0.000000e+00> : vector<64x128xf32>
    %257 = tpu.matmul %254, %256, %cst_293 {dimension_numbers = #tpu.dot_dimension_numbers<[1], [0], [0], [1], [0, 0, 1, 1], [], []>} : vector<64x128xbf16>, vector<128x128xbf16>, vector<64x128xf32> -> vector<64x128xf32>
    %258 = arith.addf %244, %257 : vector<64x128xf32>
    %c38_294 = arith.constant 38 : index
    %c0_295 = arith.constant 0 : index
    %259 = vector.load %arg9[%c38_294, %c0_295] : memref<144x128xf32, #tpu.memory_space<vmem>>, vector<8x128xf32>
    %c50_296 = arith.constant 50 : index
    %c0_297 = arith.constant 0 : index
    %260 = vector.load %arg9[%c50_296, %c0_297] : memref<144x128xf32, #tpu.memory_space<vmem>>, vector<8x128xf32>
    %c62_298 = arith.constant 62 : index
    %c0_299 = arith.constant 0 : index
    %261 = vector.load %arg9[%c62_298, %c0_299] : memref<144x128xf32, #tpu.memory_space<vmem>>, vector<8x128xf32>
    %c74_300 = arith.constant 74 : index
    %c0_301 = arith.constant 0 : index
    %262 = vector.load %arg9[%c74_300, %c0_301] : memref<144x128xf32, #tpu.memory_space<vmem>>, vector<8x128xf32>
    %c86_302 = arith.constant 86 : index
    %c0_303 = arith.constant 0 : index
    %263 = vector.load %arg9[%c86_302, %c0_303] : memref<144x128xf32, #tpu.memory_space<vmem>>, vector<8x128xf32>
    %c98_304 = arith.constant 98 : index
    %c0_305 = arith.constant 0 : index
    %264 = vector.load %arg9[%c98_304, %c0_305] : memref<144x128xf32, #tpu.memory_space<vmem>>, vector<8x128xf32>
    %c110_306 = arith.constant 110 : index
    %c0_307 = arith.constant 0 : index
    %265 = vector.load %arg9[%c110_306, %c0_307] : memref<144x128xf32, #tpu.memory_space<vmem>>, vector<8x128xf32>
    %c122 = arith.constant 122 : index
    %c0_308 = arith.constant 0 : index
    %266 = vector.load %arg9[%c122, %c0_308] : memref<144x128xf32, #tpu.memory_space<vmem>>, vector<8x128xf32>
    %267 = tpu.concatenate %259, %260, %261, %262, %263, %264, %265, %266 in 0 : vector<8x128xf32>, vector<8x128xf32>, vector<8x128xf32>, vector<8x128xf32>, vector<8x128xf32>, vector<8x128xf32>, vector<8x128xf32>, vector<8x128xf32> -> vector<64x128xf32>
    %268 = arith.truncf %267 : vector<64x128xf32> to vector<64x128xbf16>
    %c17 = arith.constant 17 : index
    %c0_309 = arith.constant 0 : index
    %c0_310 = arith.constant 0 : index
    %269 = vector.load %arg5[%c17, %c0_309, %c0_310] : memref<25x128x128xbf16, #tpu.memory_space<vmem>>, vector<1x128x128xbf16>
    %270 = vector.shape_cast %269 : vector<1x128x128xbf16> to vector<128x128xbf16>
    %cst_311 = arith.constant dense<0.000000e+00> : vector<64x128xf32>
    %271 = tpu.matmul %268, %270, %cst_311 {dimension_numbers = #tpu.dot_dimension_numbers<[1], [0], [0], [1], [0, 0, 1, 1], [], []>} : vector<64x128xbf16>, vector<128x128xbf16>, vector<64x128xf32> -> vector<64x128xf32>
    %272 = arith.addf %258, %271 : vector<64x128xf32>
    %c39_312 = arith.constant 39 : index
    %c0_313 = arith.constant 0 : index
    %273 = vector.load %arg9[%c39_312, %c0_313] : memref<144x128xf32, #tpu.memory_space<vmem>>, vector<8x128xf32>
    %c51_314 = arith.constant 51 : index
    %c0_315 = arith.constant 0 : index
    %274 = vector.load %arg9[%c51_314, %c0_315] : memref<144x128xf32, #tpu.memory_space<vmem>>, vector<8x128xf32>
    %c63_316 = arith.constant 63 : index
    %c0_317 = arith.constant 0 : index
    %275 = vector.load %arg9[%c63_316, %c0_317] : memref<144x128xf32, #tpu.memory_space<vmem>>, vector<8x128xf32>
    %c75_318 = arith.constant 75 : index
    %c0_319 = arith.constant 0 : index
    %276 = vector.load %arg9[%c75_318, %c0_319] : memref<144x128xf32, #tpu.memory_space<vmem>>, vector<8x128xf32>
    %c87_320 = arith.constant 87 : index
    %c0_321 = arith.constant 0 : index
    %277 = vector.load %arg9[%c87_320, %c0_321] : memref<144x128xf32, #tpu.memory_space<vmem>>, vector<8x128xf32>
    %c99_322 = arith.constant 99 : index
    %c0_323 = arith.constant 0 : index
    %278 = vector.load %arg9[%c99_322, %c0_323] : memref<144x128xf32, #tpu.memory_space<vmem>>, vector<8x128xf32>
    %c111_324 = arith.constant 111 : index
    %c0_325 = arith.constant 0 : index
    %279 = vector.load %arg9[%c111_324, %c0_325] : memref<144x128xf32, #tpu.memory_space<vmem>>, vector<8x128xf32>
    %c123 = arith.constant 123 : index
    %c0_326 = arith.constant 0 : index
    %280 = vector.load %arg9[%c123, %c0_326] : memref<144x128xf32, #tpu.memory_space<vmem>>, vector<8x128xf32>
    %281 = tpu.concatenate %273, %274, %275, %276, %277, %278, %279, %280 in 0 : vector<8x128xf32>, vector<8x128xf32>, vector<8x128xf32>, vector<8x128xf32>, vector<8x128xf32>, vector<8x128xf32>, vector<8x128xf32>, vector<8x128xf32> -> vector<64x128xf32>
    %282 = arith.truncf %281 : vector<64x128xf32> to vector<64x128xbf16>
    %c18 = arith.constant 18 : index
    %c0_327 = arith.constant 0 : index
    %c0_328 = arith.constant 0 : index
    %283 = vector.load %arg5[%c18, %c0_327, %c0_328] : memref<25x128x128xbf16, #tpu.memory_space<vmem>>, vector<1x128x128xbf16>
    %284 = vector.shape_cast %283 : vector<1x128x128xbf16> to vector<128x128xbf16>
    %cst_329 = arith.constant dense<0.000000e+00> : vector<64x128xf32>
    %285 = tpu.matmul %282, %284, %cst_329 {dimension_numbers = #tpu.dot_dimension_numbers<[1], [0], [0], [1], [0, 0, 1, 1], [], []>} : vector<64x128xbf16>, vector<128x128xbf16>, vector<64x128xf32> -> vector<64x128xf32>
    %286 = arith.addf %272, %285 : vector<64x128xf32>
    %c40_330 = arith.constant 40 : index
    %c0_331 = arith.constant 0 : index
    %287 = vector.load %arg9[%c40_330, %c0_331] : memref<144x128xf32, #tpu.memory_space<vmem>>, vector<8x128xf32>
    %c52_332 = arith.constant 52 : index
    %c0_333 = arith.constant 0 : index
    %288 = vector.load %arg9[%c52_332, %c0_333] : memref<144x128xf32, #tpu.memory_space<vmem>>, vector<8x128xf32>
    %c64_334 = arith.constant 64 : index
    %c0_335 = arith.constant 0 : index
    %289 = vector.load %arg9[%c64_334, %c0_335] : memref<144x128xf32, #tpu.memory_space<vmem>>, vector<8x128xf32>
    %c76_336 = arith.constant 76 : index
    %c0_337 = arith.constant 0 : index
    %290 = vector.load %arg9[%c76_336, %c0_337] : memref<144x128xf32, #tpu.memory_space<vmem>>, vector<8x128xf32>
    %c88_338 = arith.constant 88 : index
    %c0_339 = arith.constant 0 : index
    %291 = vector.load %arg9[%c88_338, %c0_339] : memref<144x128xf32, #tpu.memory_space<vmem>>, vector<8x128xf32>
    %c100_340 = arith.constant 100 : index
    %c0_341 = arith.constant 0 : index
    %292 = vector.load %arg9[%c100_340, %c0_341] : memref<144x128xf32, #tpu.memory_space<vmem>>, vector<8x128xf32>
    %c112_342 = arith.constant 112 : index
    %c0_343 = arith.constant 0 : index
    %293 = vector.load %arg9[%c112_342, %c0_343] : memref<144x128xf32, #tpu.memory_space<vmem>>, vector<8x128xf32>
    %c124 = arith.constant 124 : index
    %c0_344 = arith.constant 0 : index
    %294 = vector.load %arg9[%c124, %c0_344] : memref<144x128xf32, #tpu.memory_space<vmem>>, vector<8x128xf32>
    %295 = tpu.concatenate %287, %288, %289, %290, %291, %292, %293, %294 in 0 : vector<8x128xf32>, vector<8x128xf32>, vector<8x128xf32>, vector<8x128xf32>, vector<8x128xf32>, vector<8x128xf32>, vector<8x128xf32>, vector<8x128xf32> -> vector<64x128xf32>
    %296 = arith.truncf %295 : vector<64x128xf32> to vector<64x128xbf16>
    %c19 = arith.constant 19 : index
    %c0_345 = arith.constant 0 : index
    %c0_346 = arith.constant 0 : index
    %297 = vector.load %arg5[%c19, %c0_345, %c0_346] : memref<25x128x128xbf16, #tpu.memory_space<vmem>>, vector<1x128x128xbf16>
    %298 = vector.shape_cast %297 : vector<1x128x128xbf16> to vector<128x128xbf16>
    %cst_347 = arith.constant dense<0.000000e+00> : vector<64x128xf32>
    %299 = tpu.matmul %296, %298, %cst_347 {dimension_numbers = #tpu.dot_dimension_numbers<[1], [0], [0], [1], [0, 0, 1, 1], [], []>} : vector<64x128xbf16>, vector<128x128xbf16>, vector<64x128xf32> -> vector<64x128xf32>
    %300 = arith.addf %286, %299 : vector<64x128xf32>
    %c48_348 = arith.constant 48 : index
    %c0_349 = arith.constant 0 : index
    %301 = vector.load %arg9[%c48_348, %c0_349] : memref<144x128xf32, #tpu.memory_space<vmem>>, vector<8x128xf32>
    %c60_350 = arith.constant 60 : index
    %c0_351 = arith.constant 0 : index
    %302 = vector.load %arg9[%c60_350, %c0_351] : memref<144x128xf32, #tpu.memory_space<vmem>>, vector<8x128xf32>
    %c72_352 = arith.constant 72 : index
    %c0_353 = arith.constant 0 : index
    %303 = vector.load %arg9[%c72_352, %c0_353] : memref<144x128xf32, #tpu.memory_space<vmem>>, vector<8x128xf32>
    %c84_354 = arith.constant 84 : index
    %c0_355 = arith.constant 0 : index
    %304 = vector.load %arg9[%c84_354, %c0_355] : memref<144x128xf32, #tpu.memory_space<vmem>>, vector<8x128xf32>
    %c96_356 = arith.constant 96 : index
    %c0_357 = arith.constant 0 : index
    %305 = vector.load %arg9[%c96_356, %c0_357] : memref<144x128xf32, #tpu.memory_space<vmem>>, vector<8x128xf32>
    %c108_358 = arith.constant 108 : index
    %c0_359 = arith.constant 0 : index
    %306 = vector.load %arg9[%c108_358, %c0_359] : memref<144x128xf32, #tpu.memory_space<vmem>>, vector<8x128xf32>
    %c120_360 = arith.constant 120 : index
    %c0_361 = arith.constant 0 : index
    %307 = vector.load %arg9[%c120_360, %c0_361] : memref<144x128xf32, #tpu.memory_space<vmem>>, vector<8x128xf32>
    %c132 = arith.constant 132 : index
    %c0_362 = arith.constant 0 : index
    %308 = vector.load %arg9[%c132, %c0_362] : memref<144x128xf32, #tpu.memory_space<vmem>>, vector<8x128xf32>
    %309 = tpu.concatenate %301, %302, %303, %304, %305, %306, %307, %308 in 0 : vector<8x128xf32>, vector<8x128xf32>, vector<8x128xf32>, vector<8x128xf32>, vector<8x128xf32>, vector<8x128xf32>, vector<8x128xf32>, vector<8x128xf32> -> vector<64x128xf32>
    %310 = arith.truncf %309 : vector<64x128xf32> to vector<64x128xbf16>
    %c20 = arith.constant 20 : index
    %c0_363 = arith.constant 0 : index
    %c0_364 = arith.constant 0 : index
    %311 = vector.load %arg5[%c20, %c0_363, %c0_364] : memref<25x128x128xbf16, #tpu.memory_space<vmem>>, vector<1x128x128xbf16>
    %312 = vector.shape_cast %311 : vector<1x128x128xbf16> to vector<128x128xbf16>
    %cst_365 = arith.constant dense<0.000000e+00> : vector<64x128xf32>
    %313 = tpu.matmul %310, %312, %cst_365 {dimension_numbers = #tpu.dot_dimension_numbers<[1], [0], [0], [1], [0, 0, 1, 1], [], []>} : vector<64x128xbf16>, vector<128x128xbf16>, vector<64x128xf32> -> vector<64x128xf32>
    %314 = arith.addf %300, %313 : vector<64x128xf32>
    %c49_366 = arith.constant 49 : index
    %c0_367 = arith.constant 0 : index
    %315 = vector.load %arg9[%c49_366, %c0_367] : memref<144x128xf32, #tpu.memory_space<vmem>>, vector<8x128xf32>
    %c61_368 = arith.constant 61 : index
    %c0_369 = arith.constant 0 : index
    %316 = vector.load %arg9[%c61_368, %c0_369] : memref<144x128xf32, #tpu.memory_space<vmem>>, vector<8x128xf32>
    %c73_370 = arith.constant 73 : index
    %c0_371 = arith.constant 0 : index
    %317 = vector.load %arg9[%c73_370, %c0_371] : memref<144x128xf32, #tpu.memory_space<vmem>>, vector<8x128xf32>
    %c85_372 = arith.constant 85 : index
    %c0_373 = arith.constant 0 : index
    %318 = vector.load %arg9[%c85_372, %c0_373] : memref<144x128xf32, #tpu.memory_space<vmem>>, vector<8x128xf32>
    %c97_374 = arith.constant 97 : index
    %c0_375 = arith.constant 0 : index
    %319 = vector.load %arg9[%c97_374, %c0_375] : memref<144x128xf32, #tpu.memory_space<vmem>>, vector<8x128xf32>
    %c109_376 = arith.constant 109 : index
    %c0_377 = arith.constant 0 : index
    %320 = vector.load %arg9[%c109_376, %c0_377] : memref<144x128xf32, #tpu.memory_space<vmem>>, vector<8x128xf32>
    %c121_378 = arith.constant 121 : index
    %c0_379 = arith.constant 0 : index
    %321 = vector.load %arg9[%c121_378, %c0_379] : memref<144x128xf32, #tpu.memory_space<vmem>>, vector<8x128xf32>
    %c133 = arith.constant 133 : index
    %c0_380 = arith.constant 0 : index
    %322 = vector.load %arg9[%c133, %c0_380] : memref<144x128xf32, #tpu.memory_space<vmem>>, vector<8x128xf32>
    %323 = tpu.concatenate %315, %316, %317, %318, %319, %320, %321, %322 in 0 : vector<8x128xf32>, vector<8x128xf32>, vector<8x128xf32>, vector<8x128xf32>, vector<8x128xf32>, vector<8x128xf32>, vector<8x128xf32>, vector<8x128xf32> -> vector<64x128xf32>
    %324 = arith.truncf %323 : vector<64x128xf32> to vector<64x128xbf16>
    %c21 = arith.constant 21 : index
    %c0_381 = arith.constant 0 : index
    %c0_382 = arith.constant 0 : index
    %325 = vector.load %arg5[%c21, %c0_381, %c0_382] : memref<25x128x128xbf16, #tpu.memory_space<vmem>>, vector<1x128x128xbf16>
    %326 = vector.shape_cast %325 : vector<1x128x128xbf16> to vector<128x128xbf16>
    %cst_383 = arith.constant dense<0.000000e+00> : vector<64x128xf32>
    %327 = tpu.matmul %324, %326, %cst_383 {dimension_numbers = #tpu.dot_dimension_numbers<[1], [0], [0], [1], [0, 0, 1, 1], [], []>} : vector<64x128xbf16>, vector<128x128xbf16>, vector<64x128xf32> -> vector<64x128xf32>
    %328 = arith.addf %314, %327 : vector<64x128xf32>
    %c50_384 = arith.constant 50 : index
    %c0_385 = arith.constant 0 : index
    %329 = vector.load %arg9[%c50_384, %c0_385] : memref<144x128xf32, #tpu.memory_space<vmem>>, vector<8x128xf32>
    %c62_386 = arith.constant 62 : index
    %c0_387 = arith.constant 0 : index
    %330 = vector.load %arg9[%c62_386, %c0_387] : memref<144x128xf32, #tpu.memory_space<vmem>>, vector<8x128xf32>
    %c74_388 = arith.constant 74 : index
    %c0_389 = arith.constant 0 : index
    %331 = vector.load %arg9[%c74_388, %c0_389] : memref<144x128xf32, #tpu.memory_space<vmem>>, vector<8x128xf32>
    %c86_390 = arith.constant 86 : index
    %c0_391 = arith.constant 0 : index
    %332 = vector.load %arg9[%c86_390, %c0_391] : memref<144x128xf32, #tpu.memory_space<vmem>>, vector<8x128xf32>
    %c98_392 = arith.constant 98 : index
    %c0_393 = arith.constant 0 : index
    %333 = vector.load %arg9[%c98_392, %c0_393] : memref<144x128xf32, #tpu.memory_space<vmem>>, vector<8x128xf32>
    %c110_394 = arith.constant 110 : index
    %c0_395 = arith.constant 0 : index
    %334 = vector.load %arg9[%c110_394, %c0_395] : memref<144x128xf32, #tpu.memory_space<vmem>>, vector<8x128xf32>
    %c122_396 = arith.constant 122 : index
    %c0_397 = arith.constant 0 : index
    %335 = vector.load %arg9[%c122_396, %c0_397] : memref<144x128xf32, #tpu.memory_space<vmem>>, vector<8x128xf32>
    %c134 = arith.constant 134 : index
    %c0_398 = arith.constant 0 : index
    %336 = vector.load %arg9[%c134, %c0_398] : memref<144x128xf32, #tpu.memory_space<vmem>>, vector<8x128xf32>
    %337 = tpu.concatenate %329, %330, %331, %332, %333, %334, %335, %336 in 0 : vector<8x128xf32>, vector<8x128xf32>, vector<8x128xf32>, vector<8x128xf32>, vector<8x128xf32>, vector<8x128xf32>, vector<8x128xf32>, vector<8x128xf32> -> vector<64x128xf32>
    %338 = arith.truncf %337 : vector<64x128xf32> to vector<64x128xbf16>
    %c22 = arith.constant 22 : index
    %c0_399 = arith.constant 0 : index
    %c0_400 = arith.constant 0 : index
    %339 = vector.load %arg5[%c22, %c0_399, %c0_400] : memref<25x128x128xbf16, #tpu.memory_space<vmem>>, vector<1x128x128xbf16>
    %340 = vector.shape_cast %339 : vector<1x128x128xbf16> to vector<128x128xbf16>
    %cst_401 = arith.constant dense<0.000000e+00> : vector<64x128xf32>
    %341 = tpu.matmul %338, %340, %cst_401 {dimension_numbers = #tpu.dot_dimension_numbers<[1], [0], [0], [1], [0, 0, 1, 1], [], []>} : vector<64x128xbf16>, vector<128x128xbf16>, vector<64x128xf32> -> vector<64x128xf32>
    %342 = arith.addf %328, %341 : vector<64x128xf32>
    %c51_402 = arith.constant 51 : index
    %c0_403 = arith.constant 0 : index
    %343 = vector.load %arg9[%c51_402, %c0_403] : memref<144x128xf32, #tpu.memory_space<vmem>>, vector<8x128xf32>
    %c63_404 = arith.constant 63 : index
    %c0_405 = arith.constant 0 : index
    %344 = vector.load %arg9[%c63_404, %c0_405] : memref<144x128xf32, #tpu.memory_space<vmem>>, vector<8x128xf32>
    %c75_406 = arith.constant 75 : index
    %c0_407 = arith.constant 0 : index
    %345 = vector.load %arg9[%c75_406, %c0_407] : memref<144x128xf32, #tpu.memory_space<vmem>>, vector<8x128xf32>
    %c87_408 = arith.constant 87 : index
    %c0_409 = arith.constant 0 : index
    %346 = vector.load %arg9[%c87_408, %c0_409] : memref<144x128xf32, #tpu.memory_space<vmem>>, vector<8x128xf32>
    %c99_410 = arith.constant 99 : index
    %c0_411 = arith.constant 0 : index
    %347 = vector.load %arg9[%c99_410, %c0_411] : memref<144x128xf32, #tpu.memory_space<vmem>>, vector<8x128xf32>
    %c111_412 = arith.constant 111 : index
    %c0_413 = arith.constant 0 : index
    %348 = vector.load %arg9[%c111_412, %c0_413] : memref<144x128xf32, #tpu.memory_space<vmem>>, vector<8x128xf32>
    %c123_414 = arith.constant 123 : index
    %c0_415 = arith.constant 0 : index
    %349 = vector.load %arg9[%c123_414, %c0_415] : memref<144x128xf32, #tpu.memory_space<vmem>>, vector<8x128xf32>
    %c135 = arith.constant 135 : index
    %c0_416 = arith.constant 0 : index
    %350 = vector.load %arg9[%c135, %c0_416] : memref<144x128xf32, #tpu.memory_space<vmem>>, vector<8x128xf32>
    %351 = tpu.concatenate %343, %344, %345, %346, %347, %348, %349, %350 in 0 : vector<8x128xf32>, vector<8x128xf32>, vector<8x128xf32>, vector<8x128xf32>, vector<8x128xf32>, vector<8x128xf32>, vector<8x128xf32>, vector<8x128xf32> -> vector<64x128xf32>
    %352 = arith.truncf %351 : vector<64x128xf32> to vector<64x128xbf16>
    %c23 = arith.constant 23 : index
    %c0_417 = arith.constant 0 : index
    %c0_418 = arith.constant 0 : index
    %353 = vector.load %arg5[%c23, %c0_417, %c0_418] : memref<25x128x128xbf16, #tpu.memory_space<vmem>>, vector<1x128x128xbf16>
    %354 = vector.shape_cast %353 : vector<1x128x128xbf16> to vector<128x128xbf16>
    %cst_419 = arith.constant dense<0.000000e+00> : vector<64x128xf32>
    %355 = tpu.matmul %352, %354, %cst_419 {dimension_numbers = #tpu.dot_dimension_numbers<[1], [0], [0], [1], [0, 0, 1, 1], [], []>} : vector<64x128xbf16>, vector<128x128xbf16>, vector<64x128xf32> -> vector<64x128xf32>
    %356 = arith.addf %342, %355 : vector<64x128xf32>
    %c52_420 = arith.constant 52 : index
    %c0_421 = arith.constant 0 : index
    %357 = vector.load %arg9[%c52_420, %c0_421] : memref<144x128xf32, #tpu.memory_space<vmem>>, vector<8x128xf32>
    %c64_422 = arith.constant 64 : index
    %c0_423 = arith.constant 0 : index
    %358 = vector.load %arg9[%c64_422, %c0_423] : memref<144x128xf32, #tpu.memory_space<vmem>>, vector<8x128xf32>
    %c76_424 = arith.constant 76 : index
    %c0_425 = arith.constant 0 : index
    %359 = vector.load %arg9[%c76_424, %c0_425] : memref<144x128xf32, #tpu.memory_space<vmem>>, vector<8x128xf32>
    %c88_426 = arith.constant 88 : index
    %c0_427 = arith.constant 0 : index
    %360 = vector.load %arg9[%c88_426, %c0_427] : memref<144x128xf32, #tpu.memory_space<vmem>>, vector<8x128xf32>
    %c100_428 = arith.constant 100 : index
    %c0_429 = arith.constant 0 : index
    %361 = vector.load %arg9[%c100_428, %c0_429] : memref<144x128xf32, #tpu.memory_space<vmem>>, vector<8x128xf32>
    %c112_430 = arith.constant 112 : index
    %c0_431 = arith.constant 0 : index
    %362 = vector.load %arg9[%c112_430, %c0_431] : memref<144x128xf32, #tpu.memory_space<vmem>>, vector<8x128xf32>
    %c124_432 = arith.constant 124 : index
    %c0_433 = arith.constant 0 : index
    %363 = vector.load %arg9[%c124_432, %c0_433] : memref<144x128xf32, #tpu.memory_space<vmem>>, vector<8x128xf32>
    %c136 = arith.constant 136 : index
    %c0_434 = arith.constant 0 : index
    %364 = vector.load %arg9[%c136, %c0_434] : memref<144x128xf32, #tpu.memory_space<vmem>>, vector<8x128xf32>
    %365 = tpu.concatenate %357, %358, %359, %360, %361, %362, %363, %364 in 0 : vector<8x128xf32>, vector<8x128xf32>, vector<8x128xf32>, vector<8x128xf32>, vector<8x128xf32>, vector<8x128xf32>, vector<8x128xf32>, vector<8x128xf32> -> vector<64x128xf32>
    %366 = arith.truncf %365 : vector<64x128xf32> to vector<64x128xbf16>
    %c24_435 = arith.constant 24 : index
    %c0_436 = arith.constant 0 : index
    %c0_437 = arith.constant 0 : index
    %367 = vector.load %arg5[%c24_435, %c0_436, %c0_437] : memref<25x128x128xbf16, #tpu.memory_space<vmem>>, vector<1x128x128xbf16>
    %368 = vector.shape_cast %367 : vector<1x128x128xbf16> to vector<128x128xbf16>
    %cst_438 = arith.constant dense<0.000000e+00> : vector<64x128xf32>
    %369 = tpu.matmul %366, %368, %cst_438 {dimension_numbers = #tpu.dot_dimension_numbers<[1], [0], [0], [1], [0, 0, 1, 1], [], []>} : vector<64x128xbf16>, vector<128x128xbf16>, vector<64x128xf32> -> vector<64x128xf32>
    %370 = arith.addf %356, %369 : vector<64x128xf32>
    %c0_439 = arith.constant 0 : index
    %c0_440 = arith.constant 0 : index
    %371 = vector.load %arg6[%c0_439, %c0_440] : memref<1x128xf32, #tpu.memory_space<vmem>>, vector<1x128xf32>
    %372 = vector.broadcast %371 : vector<1x128xf32> to vector<64x128xf32>
    %373 = arith.mulf %370, %372 : vector<64x128xf32>
    %c0_441 = arith.constant 0 : index
    %c0_442 = arith.constant 0 : index
    %374 = vector.load %arg7[%c0_441, %c0_442] : memref<1x128xf32, #tpu.memory_space<vmem>>, vector<1x128xf32>
    %375 = vector.broadcast %374 : vector<1x128xf32> to vector<64x128xf32>
    %376 = arith.addf %373, %375 : vector<64x128xf32>
    %cst_443 = arith.constant 0.000000e+00 : f32
    %377 = vector.broadcast %cst_443 : f32 to vector<64x128xf32>
    %378 = arith.maximumf %376, %377 : vector<64x128xf32>
    %379 = vector.extract_strided_slice %378 {offsets = [0, 0], sizes = [8, 128], strides = [1, 1]} : vector<64x128xf32> to vector<8x128xf32>
    %380 = vector.extract_strided_slice %378 {offsets = [8, 0], sizes = [8, 128], strides = [1, 1]} : vector<64x128xf32> to vector<8x128xf32>
    %381 = arith.maximumf %379, %380 : vector<8x128xf32>
    %382 = vector.extract_strided_slice %378 {offsets = [16, 0], sizes = [8, 128], strides = [1, 1]} : vector<64x128xf32> to vector<8x128xf32>
    %383 = vector.extract_strided_slice %378 {offsets = [24, 0], sizes = [8, 128], strides = [1, 1]} : vector<64x128xf32> to vector<8x128xf32>
    %384 = arith.maximumf %382, %383 : vector<8x128xf32>
    %385 = vector.extract_strided_slice %378 {offsets = [32, 0], sizes = [8, 128], strides = [1, 1]} : vector<64x128xf32> to vector<8x128xf32>
    %386 = vector.extract_strided_slice %378 {offsets = [40, 0], sizes = [8, 128], strides = [1, 1]} : vector<64x128xf32> to vector<8x128xf32>
    %387 = arith.maximumf %385, %386 : vector<8x128xf32>
    %388 = vector.extract_strided_slice %378 {offsets = [48, 0], sizes = [8, 128], strides = [1, 1]} : vector<64x128xf32> to vector<8x128xf32>
    %389 = vector.extract_strided_slice %378 {offsets = [56, 0], sizes = [8, 128], strides = [1, 1]} : vector<64x128xf32> to vector<8x128xf32>
    %390 = arith.maximumf %388, %389 : vector<8x128xf32>
    %391 = tpu.concatenate %381, %384, %387, %390 in 0 : vector<8x128xf32>, vector<8x128xf32>, vector<8x128xf32>, vector<8x128xf32> -> vector<32x128xf32>
    %392 = arith.truncf %391 : vector<32x128xf32> to vector<32x128xbf16>
    %c0_444 = arith.constant 0 : index
    %c0_445 = arith.constant 0 : index
    %c0_446 = arith.constant 0 : index
    %393 = vector.load %arg8[%c0_444, %c0_445, %c0_446] : memref<1x32x128xbf16, #tpu.memory_space<vmem>>, vector<1x32x128xbf16>
    %394 = vector.shape_cast %393 : vector<1x32x128xbf16> to vector<32x128xbf16>
    %395 = vector.shape_cast %392 : vector<32x128xbf16> to vector<1x32x128xbf16>
    tpu.vector_store %arg8[%c0_444, %c0_445, %c0_446], %395 {strides = array<i32>} : memref<1x32x128xbf16, #tpu.memory_space<vmem>>, vector<1x32x128xbf16>,
    return
  }
  func.func @transform_0(%arg0: i32) -> (i32, i32, i32) {
    %c0_i32 = arith.constant 0 : i32
    %c0_i32_0 = arith.constant 0 : i32
    %c0_i32_1 = arith.constant 0 : i32
    return %arg0, %c0_i32, %c0_i32_0 : i32, i32, i32
  }
  func.func @transform_1(%arg0: i32) -> (i32, i32) {
    %c0_i32 = arith.constant 0 : i32
    %c0_i32_0 = arith.constant 0 : i32
    %c0_i32_1 = arith.constant 0 : i32
    return %c0_i32, %c0_i32_0 : i32, i32
  }
  func.func @transform_2(%arg0: i32) -> (i32, i32) {
    %c0_i32 = arith.constant 0 : i32
    %c0_i32_0 = arith.constant 0 : i32
    %c0_i32_1 = arith.constant 0 : i32
    return %c0_i32, %c0_i32_0 : i32, i32
  }
  func.func @transform_3(%arg0: i32) -> (i32, i32) {
    %c0_i32 = arith.constant 0 : i32
    %c0_i32_0 = arith.constant 0 : i32
    %c0_i32_1 = arith.constant 0 : i32
    return %c0_i32, %c0_i32_0 : i32, i32
  }
  func.func @transform_4(%arg0: i32) -> (i32, i32, i32) {
    %c0_i32 = arith.constant 0 : i32
    %c0_i32_0 = arith.constant 0 : i32
    %c0_i32_1 = arith.constant 0 : i32
    %c0_i32_2 = arith.constant 0 : i32
    return %c0_i32, %c0_i32_0, %c0_i32_1 : i32, i32, i32
  }
  func.func @transform_5(%arg0: i32) -> (i32, i32) {
    %c0_i32 = arith.constant 0 : i32
    %c0_i32_0 = arith.constant 0 : i32
    %c0_i32_1 = arith.constant 0 : i32
    return %c0_i32, %c0_i32_0 : i32, i32
  }
  func.func @transform_6(%arg0: i32) -> (i32, i32) {
    %c0_i32 = arith.constant 0 : i32
    %c0_i32_0 = arith.constant 0 : i32
    %c0_i32_1 = arith.constant 0 : i32
    return %c0_i32, %c0_i32_0 : i32, i32
  }
  func.func @transform_7(%arg0: i32) -> (i32, i32, i32) {
    %c0_i32 = arith.constant 0 : i32
    %c0_i32_0 = arith.constant 0 : i32
    %c0_i32_1 = arith.constant 0 : i32
    return %arg0, %c0_i32, %c0_i32_0 : i32, i32, i32
  }
}

module attributes {stable_mosaic.version = 11 : i64} {
  func.func @head_kernel(%arg0: i32, %arg1: memref<8x4096xbf16, #tpu.memory_space<vmem>>, %arg2: memref<2048x128xbf16, #tpu.memory_space<vmem>>, %arg3: memref<1x128xf32, #tpu.memory_space<vmem>>, %arg4: memref<1x128xf32, #tpu.memory_space<vmem>>, %arg5: memref<128x128xbf16, #tpu.memory_space<vmem>>, %arg6: memref<1x128xf32, #tpu.memory_space<vmem>>, %arg7: memref<8x128xf32, #tpu.memory_space<vmem>>) attributes {dimension_semantics = [#tpu.dimension_semantics<parallel>], iteration_bounds = array<i64: 1>, scalar_prefetch = 0 : i64, scratch_operands = 0 : i64, tpu.core_type = #tpu.core_type<tc>, window_params = [{transform_indices = @transform_0, window_bounds = array<i64: 8, 4096>}, {pipeline_mode = #tpu.pipeline_mode<synchronous>, transform_indices = @transform_1, window_bounds = array<i64: 2048, 128>}, {pipeline_mode = #tpu.pipeline_mode<synchronous>, transform_indices = @transform_2, window_bounds = array<i64: 1, 128>}, {pipeline_mode = #tpu.pipeline_mode<synchronous>, transform_indices = @transform_3, window_bounds = array<i64: 1, 128>}, {pipeline_mode = #tpu.pipeline_mode<synchronous>, transform_indices = @transform_4, window_bounds = array<i64: 128, 128>}, {pipeline_mode = #tpu.pipeline_mode<synchronous>, transform_indices = @transform_5, window_bounds = array<i64: 1, 128>}, {transform_indices = @transform_6, window_bounds = array<i64: 8, 128>}]} {
    %c0 = arith.constant 0 : index
    %c0_0 = arith.constant 0 : index
    %0 = vector.load %arg1[%c0, %c0_0] : memref<8x4096xbf16, #tpu.memory_space<vmem>>, vector<8x4096xbf16>
    %1 = arith.extf %0 : vector<8x4096xbf16> to vector<8x4096xf32>
    %2 = vector.extract_strided_slice %1 {offsets = [0, 0], sizes = [8, 128], strides = [1, 1]} : vector<8x4096xf32> to vector<8x128xf32>
    %3 = vector.extract_strided_slice %1 {offsets = [0, 128], sizes = [8, 128], strides = [1, 1]} : vector<8x4096xf32> to vector<8x128xf32>
    %4 = arith.maximumf %2, %3 : vector<8x128xf32>
    %5 = vector.extract_strided_slice %1 {offsets = [0, 256], sizes = [8, 128], strides = [1, 1]} : vector<8x4096xf32> to vector<8x128xf32>
    %6 = vector.extract_strided_slice %1 {offsets = [0, 384], sizes = [8, 128], strides = [1, 1]} : vector<8x4096xf32> to vector<8x128xf32>
    %7 = arith.maximumf %5, %6 : vector<8x128xf32>
    %8 = vector.extract_strided_slice %1 {offsets = [0, 512], sizes = [8, 128], strides = [1, 1]} : vector<8x4096xf32> to vector<8x128xf32>
    %9 = vector.extract_strided_slice %1 {offsets = [0, 640], sizes = [8, 128], strides = [1, 1]} : vector<8x4096xf32> to vector<8x128xf32>
    %10 = arith.maximumf %8, %9 : vector<8x128xf32>
    %11 = vector.extract_strided_slice %1 {offsets = [0, 768], sizes = [8, 128], strides = [1, 1]} : vector<8x4096xf32> to vector<8x128xf32>
    %12 = vector.extract_strided_slice %1 {offsets = [0, 896], sizes = [8, 128], strides = [1, 1]} : vector<8x4096xf32> to vector<8x128xf32>
    %13 = arith.maximumf %11, %12 : vector<8x128xf32>
    %14 = vector.extract_strided_slice %1 {offsets = [0, 1024], sizes = [8, 128], strides = [1, 1]} : vector<8x4096xf32> to vector<8x128xf32>
    %15 = vector.extract_strided_slice %1 {offsets = [0, 1152], sizes = [8, 128], strides = [1, 1]} : vector<8x4096xf32> to vector<8x128xf32>
    %16 = arith.maximumf %14, %15 : vector<8x128xf32>
    %17 = vector.extract_strided_slice %1 {offsets = [0, 1280], sizes = [8, 128], strides = [1, 1]} : vector<8x4096xf32> to vector<8x128xf32>
    %18 = vector.extract_strided_slice %1 {offsets = [0, 1408], sizes = [8, 128], strides = [1, 1]} : vector<8x4096xf32> to vector<8x128xf32>
    %19 = arith.maximumf %17, %18 : vector<8x128xf32>
    %20 = vector.extract_strided_slice %1 {offsets = [0, 1536], sizes = [8, 128], strides = [1, 1]} : vector<8x4096xf32> to vector<8x128xf32>
    %21 = vector.extract_strided_slice %1 {offsets = [0, 1664], sizes = [8, 128], strides = [1, 1]} : vector<8x4096xf32> to vector<8x128xf32>
    %22 = arith.maximumf %20, %21 : vector<8x128xf32>
    %23 = vector.extract_strided_slice %1 {offsets = [0, 1792], sizes = [8, 128], strides = [1, 1]} : vector<8x4096xf32> to vector<8x128xf32>
    %24 = vector.extract_strided_slice %1 {offsets = [0, 1920], sizes = [8, 128], strides = [1, 1]} : vector<8x4096xf32> to vector<8x128xf32>
    %25 = arith.maximumf %23, %24 : vector<8x128xf32>
    %26 = vector.extract_strided_slice %1 {offsets = [0, 2048], sizes = [8, 128], strides = [1, 1]} : vector<8x4096xf32> to vector<8x128xf32>
    %27 = vector.extract_strided_slice %1 {offsets = [0, 2176], sizes = [8, 128], strides = [1, 1]} : vector<8x4096xf32> to vector<8x128xf32>
    %28 = arith.maximumf %26, %27 : vector<8x128xf32>
    %29 = vector.extract_strided_slice %1 {offsets = [0, 2304], sizes = [8, 128], strides = [1, 1]} : vector<8x4096xf32> to vector<8x128xf32>
    %30 = vector.extract_strided_slice %1 {offsets = [0, 2432], sizes = [8, 128], strides = [1, 1]} : vector<8x4096xf32> to vector<8x128xf32>
    %31 = arith.maximumf %29, %30 : vector<8x128xf32>
    %32 = vector.extract_strided_slice %1 {offsets = [0, 2560], sizes = [8, 128], strides = [1, 1]} : vector<8x4096xf32> to vector<8x128xf32>
    %33 = vector.extract_strided_slice %1 {offsets = [0, 2688], sizes = [8, 128], strides = [1, 1]} : vector<8x4096xf32> to vector<8x128xf32>
    %34 = arith.maximumf %32, %33 : vector<8x128xf32>
    %35 = vector.extract_strided_slice %1 {offsets = [0, 2816], sizes = [8, 128], strides = [1, 1]} : vector<8x4096xf32> to vector<8x128xf32>
    %36 = vector.extract_strided_slice %1 {offsets = [0, 2944], sizes = [8, 128], strides = [1, 1]} : vector<8x4096xf32> to vector<8x128xf32>
    %37 = arith.maximumf %35, %36 : vector<8x128xf32>
    %38 = vector.extract_strided_slice %1 {offsets = [0, 3072], sizes = [8, 128], strides = [1, 1]} : vector<8x4096xf32> to vector<8x128xf32>
    %39 = vector.extract_strided_slice %1 {offsets = [0, 3200], sizes = [8, 128], strides = [1, 1]} : vector<8x4096xf32> to vector<8x128xf32>
    %40 = arith.maximumf %38, %39 : vector<8x128xf32>
    %41 = vector.extract_strided_slice %1 {offsets = [0, 3328], sizes = [8, 128], strides = [1, 1]} : vector<8x4096xf32> to vector<8x128xf32>
    %42 = vector.extract_strided_slice %1 {offsets = [0, 3456], sizes = [8, 128], strides = [1, 1]} : vector<8x4096xf32> to vector<8x128xf32>
    %43 = arith.maximumf %41, %42 : vector<8x128xf32>
    %44 = vector.extract_strided_slice %1 {offsets = [0, 3584], sizes = [8, 128], strides = [1, 1]} : vector<8x4096xf32> to vector<8x128xf32>
    %45 = vector.extract_strided_slice %1 {offsets = [0, 3712], sizes = [8, 128], strides = [1, 1]} : vector<8x4096xf32> to vector<8x128xf32>
    %46 = arith.maximumf %44, %45 : vector<8x128xf32>
    %47 = vector.extract_strided_slice %1 {offsets = [0, 3840], sizes = [8, 128], strides = [1, 1]} : vector<8x4096xf32> to vector<8x128xf32>
    %48 = vector.extract_strided_slice %1 {offsets = [0, 3968], sizes = [8, 128], strides = [1, 1]} : vector<8x4096xf32> to vector<8x128xf32>
    %49 = arith.maximumf %47, %48 : vector<8x128xf32>
    %50 = tpu.concatenate %4, %7, %10, %13, %16, %19, %22, %25, %28, %31, %34, %37, %40, %43, %46, %49 in 1 : vector<8x128xf32>, vector<8x128xf32>, vector<8x128xf32>, vector<8x128xf32>, vector<8x128xf32>, vector<8x128xf32>, vector<8x128xf32>, vector<8x128xf32>, vector<8x128xf32>, vector<8x128xf32>, vector<8x128xf32>, vector<8x128xf32>, vector<8x128xf32>, vector<8x128xf32>, vector<8x128xf32>, vector<8x128xf32> -> vector<8x2048xf32>
    %51 = arith.truncf %50 : vector<8x2048xf32> to vector<8x2048xbf16>
    %c0_1 = arith.constant 0 : index
    %c0_2 = arith.constant 0 : index
    %52 = vector.load %arg2[%c0_1, %c0_2] : memref<2048x128xbf16, #tpu.memory_space<vmem>>, vector<2048x128xbf16>
    %cst = arith.constant dense<0.000000e+00> : vector<8x128xf32>
    %53 = tpu.matmul %51, %52, %cst {dimension_numbers = #tpu.dot_dimension_numbers<[1], [0], [0], [1], [0, 0, 1, 1], [], []>} : vector<8x2048xbf16>, vector<2048x128xbf16>, vector<8x128xf32> -> vector<8x128xf32>
    %c0_3 = arith.constant 0 : index
    %c0_4 = arith.constant 0 : index
    %54 = vector.load %arg3[%c0_3, %c0_4] : memref<1x128xf32, #tpu.memory_space<vmem>>, vector<1x128xf32>
    %55 = vector.broadcast %54 : vector<1x128xf32> to vector<8x128xf32>
    %56 = arith.mulf %53, %55 : vector<8x128xf32>
    %c0_5 = arith.constant 0 : index
    %c0_6 = arith.constant 0 : index
    %57 = vector.load %arg4[%c0_5, %c0_6] : memref<1x128xf32, #tpu.memory_space<vmem>>, vector<1x128xf32>
    %58 = vector.broadcast %57 : vector<1x128xf32> to vector<8x128xf32>
    %59 = arith.addf %56, %58 : vector<8x128xf32>
    %cst_7 = arith.constant 0.000000e+00 : f32
    %60 = vector.broadcast %cst_7 : f32 to vector<8x128xf32>
    %61 = arith.maximumf %59, %60 : vector<8x128xf32>
    %62 = arith.truncf %61 : vector<8x128xf32> to vector<8x128xbf16>
    %c0_8 = arith.constant 0 : index
    %c0_9 = arith.constant 0 : index
    %63 = vector.load %arg5[%c0_8, %c0_9] : memref<128x128xbf16, #tpu.memory_space<vmem>>, vector<128x128xbf16>
    %cst_10 = arith.constant dense<0.000000e+00> : vector<8x128xf32>
    %64 = tpu.matmul %62, %63, %cst_10 {dimension_numbers = #tpu.dot_dimension_numbers<[1], [0], [0], [1], [0, 0, 1, 1], [], []>} : vector<8x128xbf16>, vector<128x128xbf16>, vector<8x128xf32> -> vector<8x128xf32>
    %c0_11 = arith.constant 0 : index
    %c0_12 = arith.constant 0 : index
    %65 = vector.load %arg6[%c0_11, %c0_12] : memref<1x128xf32, #tpu.memory_space<vmem>>, vector<1x128xf32>
    %66 = vector.broadcast %65 : vector<1x128xf32> to vector<8x128xf32>
    %67 = arith.addf %64, %66 : vector<8x128xf32>
    %c0_13 = arith.constant 0 : index
    %c0_14 = arith.constant 0 : index
    %68 = vector.load %arg7[%c0_13, %c0_14] : memref<8x128xf32, #tpu.memory_space<vmem>>, vector<8x128xf32>
    tpu.vector_store %arg7[%c0_13, %c0_14], %67 {strides = array<i32>} : memref<8x128xf32, #tpu.memory_space<vmem>>, vector<8x128xf32>,
    return
  }
  func.func @transform_0(%arg0: i32) -> (i32, i32) {
    %c0_i32 = arith.constant 0 : i32
    %c0_i32_0 = arith.constant 0 : i32
    return %arg0, %c0_i32 : i32, i32
  }
  func.func @transform_1(%arg0: i32) -> (i32, i32) {
    %c0_i32 = arith.constant 0 : i32
    %c0_i32_0 = arith.constant 0 : i32
    %c0_i32_1 = arith.constant 0 : i32
    return %c0_i32, %c0_i32_0 : i32, i32
  }
  func.func @transform_2(%arg0: i32) -> (i32, i32) {
    %c0_i32 = arith.constant 0 : i32
    %c0_i32_0 = arith.constant 0 : i32
    %c0_i32_1 = arith.constant 0 : i32
    return %c0_i32, %c0_i32_0 : i32, i32
  }
  func.func @transform_3(%arg0: i32) -> (i32, i32) {
    %c0_i32 = arith.constant 0 : i32
    %c0_i32_0 = arith.constant 0 : i32
    %c0_i32_1 = arith.constant 0 : i32
    return %c0_i32, %c0_i32_0 : i32, i32
  }
  func.func @transform_4(%arg0: i32) -> (i32, i32) {
    %c0_i32 = arith.constant 0 : i32
    %c0_i32_0 = arith.constant 0 : i32
    %c0_i32_1 = arith.constant 0 : i32
    return %c0_i32, %c0_i32_0 : i32, i32
  }
  func.func @transform_5(%arg0: i32) -> (i32, i32) {
    %c0_i32 = arith.constant 0 : i32
    %c0_i32_0 = arith.constant 0 : i32
    %c0_i32_1 = arith.constant 0 : i32
    return %c0_i32, %c0_i32_0 : i32, i32
  }
  func.func @transform_6(%arg0: i32) -> (i32, i32) {
    %c0_i32 = arith.constant 0 : i32
    %c0_i32_0 = arith.constant 0 : i32
    return %arg0, %c0_i32 : i32, i32
  }
}

</mosaic_0001>

<bundles_post_ra>
// kernel: dann_forward.3
= control target key start
LH: loop header
LB: loop body
LE: loop exit
PB: predicated region body
PF: predicated region fallthrough
CT: control target
= control target key end

     0   :  { %vm2065_vm0 = vmmov 0   ;;  %s2569_s1 = inlined_call_operand.vmem [shape: bf16[2048,128], index: 1, kind: input, shape index: {}]   ;;  %s2570_s0 = inlined_call_operand.vmem [shape: bf16[8,4096], index: 0, kind: input, shape index: {}]   ;;  %s2571_s4 = inlined_call_operand.vmem [shape: bf16[128,128], index: 4, kind: input, shape index: {}]   ;;  %s2572_s2 = inlined_call_operand.vmem [shape: f32[1,128], index: 2, kind: input, shape index: {}]   ;;  %s2573_s3 = inlined_call_operand.vmem [shape: f32[1,128], index: 3, kind: input, shape index: {}]   ;;  %s2574_s5 = inlined_call_operand.vmem [shape: f32[1,128], index: 5, kind: input, shape index: {}]   ;;  %s2575_s6 = inlined_call_operand.vmem [shape: f32[8,128], index: 6, kind: output, shape index: {}]  }
   0x1   :  { %v1928_v0 = vld [vmem:[%s2569_s1 + $0x40] sm:$0xff]   ;;  %v1932_v4 = vld [vmem:[%s2569_s1 + $0x48] sm:$0xff]   ;;  %v1936_v8 = vld [vmem:[%s2569_s1 + $0x50] sm:$0xff]  }
   0x2   :  { %v1929_v1 = vld [vmem:[%s2569_s1 + $0xc0] sm:$0xff]   ;;  %1721 = vmatprep.subr.bf16.mxu0 %v1928_v0  ;;  %v1933_v5 = vld [vmem:[%s2569_s1 + $0xc8] sm:$0xff]   ;;  %v1937_v9 = vld [vmem:[%s2569_s1 + $0xd0] sm:$0xff]  }
   0x3   :  { %v1930_v2 = vld [vmem:[%s2569_s1] sm:$0xff]   ;;  %1743 = vmatprep.subr.bf16.mxu1 %v1929_v1  ;;  %v1934_v6 = vld [vmem:[%s2569_s1 + $0x8] sm:$0xff]   ;;  %v1938_v10 = vld [vmem:[%s2569_s1 + $0x10] sm:$0xff]  }
   0x4   :  { %v1931_v3 = vld [vmem:[%s2569_s1 + $0x80] sm:$0xff]   ;;  %1722 = vmatpush3.bf16.msra.mxu0 %v1930_v2  ;;  %v1935_v7 = vld [vmem:[%s2569_s1 + $0x88] sm:$0xff]   ;;  %v1939_v11 = vld [vmem:[%s2569_s1 + $0x90] sm:$0xff]  }
   0x5   :  { %1744 = vmatpush3.bf16.msra.mxu1 %v1931_v3  ;;  %1723 = vmatprep.subr.bf16.mxu0 %v1932_v4  ;;  %v1940_v12 = vld [vmem:[%s2569_s1 + $0x58] sm:$0xff]   ;;  %v1944_v16 = vld [vmem:[%s2569_s1 + $0x60] sm:$0xff]   ;;  %v1948_v20 = vld [vmem:[%s2569_s1 + $0x68] sm:$0xff]  }
   0x6   :  { %1745 = vmatprep.subr.bf16.mxu1 %v1933_v5  ;;  %v1941_v13 = vld [vmem:[%s2569_s1 + $0xd8] sm:$0xff]   ;;  %v1945_v17 = vld [vmem:[%s2569_s1 + $0xe0] sm:$0xff]   ;;  %v1949_v21 = vld [vmem:[%s2569_s1 + $0xe8] sm:$0xff]  }
   0x7   :  { %v1942_v14 = vld [vmem:[%s2569_s1 + $0x18] sm:$0xff]   ;;  %v1946_v18 = vld [vmem:[%s2569_s1 + $0x20] sm:$0xff]   ;;  %v1950_v22 = vld [vmem:[%s2569_s1 + $0x28] sm:$0xff]  }
   0x8   :  { %1724 = vmatpush3.bf16.msra.mxu0 %v1934_v6  ;;  %v1943_v15 = vld [vmem:[%s2569_s1 + $0x98] sm:$0xff]   ;;  %v1947_v19 = vld [vmem:[%s2569_s1 + $0xa0] sm:$0xff]   ;;  %v1951_v23 = vld [vmem:[%s2569_s1 + $0xa8] sm:$0xff]  }
   0x9   :  { %1746 = vmatpush3.bf16.msra.mxu1 %v1935_v7  ;;  %1725 = vmatprep.subr.bf16.mxu0 %v1936_v8  ;;  %v1952_v24 = vld [vmem:[%s2569_s1 + $0x70] sm:$0xff]   ;;  %v1956_v28 = vld [vmem:[%s2569_s1 + $0x78] sm:$0xff]   ;;  %v25_v32 = vld [vmem:[%s2570_s0 + $0x8] sm:$0xff] }
   0xa   :  { %1747 = vmatprep.subr.bf16.mxu1 %v1937_v9  ;;  %v1953_v25 = vld [vmem:[%s2569_s1 + $0xf0] sm:$0xff]   ;;  %v1957_v29 = vld [vmem:[%s2569_s1 + $0xf8] sm:$0xff]   ;;  %v24_v34 = vld [vmem:[%s2570_s0] sm:$0xff]  ;;  %v42_v35 = vunpack.c.l.bf16 %v25_v32  ;;  %v43_v36 = vunpack.c.h.bf16 %v25_v32 }
   0xb   :  { %v1954_v26 = vld [vmem:[%s2569_s1 + $0x30] sm:$0xff]   ;;  %v1958_v30 = vld [vmem:[%s2569_s1 + $0x38] sm:$0xff]   ;;  %v40_v40 = vunpack.c.l.bf16 %v24_v34  ;;  %v41_v41 = vunpack.c.h.bf16 %v24_v34  ;;  %v1960_v44 = vld [vmem:[%s2569_s1 + $0x140] sm:$0xff]  }
   0xc   :  { %1726 = vmatpush3.bf16.msra.mxu0 %v1938_v10  ;;  %v1955_v27 = vld [vmem:[%s2569_s1 + $0xb0] sm:$0xff]   ;;  %v1959_v31 = vld [vmem:[%s2569_s1 + $0xb8] sm:$0xff]   ;;  %v73_v45 = vmax.f32 %v42_v35, %v43_v36  ;;  %v1961_v47 = vld [vmem:[%s2569_s1 + $0x1c0] sm:$0xff]  }
   0xd   :  { %1748 = vmatpush3.bf16.msra.mxu1 %v1939_v11  ;;  %1727 = vmatprep.subr.bf16.mxu0 %v1940_v12  ;;  %v27_v33 = vld [vmem:[%s2570_s0 + $0x18] sm:$0xff]  ;;  %v26_v39 = vld [vmem:[%s2570_s0 + $0x10] sm:$0xff]  ;;  %v72_v48 = vmax.f32 %v40_v40, %v41_v41  ;;  %v1962_v50 = vld [vmem:[%s2569_s1 + $0x100] sm:$0xff]  }
   0xe   :  { %1749 = vmatprep.subr.bf16.mxu1 %v1941_v13  ;;  %v46_v37 = vunpack.c.l.bf16 %v27_v33  ;;  %v47_v38 = vunpack.c.h.bf16 %v27_v33  ;;  %v44_v42 = vunpack.c.l.bf16 %v26_v39  ;;  %v45_v43 = vunpack.c.h.bf16 %v26_v39  ;;  %v1963_v53 = vld [vmem:[%s2569_s1 + $0x180] sm:$0xff]   ;;  %v1964_v56 = vld [vmem:[%s2569_s1 + $0x148] sm:$0xff]   ;;  %v1968_v60 = vld [vmem:[%s2569_s1 + $0x150] sm:$0xff]  }
   0xf   :  { %v89_v51 = vpack.c.bf16 %v73_v45, %v73_v45  ;;  %v88_v54 = vpack.c.bf16 %v72_v48, %v72_v48  ;;  %v1965_v57 = vld [vmem:[%s2569_s1 + $0x1c8] sm:$0xff]   ;;  %v1969_v61 = vld [vmem:[%s2569_s1 + $0x1d0] sm:$0xff]   ;;  %v1972_v0 = vld [vmem:[%s2569_s1 + $0x158] sm:$0xff]  }
  0x10   :  { %1728 = vmatpush3.bf16.msra.mxu0 %v1942_v14  ;;  %v75_v46 = vmax.f32 %v46_v37, %v47_v38  ;;  %v74_v49 = vmax.f32 %v44_v42, %v45_v43  ;;  %v1966_v58 = vld [vmem:[%s2569_s1 + $0x108] sm:$0xff]   ;;  %v1970_v62 = vld [vmem:[%s2569_s1 + $0x110] sm:$0xff]   ;;  %v1973_v1 = vld [vmem:[%s2569_s1 + $0x1d8] sm:$0xff]  }
  0x11   :  { %1750 = vmatpush3.bf16.msra.mxu1 %v1943_v15  ;;  %1729 = vmatprep.subr.bf16.mxu0 %v1944_v16  ;;  %v1967_v59 = vld [vmem:[%s2569_s1 + $0x188] sm:$0xff]   ;;  %v1971_v63 = vld [vmem:[%s2569_s1 + $0x190] sm:$0xff]   ;;  %v1974_v2 = vld [vmem:[%s2569_s1 + $0x118] sm:$0xff]  }
  0x12   :  { %1751 = vmatprep.subr.bf16.mxu1 %v1945_v17  ;;  %v91_v52 = vpack.c.bf16 %v75_v46, %v75_v46  ;;  %v90_v55 = vpack.c.bf16 %v74_v49, %v74_v49  ;;  %1160 = vmatprep.mubr.bf16.mxu0 %v89_v51  ;;  %v1975_v3 = vld [vmem:[%s2569_s1 + $0x198] sm:$0xff]   ;;  %v1976_v4 = vld [vmem:[%s2569_s1 + $0x160] sm:$0xff]   ;;  %v1980_v8 = vld [vmem:[%s2569_s1 + $0x168] sm:$0xff]  }
  0x13   :  { %v1977_v5 = vld [vmem:[%s2569_s1 + $0x1e0] sm:$0xff]   ;;  %v1981_v9 = vld [vmem:[%s2569_s1 + $0x1e8] sm:$0xff]   ;;  %v1984_v12 = vld [vmem:[%s2569_s1 + $0x170] sm:$0xff]  }
  0x14   :  { %1730 = vmatpush3.bf16.msra.mxu0 %v1946_v18  ;;  %1200 = vmatprep.mubr.bf16.mxu1 %v91_v52  ;;  %v1978_v6 = vld [vmem:[%s2569_s1 + $0x120] sm:$0xff]   ;;  %v1982_v10 = vld [vmem:[%s2569_s1 + $0x128] sm:$0xff]   ;;  %v1985_v13 = vld [vmem:[%s2569_s1 + $0x1f0] sm:$0xff]  }
  0x15   :  { %1752 = vmatpush3.bf16.msra.mxu1 %v1947_v19  ;;  %1731 = vmatprep.subr.bf16.mxu0 %v1948_v20  ;;  %v1979_v7 = vld [vmem:[%s2569_s1 + $0x1a0] sm:$0xff]   ;;  %v1983_v11 = vld [vmem:[%s2569_s1 + $0x1a8] sm:$0xff]   ;;  %v1986_v14 = vld [vmem:[%s2569_s1 + $0x130] sm:$0xff]  }
  0x16   :  { %1753 = vmatprep.subr.bf16.mxu1 %v1949_v21  ;;  %v1987_v15 = vld [vmem:[%s2569_s1 + $0x1b0] sm:$0xff]   ;;  %v1988_v16 = vld [vmem:[%s2569_s1 + $0x178] sm:$0xff]   ;;  %v29_v20 = vld [vmem:[%s2570_s0 + $0x28] sm:$0xff] }
  0x17   :  { %v1989_v17 = vld [vmem:[%s2569_s1 + $0x1f8] sm:$0xff]   ;;  %v1992_v32 = vld [vmem:[%s2569_s1 + $0x240] sm:$0xff]   ;;  %v1997_v45 = vld [vmem:[%s2569_s1 + $0x2c8] sm:$0xff]  }
  0x18   :  { %1732 = vmatpush3.bf16.msra.mxu0 %v1950_v22  ;;  %v1990_v18 = vld [vmem:[%s2569_s1 + $0x138] sm:$0xff]   ;;  %v50_v22 = vunpack.c.l.bf16 %v29_v20  ;;  %v1993_v35 = vld [vmem:[%s2569_s1 + $0x2c0] sm:$0xff]   ;;  %v1998_v46 = vld [vmem:[%s2569_s1 + $0x208] sm:$0xff]  }
  0x19   :  { %1754 = vmatpush3.bf16.msra.mxu1 %v1951_v23  ;;  %1733 = vmatprep.subr.bf16.mxu0 %v1952_v24  ;;  %v1991_v19 = vld [vmem:[%s2569_s1 + $0x1b8] sm:$0xff]   ;;  %v51_v23 = vunpack.c.h.bf16 %v29_v20  ;;  %v1994_v38 = vld [vmem:[%s2569_s1 + $0x200] sm:$0xff]   ;;  %v2000_v48 = vld [vmem:[%s2569_s1 + $0x250] sm:$0xff]  }
  0x1a   :  { %1755 = vmatprep.subr.bf16.mxu1 %v1953_v25  ;;  %v31_v21 = vld [vmem:[%s2570_s0 + $0x38] sm:$0xff]  ;;  %v1995_v41 = vld [vmem:[%s2569_s1 + $0x280] sm:$0xff]   ;;  %v2001_v49 = vld [vmem:[%s2569_s1 + $0x2d0] sm:$0xff]  }
  0x1b   :  { %v54_v24 = vunpack.c.l.bf16 %v31_v21  ;;  %v55_v25 = vunpack.c.h.bf16 %v31_v21  ;;  %v77_v33 = vmax.f32 %v50_v22, %v51_v23  ;;  %v2003_v51 = vld [vmem:[%s2569_s1 + $0x290] sm:$0xff]   ;;  %v2004_v52 = vld [vmem:[%s2569_s1 + $0x258] sm:$0xff]   ;;  %v2025_v22 = vld [vmem:[%s2569_s1 + $0x3c0] sm:$0xff]  }
  0x1c   :  { %1734 = vmatpush3.bf16.msra.mxu0 %v1954_v26  ;;  %v28_v26 = vld [vmem:[%s2570_s0 + $0x20] sm:$0xff] }
  0x1d   :  { %1756 = vmatpush3.bf16.msra.mxu1 %v1955_v27  ;;  %1735 = vmatprep.subr.bf16.mxu0 %v1956_v28  ;;  %v30_v27 = vld [vmem:[%s2570_s0 + $0x30] sm:$0xff]  ;;  %v48_v28 = vunpack.c.l.bf16 %v28_v26  ;;  %v79_v34 = vmax.f32 %v54_v24, %v55_v25  ;;  %v93_v39 = vpack.c.bf16 %v77_v33, %v77_v33  ;;  %v2026_v25 = vld [vmem:[%s2569_s1 + $0x300] sm:$0xff]   ;;  %v2029_v33 = vld [vmem:[%s2569_s1 + $0x3c8] sm:$0xff]  }
  0x1e   :  { %1757 = vmatprep.subr.bf16.mxu1 %v1957_v29  ;;  %v49_v29 = vunpack.c.h.bf16 %v28_v26 }
  0x1f   :  { %v95_v40 = vpack.c.bf16 %v79_v34, %v79_v34  ;;  %v2030_v34 = vld [vmem:[%s2569_s1 + $0x308] sm:$0xff]  }
  0x20   :  { %1736 = vmatpush3.bf16.msra.mxu0 %v1958_v30  ;;  %v52_v30 = vunpack.c.l.bf16 %v30_v27  ;;  %v76_v36 = vmax.f32 %v48_v28, %v49_v29  ;;  %v2027_v28 = vld [vmem:[%s2569_s1 + $0x380] sm:$0xff]  }
  0x21   :  { %1758 = vmatpush3.bf16.msra.mxu1 %v1959_v31  ;;  %1765 = vmatprep.subr.bf16.mxu0 %v1960_v44  ;;  %v53_v31 = vunpack.c.h.bf16 %v30_v27  ;;  %v1996_v44 = vld [vmem:[%s2569_s1 + $0x248] sm:$0xff]  }
  0x22   :  { %1787 = vmatprep.subr.bf16.mxu1 %v1961_v47  ;;  %v92_v42 = vpack.c.bf16 %v76_v36, %v76_v36  ;;  %v1999_v47 = vld [vmem:[%s2569_s1 + $0x288] sm:$0xff]   ;;  %v2032_v36 = vld [vmem:[%s2569_s1 + $0x350] sm:$0xff]  }
  0x23   :  { %1161 = vmatmul.mubr.bf16.vlgmr.msra.gmra.mrb[0].mxu0 %v88_v54  ;;  %v78_v37 = vmax.f32 %v52_v30, %v53_v31  ;;  %v2006_v54 = vld [vmem:[%s2569_s1 + $0x218] sm:$0xff]   ;;  %v2028_v31 = vld [vmem:[%s2569_s1 + $0x348] sm:$0xff]  }
  0x24   :  { %1201 = vmatmul.mubr.bf16.vlgmr.msra.gmra.mrb[0].mxu1 %v90_v55  ;;  %1766 = vmatpush3.bf16.msra.mxu0 %v1962_v50  ;;  %v2002_v50 = vld [vmem:[%s2569_s1 + $0x210] sm:$0xff]   ;;  %v2007_v55 = vld [vmem:[%s2569_s1 + $0x298] sm:$0xff]  }
  0x25   :  { %1788 = vmatpush3.bf16.msra.mxu1 %v1963_v53  ;;  %1767 = vmatprep.subr.bf16.mxu0 %v1964_v56  ;;  %v94_v43 = vpack.c.bf16 %v78_v37, %v78_v37  ;;  %v2005_v53 = vld [vmem:[%s2569_s1 + $0x2d8] sm:$0xff]   ;;  %v2008_v56 = vld [vmem:[%s2569_s1 + $0x260] sm:$0xff]   ;;  %v2033_v37 = vld [vmem:[%s2569_s1 + $0x3d0] sm:$0xff]  }
  0x26   :  { %1789 = vmatprep.subr.bf16.mxu1 %v1965_v57  ;;  %1240 = vmatprep.mubr.bf16.mxu0 %v93_v39  ;;  %v2009_v57 = vld [vmem:[%s2569_s1 + $0x2e0] sm:$0xff]   ;;  %v2035_v39 = vld [vmem:[%s2569_s1 + $0x390] sm:$0xff]  }
  0x27   :  { %1280 = vmatprep.mubr.bf16.mxu1 %v95_v40  ;;  %v2036_v40 = vld [vmem:[%s2569_s1 + $0x358] sm:$0xff]  }
  0x28   :  { %1768 = vmatpush3.bf16.msra.mxu0 %v1966_v58  ;;  %v2010_v58 = vld [vmem:[%s2569_s1 + $0x220] sm:$0xff]  }
  0x29   :  { %1790 = vmatpush3.bf16.msra.mxu1 %v1967_v59  ;;  %1769 = vmatprep.subr.bf16.mxu0 %v1968_v60  ;;  %v2011_v59 = vld [vmem:[%s2569_s1 + $0x2a0] sm:$0xff]   ;;  %v2012_v60 = vld [vmem:[%s2569_s1 + $0x268] sm:$0xff]  }
  0x2a   :  { %1791 = vmatprep.subr.bf16.mxu1 %v1969_v61  ;;  %v2013_v61 = vld [vmem:[%s2569_s1 + $0x2e8] sm:$0xff]  }
  0x2c   :  { %1770 = vmatpush3.bf16.msra.mxu0 %v1970_v62  ;;  %v2014_v62 = vld [vmem:[%s2569_s1 + $0x228] sm:$0xff]  }
  0x2d   :  { %1792 = vmatpush3.bf16.msra.mxu1 %v1971_v63  ;;  %1771 = vmatprep.subr.bf16.mxu0 %v1972_v0  ;;  %v2015_v63 = vld [vmem:[%s2569_s1 + $0x2a8] sm:$0xff]   ;;  %v2016_v0 = vld [vmem:[%s2569_s1 + $0x270] sm:$0xff]  }
  0x2e   :  { %1793 = vmatprep.subr.bf16.mxu1 %v1973_v1  ;;  %v2017_v1 = vld [vmem:[%s2569_s1 + $0x2f0] sm:$0xff]  }
  0x30   :  { %1772 = vmatpush3.bf16.msra.mxu0 %v1974_v2  ;;  %v2018_v2 = vld [vmem:[%s2569_s1 + $0x230] sm:$0xff]  }
  0x31   :  { %1794 = vmatpush3.bf16.msra.mxu1 %v1975_v3  ;;  %1773 = vmatprep.subr.bf16.mxu0 %v1976_v4  ;;  %v2019_v3 = vld [vmem:[%s2569_s1 + $0x2b0] sm:$0xff]   ;;  %v2020_v4 = vld [vmem:[%s2569_s1 + $0x278] sm:$0xff]  }
  0x32   :  { %1795 = vmatprep.subr.bf16.mxu1 %v1977_v5  ;;  %v2021_v5 = vld [vmem:[%s2569_s1 + $0x2f8] sm:$0xff]  }
  0x34   :  { %1774 = vmatpush3.bf16.msra.mxu0 %v1978_v6  ;;  %v2022_v6 = vld [vmem:[%s2569_s1 + $0x238] sm:$0xff]  }
  0x35   :  { %1796 = vmatpush3.bf16.msra.mxu1 %v1979_v7  ;;  %1775 = vmatprep.subr.bf16.mxu0 %v1980_v8  ;;  %v2023_v7 = vld [vmem:[%s2569_s1 + $0x2b8] sm:$0xff]   ;;  %v33_v8 = vld [vmem:[%s2570_s0 + $0x48] sm:$0xff] }
  0x36   :  { %1797 = vmatprep.subr.bf16.mxu1 %v1981_v9  ;;  %v58_v9 = vunpack.c.l.bf16 %v33_v8 }
  0x38   :  { %1776 = vmatpush3.bf16.msra.mxu0 %v1982_v10  ;;  %v59_v10 = vunpack.c.h.bf16 %v33_v8 }
  0x39   :  { %1798 = vmatpush3.bf16.msra.mxu1 %v1983_v11  ;;  %1777 = vmatprep.subr.bf16.mxu0 %v1984_v12  ;;  %v35_v11 = vld [vmem:[%s2570_s0 + $0x58] sm:$0xff]  ;;  %v32_v12 = vld [vmem:[%s2570_s0 + $0x40] sm:$0xff] }
  0x3a   :  { %1799 = vmatprep.subr.bf16.mxu1 %v1985_v13  ;;  %v34_v13 = vld [vmem:[%s2570_s0 + $0x50] sm:$0xff] }
  0x3b   :  { %v60_v20 = vunpack.c.l.bf16 %v34_v13  ;;  %v61_v21 = vunpack.c.h.bf16 %v34_v13 }
  0x3c   :  { %1778 = vmatpush3.bf16.msra.mxu0 %v1986_v14  ;;  %v62_v14 = vunpack.c.l.bf16 %v35_v11 }
  0x3d   :  { %1800 = vmatpush3.bf16.msra.mxu1 %v1987_v15  ;;  %1779 = vmatprep.subr.bf16.mxu0 %v1988_v16  ;;  %v63_v15 = vunpack.c.h.bf16 %v35_v11  ;;  %v56_v16 = vunpack.c.l.bf16 %v32_v12  ;;  %v82_v27 = vmax.f32 %v60_v20, %v61_v21  ;;  %v2059_v20 = vld [vmem:[%s2571_s4 + $0x18] sm:$0xff]   ;;  %v2060_v21 = vld [vmem:[%s2571_s4 + $0x20] sm:$0xff]  }
  0x3e   :  { %1801 = vmatprep.subr.bf16.mxu1 %v1989_v17  ;;  %v57_v17 = vunpack.c.h.bf16 %v32_v12 }
  0x3f   :  { %v83_v23 = vmax.f32 %v62_v14, %v63_v15 }
  0x40   :  { %1780 = vmatpush3.bf16.msra.mxu0 %v1990_v18  ;;  %v2024_v18 = vld [vmem:[%s2569_s1 + $0x340] sm:$0xff]   ;;  %v80_v24 = vmax.f32 %v56_v16, %v57_v17  ;;  %v2064_v16 = vmov 0.0  }
  0x41   :  { %1802 = vmatpush3.bf16.msra.mxu1 %v1991_v19  ;;  %1809 = vmatprep.subr.bf16.mxu0 %v1992_v32  ;;  %v81_v19 = vmax.f32 %v58_v9, %v59_v10  ;;  %v99_v29 = vpack.c.bf16 %v83_v23, %v83_v23  ;;  %v98_v32 = vpack.c.bf16 %v82_v27, %v82_v27  ;;  %v2056_v17 = vld [vmem:[%s2571_s4] sm:$0xff]   ;;  %v2062_v23 = vld [vmem:[%s2571_s4 + $0x30] sm:$0xff]  }
  0x42   :  { %1831 = vmatprep.subr.bf16.mxu1 %v1993_v35  ;;  %v96_v30 = vpack.c.bf16 %v80_v24, %v80_v24  ;;  %v2031_v35 = vld [vmem:[%s2569_s1 + $0x388] sm:$0xff]   ;;  %v2063_v24 = vld [vmem:[%s2571_s4 + $0x38] sm:$0xff]  }
  0x43   :  { %1241 = vmatmul.mubr.bf16.vlgmr.msra.gmra.mrb[4].mxu0 %v92_v42  ;;  %v97_v26 = vpack.c.bf16 %v81_v19, %v81_v19  ;;  %v2038_v42 = vld [vmem:[%s2569_s1 + $0x318] sm:$0xff]   ;;  %v2058_v19 = vld [vmem:[%s2571_s4 + $0x10] sm:$0xff]  }
  0x44   :  { %1281 = vmatmul.mubr.bf16.vlgmr.msra.gmra.mrb[4].mxu1 %v94_v43  ;;  %1810 = vmatpush3.bf16.msra.mxu0 %v1994_v38  ;;  %v2034_v38 = vld [vmem:[%s2569_s1 + $0x310] sm:$0xff]   ;;  %v2039_v43 = vld [vmem:[%s2569_s1 + $0x398] sm:$0xff]  }
  0x45   :  { %1832 = vmatpush3.bf16.msra.mxu1 %v1995_v41  ;;  %1811 = vmatprep.subr.bf16.mxu0 %v1996_v44  ;;  %v2037_v41 = vld [vmem:[%s2569_s1 + $0x3d8] sm:$0xff]   ;;  %v2040_v44 = vld [vmem:[%s2569_s1 + $0x360] sm:$0xff]  }
  0x46   :  { %1833 = vmatprep.subr.bf16.mxu1 %v1997_v45  ;;  %1320 = vmatprep.mubr.bf16.mxu0 %v97_v26  ;;  %v2041_v45 = vld [vmem:[%s2569_s1 + $0x3e0] sm:$0xff]  }
  0x47   :  { %1360 = vmatprep.mubr.bf16.mxu1 %v99_v29 }
  0x48   :  { %1812 = vmatpush3.bf16.msra.mxu0 %v1998_v46  ;;  %v2042_v46 = vld [vmem:[%s2569_s1 + $0x320] sm:$0xff]  }
  0x49   :  { %1834 = vmatpush3.bf16.msra.mxu1 %v1999_v47  ;;  %1813 = vmatprep.subr.bf16.mxu0 %v2000_v48  ;;  %v2043_v47 = vld [vmem:[%s2569_s1 + $0x3a0] sm:$0xff]   ;;  %v2044_v48 = vld [vmem:[%s2569_s1 + $0x368] sm:$0xff]  }
  0x4a   :  { %1835 = vmatprep.subr.bf16.mxu1 %v2001_v49  ;;  %v2045_v49 = vld [vmem:[%s2569_s1 + $0x3e8] sm:$0xff]  }
  0x4c   :  { %1814 = vmatpush3.bf16.msra.mxu0 %v2002_v50  ;;  %v2046_v50 = vld [vmem:[%s2569_s1 + $0x328] sm:$0xff]  }
  0x4d   :  { %1836 = vmatpush3.bf16.msra.mxu1 %v2003_v51  ;;  %1815 = vmatprep.subr.bf16.mxu0 %v2004_v52  ;;  %v2047_v51 = vld [vmem:[%s2569_s1 + $0x3a8] sm:$0xff]   ;;  %v2048_v52 = vld [vmem:[%s2569_s1 + $0x370] sm:$0xff]  }
  0x4e   :  { %1837 = vmatprep.subr.bf16.mxu1 %v2005_v53  ;;  %v2049_v53 = vld [vmem:[%s2569_s1 + $0x3f0] sm:$0xff]  }
  0x50   :  { %1816 = vmatpush3.bf16.msra.mxu0 %v2006_v54  ;;  %v2050_v54 = vld [vmem:[%s2569_s1 + $0x330] sm:$0xff]  }
  0x51   :  { %1838 = vmatpush3.bf16.msra.mxu1 %v2007_v55  ;;  %1817 = vmatprep.subr.bf16.mxu0 %v2008_v56  ;;  %v2051_v55 = vld [vmem:[%s2569_s1 + $0x3b0] sm:$0xff]   ;;  %v2052_v56 = vld [vmem:[%s2569_s1 + $0x378] sm:$0xff]  }
  0x52   :  { %1839 = vmatprep.subr.bf16.mxu1 %v2009_v57  ;;  %v2053_v57 = vld [vmem:[%s2569_s1 + $0x3f8] sm:$0xff]  }
  0x54   :  { %1818 = vmatpush3.bf16.msra.mxu0 %v2010_v58  ;;  %v2054_v58 = vld [vmem:[%s2569_s1 + $0x338] sm:$0xff]  }
  0x55   :  { %1840 = vmatpush3.bf16.msra.mxu1 %v2011_v59  ;;  %1819 = vmatprep.subr.bf16.mxu0 %v2012_v60  ;;  %v2055_v59 = vld [vmem:[%s2569_s1 + $0x3b8] sm:$0xff]   ;;  %v37_v60 = vld [vmem:[%s2570_s0 + $0x68] sm:$0xff] }
  0x56   :  { %1841 = vmatprep.subr.bf16.mxu1 %v2013_v61  ;;  %v39_v61 = vld [vmem:[%s2570_s0 + $0x78] sm:$0xff] }
  0x58   :  { %1820 = vmatpush3.bf16.msra.mxu0 %v2014_v62  ;;  %v36_v62 = vld [vmem:[%s2570_s0 + $0x60] sm:$0xff] }
  0x59   :  { %1842 = vmatpush3.bf16.msra.mxu1 %v2015_v63  ;;  %1821 = vmatprep.subr.bf16.mxu0 %v2016_v0  ;;  %v66_v63 = vunpack.c.l.bf16 %v37_v60  ;;  %v67_v0 = vunpack.c.h.bf16 %v37_v60 }
  0x5a   :  { %1843 = vmatprep.subr.bf16.mxu1 %v2017_v1  ;;  %v70_v1 = vunpack.c.l.bf16 %v39_v61 }
  0x5b   :  { %v85_v8 = vmax.f32 %v66_v63, %v67_v0 }
  0x5c   :  { %1822 = vmatpush3.bf16.msra.mxu0 %v2018_v2  ;;  %v71_v2 = vunpack.c.h.bf16 %v39_v61 }
  0x5d   :  { %1844 = vmatpush3.bf16.msra.mxu1 %v2019_v3  ;;  %1823 = vmatprep.subr.bf16.mxu0 %v2020_v4  ;;  %v38_v3 = vld [vmem:[%s2570_s0 + $0x70] sm:$0xff]  ;;  %v64_v4 = vunpack.c.l.bf16 %v36_v62  ;;  %v101_v12 = vpack.c.bf16 %v85_v8, %v85_v8 }
  0x5e   :  { %1845 = vmatprep.subr.bf16.mxu1 %v2021_v5  ;;  %v65_v5 = vunpack.c.h.bf16 %v36_v62  ;;  %v87_v9 = vmax.f32 %v70_v1, %v71_v2 }
  0x60   :  { %1824 = vmatpush3.bf16.msra.mxu0 %v2022_v6  ;;  %v68_v6 = vunpack.c.l.bf16 %v38_v3  ;;  %v84_v10 = vmax.f32 %v64_v4, %v65_v5  ;;  %v103_v13 = vpack.c.bf16 %v87_v9, %v87_v9  ;;  %v1711_v9 = vld [vmem:[%s2573_s3] ss:$0 sm:$0xff] }
  0x61   :  { %1846 = vmatpush3.bf16.msra.mxu1 %v2023_v7  ;;  %1853 = vmatprep.subr.bf16.mxu0 %v2024_v18  ;;  %v69_v7 = vunpack.c.h.bf16 %v38_v3  ;;  %v2057_v18 = vld [vmem:[%s2571_s4 + $0x8] sm:$0xff]  }
  0x62   :  { %1875 = vmatprep.subr.bf16.mxu1 %v2025_v22  ;;  %v100_v14 = vpack.c.bf16 %v84_v10, %v84_v10  ;;  %v2061_v22 = vld [vmem:[%s2571_s4 + $0x28] sm:$0xff]  }
  0x63   :  { %1321 = vmatmul.mubr.bf16.vlgmr.msra.gmra.mrb[8].mxu0 %v96_v30  ;;  %v86_v11 = vmax.f32 %v68_v6, %v69_v7  ;;  %v1710_v7 = vld [vmem:[%s2572_s2] ss:$0 sm:$0xff] }
  0x64   :  { %1361 = vmatmul.mubr.bf16.vlgmr.msra.gmra.mrb[8].mxu1 %v98_v32  ;;  %1854 = vmatpush3.bf16.msra.mxu0 %v2026_v25 }
  0x65   :  { %1876 = vmatpush3.bf16.msra.mxu1 %v2027_v28  ;;  %1855 = vmatprep.subr.bf16.mxu0 %v2028_v31  ;;  %v102_v15 = vpack.c.bf16 %v86_v11, %v86_v11 }
  0x66   :  { %1877 = vmatprep.subr.bf16.mxu1 %v2029_v33  ;;  %1400 = vmatprep.mubr.bf16.mxu0 %v101_v12 }
  0x67   :  { %1440 = vmatprep.mubr.bf16.mxu1 %v103_v13 }
  0x68   :  { %1856 = vmatpush3.bf16.msra.mxu0 %v2030_v34 }
  0x69   :  { %1878 = vmatpush3.bf16.msra.mxu1 %v2031_v35  ;;  %1857 = vmatprep.subr.bf16.mxu0 %v2032_v36 }
  0x6a   :  { %1879 = vmatprep.subr.bf16.mxu1 %v2033_v37 }
  0x6c   :  { %1858 = vmatpush3.bf16.msra.mxu0 %v2034_v38 }
  0x6d   :  { %1880 = vmatpush3.bf16.msra.mxu1 %v2035_v39  ;;  %1859 = vmatprep.subr.bf16.mxu0 %v2036_v40 }
  0x6e   :  { %1881 = vmatprep.subr.bf16.mxu1 %v2037_v41 }
  0x70   :  { %1860 = vmatpush3.bf16.msra.mxu0 %v2038_v42 }
  0x71   :  { %1882 = vmatpush3.bf16.msra.mxu1 %v2039_v43  ;;  %1861 = vmatprep.subr.bf16.mxu0 %v2040_v44 }
  0x72   :  { %1883 = vmatprep.subr.bf16.mxu1 %v2041_v45 }
  0x74   :  { %1862 = vmatpush3.bf16.msra.mxu0 %v2042_v46 }
  0x75   :  { %1884 = vmatpush3.bf16.msra.mxu1 %v2043_v47  ;;  %1863 = vmatprep.subr.bf16.mxu0 %v2044_v48 }
  0x76   :  { %1885 = vmatprep.subr.bf16.mxu1 %v2045_v49 }
  0x78   :  { %1864 = vmatpush3.bf16.msra.mxu0 %v2046_v50 }
  0x79   :  { %1886 = vmatpush3.bf16.msra.mxu1 %v2047_v51  ;;  %1865 = vmatprep.subr.bf16.mxu0 %v2048_v52 }
  0x7a   :  { %1887 = vmatprep.subr.bf16.mxu1 %v2049_v53 }
  0x7c   :  { %1866 = vmatpush3.bf16.msra.mxu0 %v2050_v54 }
  0x7d   :  { %1888 = vmatpush3.bf16.msra.mxu1 %v2051_v55  ;;  %1867 = vmatprep.subr.bf16.mxu0 %v2052_v56 }
  0x7e   :  { %1889 = vmatprep.subr.bf16.mxu1 %v2053_v57 }
  0x80   :  { %1868 = vmatpush3.bf16.msra.mxu0 %v2054_v58 }
  0x81   :  { %1890 = vmatpush3.bf16.msra.mxu1 %v2055_v59  ;;  %1906 = vmatprep.subr.bf16.mxu0 %v2064_v16 }
  0x83   :  { %1401 = vmatmul.mubr.bf16.vlgmr.msra.gmra.mrb[12].mxu0 %v100_v14  ;;  %v1712_v14 = vld [vmem:[%s2574_s5] ss:$0 sm:$0xff] }
  0x84   :  { %1441 = vmatmul.mubr.bf16.vlgmr.msra.gmra.mrb[12].mxu1 %v102_v15  ;;  %1907 = vmatpush3.bf16.msra.mxu0 %v2056_v17 }
  0x85   :  { %1908 = vmatprep.subr.bf16.mxu0 %v2064_v16  ;;  %1922 = vmatprep.mubr.msk.bf16.mxu0 %vm2065_vm0, %v2064_v16 }
  0x88   :  { %1909 = vmatpush3.bf16.msra.mxu0 %v2057_v18 }
  0x89   :  { %1910 = vmatprep.subr.bf16.mxu0 %v2064_v16 }
  0x8c   :  { %1911 = vmatpush3.bf16.msra.mxu0 %v2058_v19 }
  0x8d   :  { %1912 = vmatprep.subr.bf16.mxu0 %v2064_v16 }
  0x90   :  { %1913 = vmatpush3.bf16.msra.mxu0 %v2059_v20 }
  0x91   :  { %1914 = vmatprep.subr.bf16.mxu0 %v2064_v16 }
  0x94   :  { %1915 = vmatpush3.bf16.msra.mxu0 %v2060_v21 }
  0x95   :  { %1916 = vmatprep.subr.bf16.mxu0 %v2064_v16 }
  0x98   :  { %1917 = vmatpush3.bf16.msra.mxu0 %v2061_v22 }
  0x99   :  { %1918 = vmatprep.subr.bf16.mxu0 %v2064_v16 }
  0x9c   :  { %1919 = vmatpush3.bf16.msra.mxu0 %v2062_v23 }
  0x9d   :  { %1920 = vmatprep.subr.bf16.mxu0 %v2064_v16 }
  0xa0   :  { %1921 = vmatpush3.bf16.msra.mxu0 %v2063_v24 }
  0xf6   :  { %v1737_v25 = vpop.f32.mrb[0].mxu0 }
  0xf7   :  { %v1759_v26 = vpop.f32.mrb[0].mxu1  ;;  %v1738_v27 = vpop.f32.mrb[1].mxu0 }
  0xf8   :  { %v1760_v28 = vpop.f32.mrb[1].mxu1  ;;  %v1739_v29 = vadd.f32 %v1738_v27, %v1737_v25  ;;  %v1740_v31 = vpop.f32.mrb[2].mxu0 }
  0xf9   :  { %v1761_v30 = vadd.f32 %v1760_v28, %v1759_v26  ;;  %v1762_v32 = vpop.f32.mrb[2].mxu1  ;;  %v1741_v33 = vpop.f32.mrb[3].mxu0 }
  0xfa   :  { %v1763_v34 = vpop.f32.mrb[3].mxu1 }
  0xfb   :  { %v1203_v35 = vadd.f32 %v1761_v30, %v1739_v29 }
 0x116   :  { %v1781_v36 = vpop.f32.mrb[4].mxu0 }
 0x117   :  { %v1803_v37 = vpop.f32.mrb[4].mxu1  ;;  %v1782_v38 = vpop.f32.mrb[5].mxu0 }
 0x118   :  { %v1804_v39 = vpop.f32.mrb[5].mxu1  ;;  %v1783_v40 = vadd.f32 %v1782_v38, %v1781_v36  ;;  %v1784_v42 = vpop.f32.mrb[6].mxu0 }
 0x119   :  { %v1805_v41 = vadd.f32 %v1804_v39, %v1803_v37  ;;  %v1806_v43 = vpop.f32.mrb[6].mxu1  ;;  %v1785_v44 = vpop.f32.mrb[7].mxu0 }
 0x11a   :  { %v1807_v45 = vpop.f32.mrb[7].mxu1  ;;  %v1243_v46 = vadd.f32 %v1783_v40, %v1203_v35 }
 0x11c   :  { %v1283_v47 = vadd.f32 %v1805_v41, %v1243_v46 }
 0x136   :  { %v1825_v48 = vpop.f32.mrb[8].mxu0 }
 0x137   :  { %v1847_v49 = vpop.f32.mrb[8].mxu1  ;;  %v1826_v50 = vpop.f32.mrb[9].mxu0 }
 0x138   :  { %v1827_v51 = vadd.f32 %v1826_v50, %v1825_v48  ;;  %v1848_v52 = vpop.f32.mrb[9].mxu1  ;;  %v1828_v53 = vpop.f32.mrb[10].mxu0 }
 0x139   :  { %v1849_v54 = vadd.f32 %v1848_v52, %v1847_v49  ;;  %v1850_v55 = vpop.f32.mrb[10].mxu1  ;;  %v1829_v56 = vpop.f32.mrb[11].mxu0 }
 0x13a   :  { %v1323_v57 = vadd.f32 %v1827_v51, %v1283_v47  ;;  %v1851_v58 = vpop.f32.mrb[11].mxu1 }
 0x13c   :  { %v1363_v59 = vadd.f32 %v1849_v54, %v1323_v57 }
 0x156   :  { %v1869_v60 = vpop.f32.mrb[12].mxu0 }
 0x157   :  { %v1891_v61 = vpop.f32.mrb[12].mxu1  ;;  %v1870_v62 = vpop.f32.mrb[13].mxu0 }
 0x158   :  { %v1892_v63 = vpop.f32.mrb[13].mxu1  ;;  %v1871_v0 = vadd.f32 %v1870_v62, %v1869_v60  ;;  %v1872_v2 = vpop.f32.mrb[14].mxu0 }
 0x159   :  { %v1893_v1 = vadd.f32 %v1892_v63, %v1891_v61  ;;  %v1894_v3 = vpop.f32.mrb[14].mxu1  ;;  %v1873_v4 = vpop.f32.mrb[15].mxu0 }
 0x15a   :  { %v1895_v5 = vpop.f32.mrb[15].mxu1  ;;  %v1403_v6 = vadd.f32 %v1871_v0, %v1363_v59 }
 0x15c   :  { %v1443_v8 = vadd.f32 %v1893_v1, %v1403_v6 }
 0x15e   :  { %v1455_v10 = vmul.f32 %v1710_v7, %v1443_v8 }
 0x160   :  { %v1463_v11 = vadd.f32 %v1711_v9, %v1455_v10 }
 0x162   :  { %v1464_v12 = vmax.f32 %v1463_v11, 0.0 }
 0x164   :  { %v1465_v13 = vpack.c.bf16 %v1464_v12, %v1464_v12 }
 0x166   :  { %1923 = vmatmul.mubr.bf16.vlgmr.msra.gmra.mrb[16].mxu0 %v1465_v13 }
 0x239   :  { %v1571_v15 = vpop.f32.mrb[16].mxu0 }
 0x23a   :  { %v1572_v16 = vadd.f32 %v1712_v14, %v1571_v15  ;;  %v1924_v17 = vpop.f32.mrb[17].mxu0 }
 0x23b   :  { %v1574_v18 = vpop.f32.mrb[18].mxu0 }
 0x23c   :  { %1577 = vst [vmem:[%s2575_s6] sm:$0xff] %v1572_v16  ;;  %v1925_v19 = vpop.f32.mrb[19].mxu0 }

// kernel: dann_forward.2
= control target key start
LH: loop header
LB: loop body
LE: loop exit
PB: predicated region body
PF: predicated region fallthrough
CT: control target
= control target key end

     0   :  { %s7108_s24 = smov 0   ;;  %s8422_s0 = inlined_call_operand.vmem [shape: bf16[2,576,128], index: 0, kind: input, shape index: {}]   ;;  %s8423_s1 = inlined_call_operand.vmem [shape: bf16[128,128], index: 1, kind: input, shape index: {}]   ;;  %s8424_s2 = inlined_call_operand.vmem [shape: f32[1,128], index: 2, kind: input, shape index: {}]   ;;  %s8425_s3 = inlined_call_operand.vmem [shape: f32[1,128], index: 3, kind: input, shape index: {}]   ;;  %s8426_s4 = inlined_call_operand.vmem [shape: bf16[25,128,128], index: 4, kind: input, shape index: {}]   ;;  %s8427_s5 = inlined_call_operand.vmem [shape: f32[1,128], index: 5, kind: input, shape index: {}]   ;;  %s8428_s6 = inlined_call_operand.vmem [shape: f32[1,128], index: 6, kind: input, shape index: {}]   ;;  %s8429_s7 = inlined_call_operand.vmem [shape: bf16[2,32,128], index: 7, kind: output, shape index: {}]  }
   0x1 LB: > { %s4920_s25 = sadd.s32 4294967295, %s7066_s24   ;;  %p4924_p0 = scmp.ge.s32.totalorder %s7066_s24, 1  ;;  %s7066_s24 = sphi %s7108_s24, %s17_s24  }
   0x2   : > { %p237_p1 = scmp.lt.s32.totalorder %s7066_s24, 3 }
   0x4   : > { %p238_p2 = pnand %p4924_p0, %p237_p1 }
   0x5   : > { %v6815_v0 = vld [vmem:[%s8423_s1] sm:$0xff] (!%p238_p2)   ;;  %p269_p3 = scmp.lt.s32.totalorder (!%p238_p2), %s4920_s25, 1  ;;  %v6816_v1 = vld [vmem:[%s8423_s1 + $0x8] sm:$0xff] (!%p238_p2)   ;;  %v6817_v2 = vld [vmem:[%s8423_s1 + $0x10] sm:$0xff] (!%p238_p2)  }
   0x6   : > { %241 = sbr.rel (%p238_p2) target bundleno = 1079 (0x437), region = 48  ;;  %5926 = vmatprep.subr.bf16.mxu0 (!%p238_p2), %v6815_v0  ;;  %v6818_v3 = vld [vmem:[%s8423_s1 + $0x18] sm:$0xff] (!%p238_p2)   ;;  %v6819_v5 = vld [vmem:[%s8423_s1 + $0x20] sm:$0xff] (!%p238_p2)   ;;  %v6820_v6 = vld [vmem:[%s8423_s1 + $0x28] sm:$0xff] (!%p238_p2)  }
   0x7   : > { %5927 = vmatpush3.bf16.msra.mxu0 (!%p238_p2), %v6815_v0  ;;  %v6821_v7 = vld [vmem:[%s8423_s1 + $0x30] sm:$0xff] (!%p238_p2)   ;;  %v6822_v8 = vld [vmem:[%s8423_s1 + $0x38] sm:$0xff] (!%p238_p2)   ;;  %v6859_v44 = vld [vmem:[%s8426_s4 + $0x40] sm:$0xff] (!%p238_p2)  }
   0x8   : > { %5928 = vmatprep.subr.bf16.mxu0 (!%p238_p2), %v6816_v1  ;;  %v6860_v45 = vld [vmem:[%s8426_s4 + $0x48] sm:$0xff] (!%p238_p2)   ;;  %v6861_v46 = vld [vmem:[%s8426_s4 + $0x50] sm:$0xff] (!%p238_p2)   ;;  %v6862_v47 = vld [vmem:[%s8426_s4 + $0x280] sm:$0xff] (!%p238_p2)  }
   0x9   : > { %6254 = vmatprep.subr.bf16.mxu1 (!%p238_p2), %v6862_v47  ;;  %v6863_v48 = vld [vmem:[%s8426_s4 + $0x58] sm:$0xff] (!%p238_p2)   ;;  %v6864_v49 = vld [vmem:[%s8426_s4 + $0x288] sm:$0xff] (!%p238_p2)   ;;  %v6865_v50 = vld [vmem:[%s8426_s4 + $0x60] sm:$0xff] (!%p238_p2)  }
   0xa   : > { %6255 = vmatpush3.bf16.msra.mxu1 (!%p238_p2), %v6862_v47  ;;  %v6866_v51 = vld [vmem:[%s8426_s4 + $0x290] sm:$0xff] (!%p238_p2)   ;;  %v6867_v52 = vld [vmem:[%s8426_s4 + $0x68] sm:$0xff] (!%p238_p2)   ;;  %v6868_v53 = vld [vmem:[%s8426_s4 + $0x298] sm:$0xff] (!%p238_p2)  }
   0xb   : > { %5929 = vmatpush3.bf16.msra.mxu0 (!%p238_p2), %v6816_v1  ;;  %6256 = vmatprep.subr.bf16.mxu1 (!%p238_p2), %v6864_v49  ;;  %v6869_v54 = vld [vmem:[%s8426_s4 + $0x70] sm:$0xff] (!%p238_p2)   ;;  %v6870_v55 = vld [vmem:[%s8426_s4 + $0x2a0] sm:$0xff] (!%p238_p2)   ;;  %v6871_v58 = vld [vmem:[%s8426_s4 + $0x78] sm:$0xff] (!%p238_p2)  }
   0xc   : > { %5930 = vmatprep.subr.bf16.mxu0 (!%p238_p2), %v6817_v2  ;;  %v6872_v59 = vld [vmem:[%s8426_s4 + $0x2a8] sm:$0xff] (!%p238_p2)   ;;  %v7229_v62 = vld [vmem:[%s8426_s4] sm:$0xff] (!%p238_p2)   ;;  %v6874_v63 = vld [vmem:[%s8426_s4 + $0x2b0] sm:$0xff] (!%p238_p2)  }
   0xd   : > { %s8432_s25 = smov (!%p269_p3, %s4920_s25), 1 }
   0xe   : > { %s6806_s9 = smul.u32 288, %s8432_s25  ;;  %6257 = vmatpush3.bf16.msra.mxu1 %v6864_v49  ;;  %s5566_s11 = sshll.u32 %s8432_s25, 4 }
   0xf   : > { %5931 = vmatpush3.bf16.msra.mxu0 %v6817_v2  ;;  %6258 = vmatprep.subr.bf16.mxu1 %v6866_v51  ;;  %s278_s14 = scalar_lea.vmem %s8429_s7, %s5566_s11 }
  0x10   : > { %s7131_s12 = scalar_lea.vmem %s8422_s0, %s6806_s9  ;;  %5932 = vmatprep.subr.bf16.mxu0 %v6818_v3 }
  0x11   : > { %v6823_v4 = vld [vmem:[%s7131_s12] sm:$0xff]   ;;  %v6824_v9 = vld [vmem:[%s7131_s12 + $0x8] sm:$0xff]   ;;  %v6825_v10 = vld [vmem:[%s7131_s12 + $0x10] sm:$0xff]  }
  0x12   : > { %5942 = vmatprep.mubr.bf16.mxu0 %v6823_v4  ;;  %v6826_v11 = vld [vmem:[%s7131_s12 + $0x18] sm:$0xff]   ;;  %v6827_v12 = vld [vmem:[%s7131_s12 + $0x20] sm:$0xff]   ;;  %v6828_v13 = vld [vmem:[%s7131_s12 + $0x28] sm:$0xff]   ;;  %6259 = vmatpush3.bf16.msra.mxu1 %v6866_v51 }
  0x13   : > { %5933 = vmatpush3.bf16.msra.mxu0 %v6818_v3  ;;  %v6829_v14 = vld [vmem:[%s7131_s12 + $0x30] sm:$0xff]   ;;  %v6830_v15 = vld [vmem:[%s7131_s12 + $0x38] sm:$0xff]   ;;  %v6831_v16 = vld [vmem:[%s7131_s12 + $0x40] sm:$0xff]   ;;  %6260 = vmatprep.subr.bf16.mxu1 %v6868_v53 }
  0x14   : > { %5934 = vmatprep.subr.bf16.mxu0 %v6819_v5  ;;  %v6832_v17 = vld [vmem:[%s7131_s12 + $0x48] sm:$0xff]   ;;  %v6833_v18 = vld [vmem:[%s7131_s12 + $0x50] sm:$0xff]   ;;  %v6834_v19 = vld [vmem:[%s7131_s12 + $0x58] sm:$0xff]  }
  0x15   : > { %v6835_v20 = vld [vmem:[%s7131_s12 + $0x60] sm:$0xff]   ;;  %v6836_v21 = vld [vmem:[%s7131_s12 + $0x68] sm:$0xff]   ;;  %v6837_v22 = vld [vmem:[%s7131_s12 + $0x70] sm:$0xff]  }
  0x16   : > { %v6838_v23 = vld [vmem:[%s7131_s12 + $0x78] sm:$0xff]   ;;  %v6839_v24 = vld [vmem:[%s7131_s12 + $0x80] sm:$0xff]   ;;  %v6840_v25 = vld [vmem:[%s7131_s12 + $0x88] sm:$0xff]   ;;  %6261 = vmatpush3.bf16.msra.mxu1 %v6868_v53 }
  0x17   : > { %5935 = vmatpush3.bf16.msra.mxu0 %v6819_v5  ;;  %v6841_v26 = vld [vmem:[%s7131_s12 + $0x90] sm:$0xff]   ;;  %v6842_v27 = vld [vmem:[%s7131_s12 + $0x98] sm:$0xff]   ;;  %v6843_v28 = vld [vmem:[%s7131_s12 + $0xa0] sm:$0xff]   ;;  %6262 = vmatprep.subr.bf16.mxu1 %v6870_v55 }
  0x18   : > { %5936 = vmatprep.subr.bf16.mxu0 %v6820_v6  ;;  %v6844_v29 = vld [vmem:[%s7131_s12 + $0xa8] sm:$0xff]   ;;  %v6845_v30 = vld [vmem:[%s7131_s12 + $0xb0] sm:$0xff]   ;;  %v6846_v31 = vld [vmem:[%s7131_s12 + $0xb8] sm:$0xff]  }
  0x19   : > { %v6847_v32 = vld [vmem:[%s7131_s12 + $0xc0] sm:$0xff]   ;;  %v6848_v33 = vld [vmem:[%s7131_s12 + $0xc8] sm:$0xff]   ;;  %v6849_v34 = vld [vmem:[%s7131_s12 + $0xd0] sm:$0xff]  }
  0x1a   : > { %v6850_v35 = vld [vmem:[%s7131_s12 + $0xd8] sm:$0xff]   ;;  %v6851_v36 = vld [vmem:[%s7131_s12 + $0xe0] sm:$0xff]   ;;  %v6852_v37 = vld [vmem:[%s7131_s12 + $0xe8] sm:$0xff]   ;;  %6263 = vmatpush3.bf16.msra.mxu1 %v6870_v55 }
  0x1b   : > { %5937 = vmatpush3.bf16.msra.mxu0 %v6820_v6  ;;  %v6853_v38 = vld [vmem:[%s7131_s12 + $0xf0] sm:$0xff]   ;;  %v6854_v39 = vld [vmem:[%s7131_s12 + $0xf8] sm:$0xff]   ;;  %v6855_v40 = vld [vmem:[%s7131_s12 + $0x100] sm:$0xff]   ;;  %6264 = vmatprep.subr.bf16.mxu1 %v6872_v59 }
  0x1c   : > { %5938 = vmatprep.subr.bf16.mxu0 %v6821_v7  ;;  %v6856_v41 = vld [vmem:[%s7131_s12 + $0x108] sm:$0xff]   ;;  %v6857_v42 = vld [vmem:[%s7131_s12 + $0x110] sm:$0xff]   ;;  %v6858_v43 = vld [vmem:[%s7131_s12 + $0x118] sm:$0xff]  }
  0x1d   : > { %v6876_v3 = vld [vmem:[%s8426_s4 + $0x2b8] sm:$0xff]   ;;  %v7243_v5 = vld [vmem:[%s8426_s4 + $0x2c0] sm:$0xff]  }
  0x1e   : > { %6265 = vmatpush3.bf16.msra.mxu1 %v6872_v59 }
  0x1f   : > { %5939 = vmatpush3.bf16.msra.mxu0 %v6821_v7  ;;  %6266 = vmatprep.subr.bf16.mxu1 %v6874_v63 }
  0x20   : > { %5940 = vmatprep.subr.bf16.mxu0 %v6822_v8 }
  0x22   : > { %6267 = vmatpush3.bf16.msra.mxu1 %v6874_v63 }
  0x23   : > { %5941 = vmatpush3.bf16.msra.mxu0 %v6822_v8  ;;  %6268 = vmatprep.subr.bf16.mxu1 %v6876_v3 }
  0x24   : > { %6014 = vmatprep.subr.bf16.mxu0 %v6859_v44 }
  0x26   : > { %5943 = vmatmul.mubr.bf16.vlgmr.msra.gmra.mrb[0].mxu0 %v6824_v9  ;;  %6269 = vmatpush3.bf16.msra.mxu1 %v6876_v3 }
  0x27   : > { %5946 = vmatprep.mubr.bf16.mxu0 %v6825_v10  ;;  %6015 = vmatpush3.bf16.msra.mxu0 %v6859_v44 }
  0x28   : > { %6016 = vmatprep.subr.bf16.mxu0 %v6860_v45  ;;  %6278 = vmatprep.subr.bf16.mxu1 %v7243_v5 }
  0x2b   : > { %6017 = vmatpush3.bf16.msra.mxu0 %v6860_v45 }
  0x2c   : > { %6018 = vmatprep.subr.bf16.mxu0 %v6861_v46 }
  0x2e   : > { %5947 = vmatmul.mubr.bf16.gmra.mrb[4].mxu0 %v6826_v11 }
  0x2f   : > { %5950 = vmatprep.mubr.bf16.mxu0 %v6827_v12  ;;  %6019 = vmatpush3.bf16.msra.mxu0 %v6861_v46  ;;  %v7257_v12 = vld [vmem:[%s8424_s2] ss:$0 sm:$0xff] }
  0x30   : > { %6020 = vmatprep.subr.bf16.mxu0 %v6863_v48 }
  0x33   : > { %6021 = vmatpush3.bf16.msra.mxu0 %v6863_v48 }
  0x34   : > { %6022 = vmatprep.subr.bf16.mxu0 %v6865_v50 }
  0x36   : > { %5951 = vmatmul.mubr.bf16.gmra.mrb[8].mxu0 %v6828_v13 }
  0x37   : > { %5954 = vmatprep.mubr.bf16.mxu0 %v6829_v14  ;;  %6023 = vmatpush3.bf16.msra.mxu0 %v6865_v50 }
  0x38   : > { %6024 = vmatprep.subr.bf16.mxu0 %v6867_v52 }
  0x3b   : > { %6025 = vmatpush3.bf16.msra.mxu0 %v6867_v52 }
  0x3c   : > { %6026 = vmatprep.subr.bf16.mxu0 %v6869_v54 }
  0x3e   : > { %5955 = vmatmul.mubr.bf16.gmra.mrb[12].mxu0 %v6830_v15 }
  0x3f   : > { %5958 = vmatprep.mubr.bf16.mxu0 %v6831_v16  ;;  %6027 = vmatpush3.bf16.msra.mxu0 %v6869_v54  ;;  %v7267_v16 = vld [vmem:[%s8425_s3] ss:$0 sm:$0xff] }
  0x40   : > { %6028 = vmatprep.subr.bf16.mxu0 %v6871_v58 }
  0x43   : > { %6029 = vmatpush3.bf16.msra.mxu0 %v6871_v58 }
  0x44   : > { %6038 = vmatprep.subr.bf16.mxu0 %v7229_v62 }
  0x46   : > { %5959 = vmatmul.mubr.bf16.gmra.mrb[16].mxu0 %v6832_v17 }
  0x47   : > { %5962 = vmatprep.mubr.bf16.mxu0 %v6833_v18 }
  0x4e   : > { %5963 = vmatmul.mubr.bf16.gmra.mrb[20].mxu0 %v6834_v19 }
  0x4f   : > { %5966 = vmatprep.mubr.bf16.mxu0 %v6835_v20 }
  0x56   : > { %5967 = vmatmul.mubr.bf16.gmra.mrb[24].mxu0 %v6836_v21 }
  0x57   : > { %5970 = vmatprep.mubr.bf16.mxu0 %v6837_v22 }
  0x5e   : > { %5971 = vmatmul.mubr.bf16.gmra.mrb[28].mxu0 %v6838_v23 }
  0x5f   : > { %5974 = vmatprep.mubr.bf16.mxu0 %v6839_v24 }
  0x66   : > { %5975 = vmatmul.mubr.bf16.gmra.mrb[32].mxu0 %v6840_v25 }
  0x67   : > { %5978 = vmatprep.mubr.bf16.mxu0 %v6841_v26 }
  0x6e   : > { %5979 = vmatmul.mubr.bf16.gmra.mrb[36].mxu0 %v6842_v27 }
  0x6f   : > { %5982 = vmatprep.mubr.bf16.mxu0 %v6843_v28 }
  0x76   : > { %5983 = vmatmul.mubr.bf16.gmra.mrb[40].mxu0 %v6844_v29 }
  0x77   : > { %5986 = vmatprep.mubr.bf16.mxu0 %v6845_v30 }
  0x7e   : > { %5987 = vmatmul.mubr.bf16.gmra.mrb[44].mxu0 %v6846_v31 }
  0x7f   : > { %5990 = vmatprep.mubr.bf16.mxu0 %v6847_v32 }
  0x86   : > { %5991 = vmatmul.mubr.bf16.gmra.mrb[48].mxu0 %v6848_v33 }
  0x87   : > { %5994 = vmatprep.mubr.bf16.mxu0 %v6849_v34 }
  0x8e   : > { %5995 = vmatmul.mubr.bf16.gmra.mrb[52].mxu0 %v6850_v35 }
  0x8f   : > { %5998 = vmatprep.mubr.bf16.mxu0 %v6851_v36 }
  0x96   : > { %5999 = vmatmul.mubr.bf16.gmra.mrb[56].mxu0 %v6852_v37 }
  0x97   : > { %6002 = vmatprep.mubr.bf16.mxu0 %v6853_v38 }
  0x9e   : > { %6003 = vmatmul.mubr.bf16.gmra.mrb[60].mxu0 %v6854_v39 }
  0x9f   : > { %6006 = vmatprep.mubr.bf16.mxu0 %v6855_v40 }
  0xa6   : > { %6007 = vmatmul.mubr.bf16.gmra.mrb[64].mxu0 %v6856_v41 }
  0xa7   : > { %6010 = vmatprep.mubr.bf16.mxu0 %v6857_v42 }
  0xae   : > { %6011 = vmatmul.mubr.bf16.gmra.mrb[68].mxu0 %v6858_v43 }
  0xf9   : > { %v5944_v56 = vpop.f32.mrb[0].mxu0 }
  0xfa   : > { %v666_v57 = vpop.f32.mrb[1].mxu0  ;;  %v962_v31 = vmul.f32 %v5944_v56, %v7257_v12 }
  0xfb   : > { %v5945_v60 = vpop.f32.mrb[2].mxu0  ;;  %v960_v15 = vmul.f32 %v7257_v12, %v666_v57 }
  0xfc   : > { %v669_v61 = vpop.f32.mrb[3].mxu0  ;;  %v963_v36 = vmul.f32 %v5945_v60, %v7257_v12  ;;  %v1041_v42 = vadd.f32 %v7267_v16, %v962_v31 }
  0xfd   : > { %v961_v17 = vmul.f32 %v7257_v12, %v669_v61  ;;  %v1039_v19 = vadd.f32 %v7267_v16, %v960_v15 }
  0xfe   : > { %v1042_v49 = vadd.f32 %v7267_v16, %v963_v36  ;;  %v1113_v56 = vmax.f32 %v1041_v42, 0.0 }
  0xff   : > { %v1040_v23 = vadd.f32 %v7267_v16, %v961_v17  ;;  %v1111_v27 = vmax.f32 %v1039_v19, 0.0 }
 0x100   : > { %v1114_v3 = vmax.f32 %v1042_v49, 0.0 }
 0x101   : > { %v5948_v0 = vpop.f32.mrb[4].mxu0  ;;  %v1112_v32 = vmax.f32 %v1040_v23, 0.0 }
 0x102   : > { %v682_v1 = vpop.f32.mrb[5].mxu0  ;;  %v966_v57 = vmul.f32 %v5948_v0, %v7257_v12 }
 0x103   : > { %v7235_v2 = vpop.f32.mrb[6].mxu0  ;;  %v964_v28 = vmul.f32 %v7257_v12, %v682_v1 }
 0x104   : > { %v685_v4 = vpop.f32.mrb[7].mxu0 }
 0x105   : > { %v965_v33 = vmul.f32 %v7257_v12, %v685_v4  ;;  %v1043_v38 = vadd.f32 %v7267_v16, %v964_v28  ;;  %v967_v4 = vmul.f32 %v7235_v2, %v7257_v12 }
 0x107   : > { %v1044_v45 = vadd.f32 %v7267_v16, %v965_v33  ;;  %v1115_v52 = vmax.f32 %v1043_v38, 0.0 }
 0x109   : > { %v7245_v6 = vpop.f32.mrb[8].mxu0  ;;  %v1116_v60 = vmax.f32 %v1044_v45, 0.0 }
 0x10a   : > { %v698_v7 = vpop.f32.mrb[9].mxu0  ;;  %v970_v38 = vmul.f32 %v7245_v6, %v7257_v12 }
 0x10b   : > { %v7248_v8 = vpop.f32.mrb[10].mxu0  ;;  %v968_v53 = vmul.f32 %v7257_v12, %v698_v7 }
 0x10c   : > { %v701_v9 = vpop.f32.mrb[11].mxu0 }
 0x10d   : > { %v969_v61 = vmul.f32 %v7257_v12, %v701_v9  ;;  %v1045_v9 = vadd.f32 %v7267_v16, %v966_v57 }
 0x10f   : > { %v1048_v2 = vadd.f32 %v7267_v16, %v969_v61 }
 0x111   : > { %v7250_v10 = vpop.f32.mrb[12].mxu0  ;;  %v1120_v42 = vmax.f32 %v1048_v2, 0.0 }
 0x112   : > { %v7252_v11 = vpop.f32.mrb[13].mxu0 }
 0x113   : > { %v7259_v13 = vpop.f32.mrb[14].mxu0  ;;  %v972_v33 = vmul.f32 %v7257_v12, %v7252_v11  ;;  %v971_v11 = vmul.f32 %v7248_v8, %v7257_v12 }
 0x114   : > { %v7261_v14 = vpop.f32.mrb[15].mxu0 }
 0x115   : > { %v1051_v6 = vadd.f32 %v7267_v16, %v972_v33 }
 0x119   : > { %v5960_v18 = vpop.f32.mrb[16].mxu0 }
 0x11a   : > { %v978_v20 = vmul.f32 %v5960_v18, %v7257_v12  ;;  %v7272_v21 = vpop.f32.mrb[17].mxu0  ;;  %v1047_v18 = vadd.f32 %v7267_v16, %v968_v53 }
 0x11b   : > { %v5961_v22 = vpop.f32.mrb[18].mxu0 }
 0x11c   : > { %v1057_v24 = vadd.f32 %v7267_v16, %v978_v20  ;;  %v979_v25 = vmul.f32 %v5961_v22, %v7257_v12  ;;  %v7277_v26 = vpop.f32.mrb[19].mxu0 }
 0x11e   : > { %v1129_v29 = vmax.f32 %v1057_v24, 0.0  ;;  %v1058_v30 = vadd.f32 %v7267_v16, %v979_v25 }
 0x120   : > { %v7283_v34 = vmax.f32 %v1111_v27, %v1129_v29  ;;  %v1130_v35 = vmax.f32 %v1058_v30, 0.0  ;;  %v1046_v29 = vadd.f32 %v7267_v16, %v967_v4 }
 0x121   : > { %v5964_v37 = vpop.f32.mrb[20].mxu0 }
 0x122   : > { %v7287_v39 = vmax.f32 %v1112_v32, %v1130_v35  ;;  %v982_v40 = vmul.f32 %v5964_v37, %v7257_v12  ;;  %v746_v41 = vpop.f32.mrb[21].mxu0  ;;  %v1119_v32 = vmax.f32 %v1047_v18, 0.0  ;;  %v1117_v37 = vmax.f32 %v1045_v9, 0.0 }
 0x123   : > { %v980_v43 = vmul.f32 %v7257_v12, %v746_v41  ;;  %v5965_v44 = vpop.f32.mrb[22].mxu0  ;;  %v974_v18 = vmul.f32 %v7250_v10, %v7257_v12 }
 0x124   : > { %v1061_v46 = vadd.f32 %v7267_v16, %v982_v40  ;;  %v983_v47 = vmul.f32 %v5965_v44, %v7257_v12  ;;  %v749_v48 = vpop.f32.mrb[23].mxu0 }
 0x125   : > { %v1059_v50 = vadd.f32 %v7267_v16, %v980_v43  ;;  %v981_v51 = vmul.f32 %v7257_v12, %v749_v48  ;;  %v973_v43 = vmul.f32 %v7257_v12, %v7261_v14  ;;  %v1049_v14 = vadd.f32 %v7267_v16, %v970_v38 }
 0x126   : > { %v1133_v54 = vmax.f32 %v1061_v46, 0.0  ;;  %v1062_v55 = vadd.f32 %v7267_v16, %v983_v47  ;;  %v1118_v46 = vmax.f32 %v1046_v29, 0.0 }
 0x127   : > { %v1131_v58 = vmax.f32 %v1059_v50, 0.0  ;;  %v1060_v59 = vadd.f32 %v7267_v16, %v981_v51  ;;  %v1052_v8 = vadd.f32 %v7267_v16, %v973_v43 }
 0x128   : > { %v7303_v63 = vmax.f32 %v1115_v52, %v1133_v54  ;;  %v1134_v1 = vmax.f32 %v1062_v55, 0.0 }
 0x129   : > { %v7307_v7 = vmax.f32 %v1113_v56, %v1131_v58  ;;  %v1132_v15 = vmax.f32 %v1060_v59, 0.0  ;;  %v5968_v17 = vpop.f32.mrb[24].mxu0  ;;  %v1050_v59 = vadd.f32 %v7267_v16, %v971_v11  ;;  %v1124_v9 = vmax.f32 %v1052_v8, 0.0 }
 0x12a   : > { %v7310_v0 = vmax.f32 %v1116_v60, %v1134_v1  ;;  %v986_v19 = vmul.f32 %v5968_v17, %v7257_v12  ;;  %v762_v20 = vpop.f32.mrb[25].mxu0  ;;  %v1123_v1 = vmax.f32 %v1051_v6, 0.0  ;;  %v1121_v17 = vmax.f32 %v1049_v14, 0.0 }
 0x12b   : > { %v7314_v22 = vmax.f32 %v1114_v3, %v1132_v15  ;;  %v984_v23 = vmul.f32 %v7257_v12, %v762_v20  ;;  %v5969_v24 = vpop.f32.mrb[26].mxu0  ;;  %v976_v3 = vmul.f32 %v7257_v12, %v7272_v21  ;;  %v975_v21 = vmul.f32 %v7259_v13, %v7257_v12 }
 0x12c   : > { %v1065_v25 = vadd.f32 %v7267_v16, %v986_v19  ;;  %v987_v27 = vmul.f32 %v5969_v24, %v7257_v12  ;;  %v765_v28 = vpop.f32.mrb[27].mxu0 }
 0x12d   : > { %v1063_v30 = vadd.f32 %v7267_v16, %v984_v23  ;;  %v985_v31 = vmul.f32 %v7257_v12, %v765_v28  ;;  %v977_v23 = vmul.f32 %v7257_v12, %v7277_v26  ;;  %v1055_v10 = vadd.f32 %v7267_v16, %v976_v3 }
 0x12e   : > { %v1137_v35 = vmax.f32 %v1065_v25, 0.0  ;;  %v1066_v36 = vadd.f32 %v7267_v16, %v987_v27  ;;  %v1122_v25 = vmax.f32 %v1050_v59, 0.0  ;;  %v1053_v26 = vadd.f32 %v7267_v16, %v974_v18 }
 0x12f   : > { %v1135_v40 = vmax.f32 %v1063_v30, 0.0  ;;  %v1064_v41 = vadd.f32 %v7267_v16, %v985_v31  ;;  %v1056_v13 = vadd.f32 %v7267_v16, %v977_v23 }
 0x130   : > { %v7331_v44 = vmax.f32 %v1119_v32, %v1137_v35  ;;  %v1138_v45 = vmax.f32 %v1066_v36, 0.0 }
 0x131   : > { %v7335_v47 = vmax.f32 %v1117_v37, %v1135_v40  ;;  %v1136_v48 = vmax.f32 %v1064_v41, 0.0  ;;  %v5972_v49 = vpop.f32.mrb[28].mxu0  ;;  %v1054_v41 = vadd.f32 %v7267_v16, %v975_v21 }
 0x132   : > { %v7338_v50 = vmax.f32 %v1120_v42, %v1138_v45  ;;  %v990_v51 = vmul.f32 %v5972_v49, %v7257_v12  ;;  %v778_v52 = vpop.f32.mrb[29].mxu0  ;;  %v1127_v45 = vmax.f32 %v1055_v10, 0.0 }
 0x133   : > { %v7342_v53 = vmax.f32 %v1118_v46, %v1136_v48  ;;  %v988_v54 = vmul.f32 %v7257_v12, %v778_v52  ;;  %v5973_v55 = vpop.f32.mrb[30].mxu0  ;;  %v1125_v48 = vmax.f32 %v1053_v26, 0.0 }
 0x134   : > { %v1069_v56 = vadd.f32 %v7267_v16, %v990_v51  ;;  %v991_v57 = vmul.f32 %v5973_v55, %v7257_v12  ;;  %v781_v58 = vpop.f32.mrb[31].mxu0  ;;  %v1128_v51 = vmax.f32 %v1056_v13, 0.0 }
 0x135   : > { %v1067_v60 = vadd.f32 %v7267_v16, %v988_v54  ;;  %v989_v61 = vmul.f32 %v7257_v12, %v781_v58  ;;  %v1126_v54 = vmax.f32 %v1054_v41, 0.0 }
 0x136   : > { %v1141_v4 = vmax.f32 %v1069_v56, 0.0  ;;  %v1070_v15 = vadd.f32 %v7267_v16, %v991_v57 }
 0x137   : > { %v1139_v19 = vmax.f32 %v1067_v60, 0.0  ;;  %v1068_v20 = vadd.f32 %v7267_v16, %v989_v61 }
 0x138   : > { %v7359_v24 = vmax.f32 %v1123_v1, %v1141_v4  ;;  %v1142_v2 = vmax.f32 %v1070_v15, 0.0 }
 0x139   : > { %v7363_v27 = vmax.f32 %v1121_v17, %v1139_v19  ;;  %v1140_v28 = vmax.f32 %v1068_v20, 0.0  ;;  %v5976_v29 = vpop.f32.mrb[32].mxu0 }
 0x13a   : > { %v7366_v30 = vmax.f32 %v1124_v9, %v1142_v2  ;;  %v994_v31 = vmul.f32 %v5976_v29, %v7257_v12  ;;  %v794_v32 = vpop.f32.mrb[33].mxu0 }
 0x13b   : > { %v7370_v33 = vmax.f32 %v1122_v25, %v1140_v28  ;;  %v992_v35 = vmul.f32 %v7257_v12, %v794_v32  ;;  %v5977_v36 = vpop.f32.mrb[34].mxu0 }
 0x13c   : > { %v1073_v37 = vadd.f32 %v7267_v16, %v994_v31  ;;  %v995_v38 = vmul.f32 %v5977_v36, %v7257_v12  ;;  %v797_v40 = vpop.f32.mrb[35].mxu0 }
 0x13d   : > { %v1071_v42 = vadd.f32 %v7267_v16, %v992_v35  ;;  %v993_v43 = vmul.f32 %v7257_v12, %v797_v40 }
 0x13e   : > { %v1145_v46 = vmax.f32 %v1073_v37, 0.0  ;;  %v1074_v11 = vadd.f32 %v7267_v16, %v995_v38 }
 0x13f   : > { %v1143_v49 = vmax.f32 %v1071_v42, 0.0  ;;  %v1072_v6 = vadd.f32 %v7267_v16, %v993_v43 }
 0x140   : > { %v7381_v52 = vmax.f32 %v1127_v45, %v1145_v46  ;;  %v1146_v14 = vmax.f32 %v1074_v11, 0.0 }
 0x141   : > { %v7383_v55 = vmax.f32 %v1125_v48, %v1143_v49  ;;  %v1144_v8 = vmax.f32 %v1072_v6, 0.0  ;;  %v5980_v56 = vpop.f32.mrb[36].mxu0 }
 0x142   : > { %v7385_v57 = vmax.f32 %v1128_v51, %v1146_v14  ;;  %v810_v58 = vpop.f32.mrb[37].mxu0  ;;  %v998_v26 = vmul.f32 %v5980_v56, %v7257_v12 }
 0x143   : > { %v7387_v59 = vmax.f32 %v1126_v54, %v1144_v8  ;;  %v5981_v60 = vpop.f32.mrb[38].mxu0  ;;  %v996_v21 = vmul.f32 %v7257_v12, %v810_v58 }
 0x144   : > { %v813_v61 = vpop.f32.mrb[39].mxu0  ;;  %v999_v35 = vmul.f32 %v5981_v60, %v7257_v12  ;;  %v1077_v11 = vadd.f32 %v7267_v16, %v998_v26 }
 0x145   : > { %v997_v28 = vmul.f32 %v7257_v12, %v813_v61  ;;  %v1075_v10 = vadd.f32 %v7267_v16, %v996_v21 }
 0x146   : > { %v1078_v48 = vadd.f32 %v7267_v16, %v999_v35  ;;  %v1149_v21 = vmax.f32 %v1077_v11, 0.0 }
 0x147   : > { %v1076_v13 = vadd.f32 %v7267_v16, %v997_v28  ;;  %v1147_v43 = vmax.f32 %v1075_v10, 0.0 }
 0x148   : > { %v1150_v28 = vmax.f32 %v1078_v48, 0.0 }
 0x149   : > { %v5984_v1 = vpop.f32.mrb[40].mxu0  ;;  %v1148_v6 = vmax.f32 %v1076_v13, 0.0 }
 0x14a   : > { %v826_v3 = vpop.f32.mrb[41].mxu0  ;;  %v1002_v41 = vmul.f32 %v5984_v1, %v7257_v12 }
 0x14b   : > { %v5985_v4 = vpop.f32.mrb[42].mxu0  ;;  %v1000_v42 = vmul.f32 %v7257_v12, %v826_v3 }
 0x14c   : > { %v829_v15 = vpop.f32.mrb[43].mxu0  ;;  %v1003_v49 = vmul.f32 %v5985_v4, %v7257_v12  ;;  %v7420_v8 = vadd.f32 %v7267_v16, %v1002_v41 }
 0x14d   : > { %v1001_v51 = vmul.f32 %v7257_v12, %v829_v15  ;;  %v1079_v56 = vadd.f32 %v7267_v16, %v1000_v42 }
 0x14e   : > { %v7429_v15 = vadd.f32 %v7267_v16, %v1003_v49 }
 0x14f   : > { %v1151_v41 = vmax.f32 %v1079_v56, 0.0 }
 0x151   : > { %v5988_v17 = vpop.f32.mrb[44].mxu0 }
 0x152   : > { %v842_v18 = vpop.f32.mrb[45].mxu0  ;;  %v1006_v60 = vmul.f32 %v5988_v17, %v7257_v12 }
 0x153   : > { %v7389_v19 = vpop.f32.mrb[46].mxu0  ;;  %v1004_v13 = vmul.f32 %v7257_v12, %v842_v18 }
 0x154   : > { %v845_v20 = vpop.f32.mrb[47].mxu0  ;;  %v7442_v42 = vadd.f32 %v7267_v16, %v1006_v60  ;;  %v1007_v49 = vmul.f32 %v7389_v19, %v7257_v12 }
 0x156   : > { %v1157_v60 = vmax.f32 %v7442_v42, 0.0 }
 0x159   : > { %v7391_v9 = vpop.f32.mrb[48].mxu0 }
 0x15a   : > { %v7393_v23 = vpop.f32.mrb[49].mxu0 }
 0x15b   : > { %v7395_v2 = vpop.f32.mrb[50].mxu0 }
 0x15c   : > { %v7397_v25 = vpop.f32.mrb[51].mxu0 }
 0x161   : > { %v5996_v29 = vpop.f32.mrb[52].mxu0 }
 0x162   : > { %v1014_v31 = vmul.f32 %v5996_v29, %v7257_v12  ;;  %v7403_v32 = vpop.f32.mrb[53].mxu0 }
 0x163   : > { %v5997_v36 = vpop.f32.mrb[54].mxu0 }
 0x164   : > { %v1093_v37 = vadd.f32 %v7267_v16, %v1014_v31  ;;  %v1015_v38 = vmul.f32 %v5997_v36, %v7257_v12  ;;  %v7410_v40 = vpop.f32.mrb[55].mxu0  ;;  %v1080_v31 = vadd.f32 %v7267_v16, %v1001_v51  ;;  %v1153_v36 = vmax.f32 %v7420_v8, 0.0 }
 0x166   : > { %v1165_v45 = vmax.f32 %v1093_v37, 0.0  ;;  %v1094_v46 = vadd.f32 %v7267_v16, %v1015_v38  ;;  %v1152_v18 = vmax.f32 %v1080_v31, 0.0 }
 0x168   : > { %v1201_v14 = vmax.f32 %v1147_v43, %v1165_v45  ;;  %v1166_v54 = vmax.f32 %v1094_v46, 0.0  ;;  %v1154_v45 = vmax.f32 %v7429_v15, 0.0  ;;  %v1005_v46 = vmul.f32 %v7257_v12, %v845_v20 }
 0x169   : > { %v6000_v58 = vpop.f32.mrb[56].mxu0 }
 0x16a   : > { %v7425_v61 = vmax.f32 %v7283_v34, %v1201_v14  ;;  %v1202_v1 = vmax.f32 %v1148_v6, %v1166_v54  ;;  %v1018_v3 = vmul.f32 %v6000_v58, %v7257_v12  ;;  %v890_v4 = vpop.f32.mrb[57].mxu0  ;;  %v1083_v14 = vadd.f32 %v7267_v16, %v1004_v13 }
 0x16b   : > { %v1016_v29 = vmul.f32 %v7257_v12, %v890_v4  ;;  %v6001_v10 = vpop.f32.mrb[58].mxu0  ;;  %v1008_v54 = vmul.f32 %v7257_v12, %v7393_v23  ;;  %v1084_v19 = vadd.f32 %v7267_v16, %v1005_v46 }
 0x16c   : > { %1237 = vst [vmem:[#allocation2] sm:$0xff] %v7425_v61  ;;  %v1220_v17 = vmax.f32 %v7287_v39, %v1202_v1  ;;  %v1097_v34 = vadd.f32 %v7267_v16, %v1018_v3  ;;  %v1019_v26 = vmul.f32 %v6001_v10, %v7257_v12  ;;  %v893_v35 = vpop.f32.mrb[59].mxu0 }
 0x16d   : > { %v1095_v37 = vadd.f32 %v7267_v16, %v1016_v29  ;;  %v1017_v38 = vmul.f32 %v7257_v12, %v893_v35  ;;  %v1155_v35 = vmax.f32 %v1083_v14, 0.0 }
 0x16e   : > { %1238 = vst [vmem:[#allocation2 + $0x8] sm:$0xff] %v1220_v17  ;;  %v1169_v43 = vmax.f32 %v1097_v34, 0.0  ;;  %v1098_v39 = vadd.f32 %v7267_v16, %v1019_v26  ;;  %v7467_v26 = vadd.f32 %v7267_v16, %v1008_v54 }
 0x16f   : > { %v1167_v11 = vmax.f32 %v1095_v37, 0.0  ;;  %v1096_v48 = vadd.f32 %v7267_v16, %v1017_v38  ;;  %v7479_v38 = vadd.f32 %v7267_v16, %v1007_v49 }
 0x170   : > { %v1205_v6 = vmax.f32 %v1151_v41, %v1169_v43  ;;  %v1170_v51 = vmax.f32 %v1098_v39, 0.0  ;;  %v1012_v41 = vmul.f32 %v7257_v12, %v7403_v32  ;;  %v1156_v39 = vmax.f32 %v1084_v19, 0.0 }
 0x171   : > { %v1203_v8 = vmax.f32 %v1149_v21, %v1167_v11  ;;  %v1168_v56 = vmax.f32 %v1096_v48, 0.0  ;;  %v6004_v58 = vpop.f32.mrb[60].mxu0  ;;  %v1010_v21 = vmul.f32 %v7391_v9, %v7257_v12  ;;  %v1159_v48 = vmax.f32 %v7467_v26, 0.0 }
 0x172   : > { %v1223_v20 = vmax.f32 %v7303_v63, %v1205_v6  ;;  %v1206_v1 = vmax.f32 %v1152_v18, %v1170_v51  ;;  %v1022_v3 = vmul.f32 %v6004_v58, %v7257_v12  ;;  %v906_v4 = vpop.f32.mrb[61].mxu0  ;;  %v1011_v18 = vmul.f32 %v7395_v2, %v7257_v12 }
 0x173   : > { %v7458_v15 = vmax.f32 %v7307_v7, %v1203_v8  ;;  %v1204_v29 = vmax.f32 %v1150_v28, %v1168_v56  ;;  %v1020_v10 = vmul.f32 %v7257_v12, %v906_v4  ;;  %v6005_v23 = vpop.f32.mrb[62].mxu0  ;;  %v7486_v46 = vadd.f32 %v7267_v16, %v1010_v21 }
 0x174   : > { %1241 = vst [vmem:[#allocation2 + $0x20] sm:$0xff] %v1223_v20  ;;  %v1224_v31 = vmax.f32 %v7310_v0, %v1206_v1  ;;  %v1101_v63 = vadd.f32 %v7267_v16, %v1022_v3  ;;  %v1023_v17 = vmul.f32 %v6005_v23, %v7257_v12  ;;  %v909_v34 = vpop.f32.mrb[63].mxu0  ;;  %v1009_v0 = vmul.f32 %v7257_v12, %v7397_v25 }
 0x175   : > { %1239 = vst [vmem:[#allocation2 + $0x10] sm:$0xff] %v7458_v15  ;;  %v7471_v7 = vmax.f32 %v7314_v22, %v1204_v29  ;;  %v1099_v28 = vadd.f32 %v7267_v16, %v1020_v10  ;;  %v1021_v9 = vmul.f32 %v7257_v12, %v909_v34  ;;  %v7495_v58 = vadd.f32 %v7267_v16, %v1012_v41  ;;  %v1283_v10 = vld [vmem:[#allocation2 + $0x1] sm:$0xff] }
 0x176   : > { %1242 = vst [vmem:[#allocation2 + $0x28] sm:$0xff] %v1224_v31  ;;  %v1173_v13 = vmax.f32 %v1101_v63, 0.0  ;;  %v1102_v37 = vadd.f32 %v7267_v16, %v1023_v17  ;;  %v1088_v32 = vadd.f32 %v7267_v16, %v1009_v0  ;;  %v1013_v3 = vmul.f32 %v7257_v12, %v7410_v40 }
 0x177   : > { %1240 = vst [vmem:[#allocation2 + $0x18] sm:$0xff] %v7471_v7  ;;  %v1171_v22 = vmax.f32 %v1099_v28, 0.0  ;;  %v1100_v43 = vadd.f32 %v7267_v16, %v1021_v9  ;;  %v1158_v41 = vmax.f32 %v7479_v38, 0.0 }
 0x178   : > { %v1209_v25 = vmax.f32 %v1155_v35, %v1173_v13  ;;  %v1174_v11 = vmax.f32 %v1102_v37, 0.0  ;;  %v6875_v37 = vld [vmem:[%s8426_s4 + $0x8] sm:$0xff]   ;;  %v1092_v42 = vadd.f32 %v7267_v16, %v1013_v3 }
 0x179   : > { %v1207_v49 = vmax.f32 %v1153_v36, %v1171_v22  ;;  %v1172_v6 = vmax.f32 %v1100_v43, 0.0  ;;  %v6008_v51 = vpop.f32.mrb[64].mxu0  ;;  %v1160_v22 = vmax.f32 %v1088_v32, 0.0 }
 0x17a   : > { %v1227_v14 = vmax.f32 %v7331_v44, %v1209_v25  ;;  %v1210_v54 = vmax.f32 %v1156_v39, %v1174_v11  ;;  %v1026_v8 = vmul.f32 %v6008_v51, %v7257_v12  ;;  %v922_v56 = vpop.f32.mrb[65].mxu0  ;;  %v1161_v25 = vmax.f32 %v7486_v46, 0.0 }
 0x17b   : > { %v7498_v20 = vmax.f32 %v7335_v47, %v1207_v49  ;;  %v1208_v1 = vmax.f32 %v1154_v45, %v1172_v6  ;;  %v1024_v2 = vmul.f32 %v7257_v12, %v922_v56  ;;  %v6009_v36 = vpop.f32.mrb[66].mxu0  ;;  %v7543_v11 = vadd.f32 %v7267_v16, %v1011_v18 }
 0x17c   : > { %1245 = vst [vmem:[#allocation2 + $0x40] sm:$0xff] %v1227_v14  ;;  %v7504_v44 = vmax.f32 %v7338_v50, %v1210_v54  ;;  %v1105_v4 = vadd.f32 %v7267_v16, %v1026_v8  ;;  %v1027_v19 = vmul.f32 %v6009_v36, %v7257_v12  ;;  %v925_v29 = vpop.f32.mrb[67].mxu0  ;;  %v7508_v23 = vld [vmem:[#allocation2 + $0xd] sm:$0xff]  ;;  %v1163_v14 = vmax.f32 %v7495_v58, 0.0 }
 0x17d   : > { %v7510_v47 = vld [vmem:[#allocation2 + $0xc] sm:$0xff]  ;;  %1243 = vst [vmem:[#allocation2 + $0x30] sm:$0xff] %v7498_v20  ;;  %v1226_v45 = vmax.f32 %v7342_v53, %v1208_v1  ;;  %v1103_v40 = vadd.f32 %v7267_v16, %v1024_v2  ;;  %v1025_v21 = vmul.f32 %v7257_v12, %v925_v29  ;;  %v1291_v50 = vpack.c.bf16 %v7508_v23, %v1283_v10  ;;  %v1258_v63 = vld [vmem:[#allocation2 + $0x24] sm:$0xff] }
 0x17e   : > { %v7517_v31 = vld [vmem:[#allocation2 + $0x25] sm:$0xff]  ;;  %1246 = vst [vmem:[#allocation2 + $0x48] sm:$0xff] %v7504_v44  ;;  %v1177_v17 = vmax.f32 %v1105_v4, 0.0  ;;  %v1106_v34 = vadd.f32 %v7267_v16, %v1027_v19  ;;  %v7521_v26 = vld [vmem:[#allocation2 + $0x19] sm:$0xff]  ;;  %v7524_v28 = vpack.c.bf16 %v1258_v63, %v7471_v7  ;;  %v1989_v53 = vpack.c.bf16 %v7471_v7, %v7510_v47  ;;  %v7570_v3 = vld [vmem:[#allocation2 + $0xe] sm:$0xff] }
 0x17f   : > { %1244 = vst [vmem:[#allocation2 + $0x38] sm:$0xff] %v1226_v45  ;;  %v1175_v9 = vmax.f32 %v1103_v40, 0.0  ;;  %v1104_v35 = vadd.f32 %v7267_v16, %v1025_v21  ;;  %6030 = vmatprep.mubr.bf16.mxu0 %v1291_v50  ;;  %v7531_v0 = vpack.c.bf16 %v7517_v31, %v7521_v26  ;;  %v7534_v13 = vpack.c.bf16 %v7498_v20, %v1258_v63  ;;  %v7554_v18 = vld [vmem:[#allocation2 + $0x1a] sm:$0xff]  ;;  %v7579_v45 = vld [vmem:[#allocation2 + $0xf] sm:$0xff] }
 0x180   : > { %v1213_v43 = vmax.f32 %v1159_v48, %v1177_v17  ;;  %v1178_v39 = vmax.f32 %v1106_v34, 0.0  ;;  %6270 = vmatprep.mubr.bf16.mxu1 %v7524_v28  ;;  %v7562_v58 = vld [vmem:[#allocation2 + $0x1b] sm:$0xff]  ;;  %v2132_v4 = vpack.c.bf16 %v7521_v26, %v7508_v23  ;;  %v6888_v34 = vld [vmem:[%s8426_s4 + $0x2e8] sm:$0xff]  }
 0x181   : > { %v1211_v49 = vmax.f32 %v1157_v60, %v1175_v9  ;;  %v1176_v6 = vmax.f32 %v1104_v35, 0.0  ;;  %v6012_v51 = vpop.f32.mrb[68].mxu0  ;;  %6031 = vmatmul.mubr.bf16.vlgmr.msra.gmra.mrb[72].mxu0 %v7531_v0  ;;  %v7564_v1 = vld [vmem:[#allocation2 + $0x1c] sm:$0xff]  ;;  %v6947_v7 = vld [vmem:[%s8426_s4 + $0x168] sm:$0xff]  }
 0x182   : > { %v7550_v38 = vmax.f32 %v7359_v24, %v1213_v43  ;;  %v1214_v48 = vmax.f32 %v1160_v22, %v1178_v39  ;;  %v1030_v32 = vmul.f32 %v6012_v51, %v7257_v12  ;;  %6039 = vmatpush3.bf16.msra.mxu0 %v7229_v62  ;;  %v938_v46 = vpop.f32.mrb[69].mxu0  ;;  %v6877_v24 = vld [vmem:[%s8426_s4 + $0x10] sm:$0xff]   ;;  %v6880_v22 = vld [vmem:[%s8426_s4 + $0x2c8] sm:$0xff]   ;;  %v1164_v43 = vmax.f32 %v1092_v42, 0.0 }
 0x183   : > { %v1229_v60 = vmax.f32 %v7363_v27, %v1211_v49  ;;  %v1212_v54 = vmax.f32 %v1158_v41, %v1176_v6  ;;  %v1028_v8 = vmul.f32 %v7257_v12, %v938_v46  ;;  %v6013_v56 = vpop.f32.mrb[70].mxu0  ;;  %6040 = vmatprep.subr.bf16.mxu0 %v6875_v37  ;;  %v1162_v51 = vmax.f32 %v7543_v11, 0.0  ;;  %v7621_v11 = vld [vmem:[#allocation2 + $0x26] sm:$0xff] }
 0x184   : > { %1249 = vst [vmem:[#allocation2 + $0x60] sm:$0xff] %v7550_v38  ;;  %v1232_v62 = vmax.f32 %v7366_v30, %v1214_v48  ;;  %v1109_v2 = vadd.f32 %v7267_v16, %v1030_v32  ;;  %v1031_v27 = vmul.f32 %v6013_v56, %v7257_v12  ;;  %v941_v36 = vpop.f32.mrb[71].mxu0  ;;  %v2275_v30 = vpack.c.bf16 %v7554_v18, %v7570_v3  ;;  %v6881_v32 = vld [vmem:[%s8426_s4 + $0x20] sm:$0xff]   ;;  %v6963_v23 = vld [vmem:[%s8426_s4 + $0x1a8] sm:$0xff]  }
 0x185   : > { %1247 = vst [vmem:[#allocation2 + $0x50] sm:$0xff] %v1229_v60  ;;  %v7575_v19 = vmax.f32 %v7370_v33, %v1212_v54  ;;  %v1107_v29 = vadd.f32 %v7267_v16, %v1028_v8  ;;  %v1029_v10 = vmul.f32 %v7257_v12, %v941_v36  ;;  %v2418_v33 = vpack.c.bf16 %v7562_v58, %v7579_v45  ;;  %v7623_v54 = vld [vmem:[#allocation2 + $0x27] sm:$0xff] }
 0x186   : > { %1250 = vst [vmem:[#allocation2 + $0x68] sm:$0xff] %v1232_v62  ;;  %v1181_v40 = vmax.f32 %v1109_v2, 0.0  ;;  %v1110_v21 = vadd.f32 %v7267_v16, %v1031_v27  ;;  %6041 = vmatpush3.bf16.msra.mxu0 %v6875_v37  ;;  %v1287_v50 = vld [vmem:[#allocation2 + $0x31] sm:$0xff]  ;;  %v1288_v63 = vld [vmem:[#allocation2 + $0x3d] sm:$0xff] }
 0x187   : > { %v1260_v17 = vld [vmem:[#allocation2 + $0x3c] sm:$0xff]  ;;  %1248 = vst [vmem:[#allocation2 + $0x58] sm:$0xff] %v7575_v19  ;;  %v1179_v12 = vmax.f32 %v1107_v29, 0.0  ;;  %v1108_v9 = vadd.f32 %v7267_v16, %v1029_v10  ;;  %6042 = vmatprep.subr.bf16.mxu0 %v6877_v24  ;;  %v7590_v35 = vpack.c.bf16 %v1288_v63, %v1287_v50  ;;  %v7601_v6 = vld [vmem:[#allocation2 + $0x32] sm:$0xff]  ;;  %v7626_v8 = vpack.c.bf16 %v1287_v50, %v7517_v31 }
 0x188   : > { %v7593_v41 = vpack.c.bf16 %v1260_v17, %v7498_v20  ;;  %v6879_v37 = vld [vmem:[%s8426_s4 + $0x18] sm:$0xff]   ;;  %v1217_v39 = vmax.f32 %v1163_v14, %v1181_v40  ;;  %v1182_v49 = vmax.f32 %v1110_v21, 0.0  ;;  %v7604_v16 = vpack.c.bf16 %v7504_v44, %v1260_v17 }
 0x189   : > { %v1215_v20 = vmax.f32 %v1161_v25, %v1179_v12  ;;  %v1180_v48 = vmax.f32 %v1108_v9, 0.0  ;;  %6034 = vmatprep.mubr.bf16.mxu0 %v7590_v35  ;;  %v7612_v46 = vld [vmem:[#allocation2 + $0x33] sm:$0xff]  ;;  %v7639_v2 = vpack.c.bf16 %v7601_v6, %v7621_v11 }
 0x18a   : > { %6271 = vmatmul.mubr.bf16.vlgmr.msra.gmra.mrb[0].mxu1 %v7593_v41  ;;  %v7614_v14 = vld [vmem:[#allocation2 + $0x34] sm:$0xff]  ;;  %v1235_v42 = vmax.f32 %v7381_v52, %v1217_v39  ;;  %v1218_v60 = vmax.f32 %v1164_v43, %v1182_v49  ;;  %6043 = vmatpush3.bf16.msra.mxu0 %v6877_v24  ;;  %v7631_v52 = vld [vmem:[#allocation2 + $0x3e] sm:$0xff]  ;;  %v7635_v24 = vld [vmem:[#allocation2 + $0x28] sm:$0xff]  ;;  %v7648_v29 = vpack.c.bf16 %v7612_v46, %v7623_v54 }
 0x18b   : > { %6279 = vmatpush3.bf16.msra.mxu1 %v7243_v5  ;;  %v6882_v25 = vld [vmem:[%s8426_s4 + $0x2d0] sm:$0xff]   ;;  %v7629_v56 = vmax.f32 %v7383_v55, %v1215_v20  ;;  %v1216_v62 = vmax.f32 %v1162_v51, %v1180_v48  ;;  %6044 = vmatprep.subr.bf16.mxu0 %v6879_v37  ;;  %v7633_v5 = vld [vmem:[#allocation2 + $0x3f] sm:$0xff]  ;;  %v7652_v10 = vpack.c.bf16 %v7614_v14, %v7635_v24  ;;  %v6883_v51 = vld [vmem:[%s8426_s4 + $0x28] sm:$0xff]  }
 0x18c   : > { %6280 = vmatprep.subr.bf16.mxu1 %v6880_v22  ;;  %1253 = vst [vmem:[#allocation2 + $0x80] sm:$0xff] %v1235_v42  ;;  %v1236_v31 = vmax.f32 %v7385_v57, %v1218_v60  ;;  %v1289_v27 = vld [vmem:[#allocation2 + $0x49] sm:$0xff]  ;;  %v1263_v60 = vpack.c.bf16 %v7510_v47, %v7425_v61 }
 0x18d   : > { %v7642_v36 = vld [vmem:[#allocation2 + $0x4a] sm:$0xff]  ;;  %1251 = vst [vmem:[#allocation2 + $0x70] sm:$0xff] %v7629_v56  ;;  %v1234_v40 = vmax.f32 %v7387_v59, %v1216_v62  ;;  %v7656_v21 = vld [vmem:[#allocation2 + $0x61] sm:$0xff]  ;;  %v7662_v17 = vpack.c.bf16 %v1289_v27, %v1288_v63 }
 0x18e   : > { %v7644_v55 = vld [vmem:[#allocation2 + $0x4b] sm:$0xff]  ;;  %v7658_v57 = vld [vmem:[#allocation2 + $0x62] sm:$0xff]  ;;  %v7666_v12 = vpack.c.bf16 %v7642_v36, %v7631_v52  ;;  %1254 = vst [vmem:[#allocation2 + $0x88] sm:$0xff] %v1236_v31  ;;  %6045 = vmatpush3.bf16.msra.mxu0 %v6879_v37  ;;  %v1290_v59 = vld [vmem:[#allocation2 + $0x55] sm:$0xff] }
 0x18f   : > { %v7660_v50 = vld [vmem:[#allocation2 + $0x63] sm:$0xff]  ;;  %v7670_v9 = vpack.c.bf16 %v7644_v55, %v7633_v5  ;;  %6281 = vmatpush3.bf16.msra.mxu1 %v6880_v22  ;;  %v1262_v43 = vld [vmem:[#allocation2 + $0x54] sm:$0xff]  ;;  %1252 = vst [vmem:[#allocation2 + $0x78] sm:$0xff] %v1234_v40  ;;  %6046 = vmatprep.subr.bf16.mxu0 %v6881_v32  ;;  %v7674_v63 = vpack.c.bf16 %v1290_v59, %v1289_v27  ;;  %v7684_v37 = vld [vmem:[#allocation2 + $0x4c] sm:$0xff] }
 0x190   : > { %v7672_v39 = vld [vmem:[#allocation2 + $0x56] sm:$0xff]  ;;  %6282 = vmatprep.subr.bf16.mxu1 %v6882_v25  ;;  %v7677_v49 = vpack.c.bf16 %v1262_v43, %v7504_v44  ;;  %v7689_v48 = vld [vmem:[#allocation2 + $0x64] sm:$0xff]  ;;  %v7692_v42 = vpack.c.bf16 %v7550_v38, %v1262_v43  ;;  %v7695_v44 = vpack.c.bf16 %v7656_v21, %v1290_v59 }
 0x191   : > { %v7682_v20 = vld [vmem:[#allocation2 + $0x57] sm:$0xff]  ;;  %6035 = vmatmul.mubr.bf16.gmra.mrb[76].mxu0 %v7674_v63  ;;  %v7701_v62 = vld [vmem:[#allocation2 + $0x40] sm:$0xff]  ;;  %v7705_v31 = vpack.c.bf16 %v7658_v57, %v7672_v39  ;;  %v7717_v59 = vpack.c.bf16 %v7689_v48, %v7575_v19  ;;  %v7992_v47 = vpack.c.bf16 %v7629_v56, %v7689_v48 }
 0x192   : > { %v6884_v22 = vld [vmem:[%s8426_s4 + $0x2d8] sm:$0xff]   ;;  %6274 = vmatprep.mubr.bf16.mxu1 %v7677_v49  ;;  %v7709_v27 = vpack.c.bf16 %v7660_v50, %v7682_v20  ;;  %6047 = vmatpush3.bf16.msra.mxu0 %v6881_v32  ;;  %v7713_v40 = vpack.c.bf16 %v7684_v37, %v7701_v62  ;;  %v6885_v61 = vld [vmem:[%s8426_s4 + $0x30] sm:$0xff]   ;;  %v6886_v32 = vld [vmem:[%s8426_s4 + $0x2e0] sm:$0xff]  }
 0x193   : > { %6283 = vmatpush3.bf16.msra.mxu1 %v6882_v25  ;;  %6054 = vmatprep.mubr.bf16.mxu0 %v1263_v60  ;;  %v6887_v60 = vld [vmem:[%s8426_s4 + $0x38] sm:$0xff]   ;;  %v6950_v56 = vld [vmem:[%s8426_s4 + $0x3e0] sm:$0xff]  }
 0x194   : > { %6048 = vmatprep.subr.bf16.mxu0 %v6883_v51  ;;  %6284 = vmatprep.subr.bf16.mxu1 %v6884_v22  ;;  %v7722_v43 = vld [vmem:[#allocation2 + $0x6c] sm:$0xff]  ;;  %v6951_v48 = vld [vmem:[%s8426_s4 + $0x178] sm:$0xff]  }
 0x195   : > { %v7729_v25 = vpack.c.bf16 %v7722_v43, %v7550_v38  ;;  %v6889_v38 = vld [vmem:[%s8426_s4 + $0x80] sm:$0xff]  }
 0x196   : > { %6049 = vmatpush3.bf16.msra.mxu0 %v6883_v51  ;;  %v6890_v51 = vld [vmem:[%s8426_s4 + $0x2f0] sm:$0xff]  }
 0x197   : > { %6285 = vmatpush3.bf16.msra.mxu1 %v6884_v22  ;;  %6050 = vmatprep.subr.bf16.mxu0 %v6885_v61  ;;  %v6892_v22 = vld [vmem:[%s8426_s4 + $0x2f8] sm:$0xff]  }
 0x198   : > { %6275 = vmatmul.mubr.bf16.gmra.mrb[4].mxu1 %v7729_v25  ;;  %6286 = vmatprep.subr.bf16.mxu1 %v6886_v32 }
 0x199   : > { %6294 = vmatprep.mubr.bf16.mxu1 %v7531_v0  ;;  %v6891_v0 = vld [vmem:[%s8426_s4 + $0x88] sm:$0xff]  }
 0x19a   : > { %6051 = vmatpush3.bf16.msra.mxu0 %v6885_v61  ;;  %v6894_v61 = vld [vmem:[%s8426_s4 + $0x300] sm:$0xff]  }
 0x19b   : > { %6287 = vmatpush3.bf16.msra.mxu1 %v6886_v32  ;;  %6052 = vmatprep.subr.bf16.mxu0 %v6887_v60  ;;  %v1538_v32 = vld [vmem:[#allocation2 + $0x2] sm:$0xff] }
 0x19c   : > { %6288 = vmatprep.subr.bf16.mxu1 %v6888_v34 }
 0x19e   : > { %6053 = vmatpush3.bf16.msra.mxu0 %v6887_v60  ;;  %v1546_v60 = vpack.c.bf16 %v7570_v3, %v1538_v32 }
 0x19f   : > { %6289 = vmatpush3.bf16.msra.mxu1 %v6888_v34  ;;  %6062 = vmatprep.subr.bf16.mxu0 %v6889_v38  ;;  %v6893_v34 = vld [vmem:[%s8426_s4 + $0x90] sm:$0xff]  }
 0x1a0   : > { %6290 = vmatprep.subr.bf16.mxu1 %v6890_v51 }
 0x1a1   : > { %6055 = vmatmul.mubr.bf16.vlgmr.msra.gmra.mrb[72].mxu0 %v7524_v28  ;;  %v6895_v28 = vld [vmem:[%s8426_s4 + $0x98] sm:$0xff]  }
 0x1a2   : > { %6058 = vmatprep.mubr.bf16.mxu0 %v7593_v41  ;;  %6063 = vmatpush3.bf16.msra.mxu0 %v6889_v38  ;;  %v6896_v38 = vld [vmem:[%s8426_s4 + $0x308] sm:$0xff]  }
 0x1a3   : > { %6291 = vmatpush3.bf16.msra.mxu1 %v6890_v51  ;;  %6064 = vmatprep.subr.bf16.mxu0 %v6891_v0  ;;  %v6897_v51 = vld [vmem:[%s8426_s4 + $0xa0] sm:$0xff]  }
 0x1a4   : > { %6292 = vmatprep.subr.bf16.mxu1 %v6892_v22 }
 0x1a6   : > { %6065 = vmatpush3.bf16.msra.mxu0 %v6891_v0  ;;  %v7772_v0 = vld [vmem:[#allocation2 + $0x6d] sm:$0xff] }
 0x1a7   : > { %6293 = vmatpush3.bf16.msra.mxu1 %v6892_v22  ;;  %6066 = vmatprep.subr.bf16.mxu0 %v6893_v34  ;;  %v6898_v22 = vld [vmem:[%s8426_s4 + $0x310] sm:$0xff]   ;;  %v7782_v32 = vpack.c.bf16 %v7772_v0, %v7656_v21  ;;  %v6902_v21 = vld [vmem:[%s8426_s4 + $0x320] sm:$0xff]  }
 0x1a8   : > { %6302 = vmatprep.subr.bf16.mxu1 %v6894_v61 }
 0x1a9   : > { %6059 = vmatmul.mubr.bf16.gmra.mrb[76].mxu0 %v7677_v49 }
 0x1aa   : > { %6295 = vmatmul.mubr.bf16.vlgmr.msra.gmra.mrb[0].mxu1 %v7590_v35  ;;  %6067 = vmatpush3.bf16.msra.mxu0 %v6893_v34  ;;  %v6899_v34 = vld [vmem:[%s8426_s4 + $0xa8] sm:$0xff]  }
 0x1ab   : > { %6078 = vmatprep.mubr.bf16.mxu0 %v1546_v60  ;;  %6298 = vmatprep.mubr.bf16.mxu1 %v7674_v63  ;;  %v6900_v60 = vld [vmem:[%s8426_s4 + $0x318] sm:$0xff]  }
 0x1ac   : > { %6303 = vmatpush3.bf16.msra.mxu1 %v6894_v61  ;;  %6068 = vmatprep.subr.bf16.mxu0 %v6895_v28  ;;  %v1547_v61 = vpack.c.bf16 %v7621_v11, %v7554_v18  ;;  %v6903_v11 = vld [vmem:[%s8426_s4 + $0xb8] sm:$0xff]   ;;  %v6979_v18 = vld [vmem:[%s8426_s4 + $0x1e8] sm:$0xff]  }
 0x1ad   : > { %6304 = vmatprep.subr.bf16.mxu1 %v6896_v38 }
 0x1ae   : > { %6069 = vmatpush3.bf16.msra.mxu0 %v6895_v28  ;;  %v6901_v28 = vld [vmem:[%s8426_s4 + $0xb0] sm:$0xff]  }
 0x1af   : > { %6070 = vmatprep.subr.bf16.mxu0 %v6897_v51 }
 0x1b0   : > { %6305 = vmatpush3.bf16.msra.mxu1 %v6896_v38  ;;  %v6904_v38 = vld [vmem:[%s8426_s4 + $0x328] sm:$0xff]  }
 0x1b1   : > { %6306 = vmatprep.subr.bf16.mxu1 %v6898_v22 }
 0x1b2   : > { %6299 = vmatmul.mubr.bf16.gmra.mrb[4].mxu1 %v7782_v32  ;;  %6071 = vmatpush3.bf16.msra.mxu0 %v6897_v51  ;;  %v6905_v51 = vld [vmem:[%s8426_s4 + $0xc0] sm:$0xff]  }
 0x1b3   : > { %6318 = vmatprep.mubr.bf16.mxu1 %v1547_v61  ;;  %6072 = vmatprep.subr.bf16.mxu0 %v6899_v34 }
 0x1b4   : > { %6307 = vmatpush3.bf16.msra.mxu1 %v6898_v22  ;;  %v6906_v22 = vld [vmem:[%s8426_s4 + $0x330] sm:$0xff]  }
 0x1b5   : > { %6308 = vmatprep.subr.bf16.mxu1 %v6900_v60 }
 0x1b6   : > { %6073 = vmatpush3.bf16.msra.mxu0 %v6899_v34  ;;  %v6907_v34 = vld [vmem:[%s8426_s4 + $0xc8] sm:$0xff]  }
 0x1b7   : > { %6074 = vmatprep.subr.bf16.mxu0 %v6901_v28 }
 0x1b8   : > { %6309 = vmatpush3.bf16.msra.mxu1 %v6900_v60  ;;  %v7813_v60 = vpack.c.bf16 %v7631_v52, %v7601_v6  ;;  %v6910_v6 = vld [vmem:[%s8426_s4 + $0x340] sm:$0xff]   ;;  %v7827_v52 = vpack.c.bf16 %v7672_v39, %v7642_v36  ;;  %v6914_v39 = vld [vmem:[%s8426_s4 + $0x350] sm:$0xff]  }
 0x1b9   : > { %6310 = vmatprep.subr.bf16.mxu1 %v6902_v21  ;;  %v6913_v36 = vld [vmem:[%s8426_s4 + $0xe0] sm:$0xff]  }
 0x1ba   : > { %6075 = vmatpush3.bf16.msra.mxu0 %v6901_v28  ;;  %v6908_v28 = vld [vmem:[%s8426_s4 + $0x338] sm:$0xff]  }
 0x1bb   : > { %6076 = vmatprep.subr.bf16.mxu0 %v6903_v11 }
 0x1bc   : > { %6311 = vmatpush3.bf16.msra.mxu1 %v6902_v21  ;;  %v6909_v21 = vld [vmem:[%s8426_s4 + $0xd0] sm:$0xff]  }
 0x1bd   : > { %6312 = vmatprep.subr.bf16.mxu1 %v6904_v38 }
 0x1be   : > { %6077 = vmatpush3.bf16.msra.mxu0 %v6903_v11  ;;  %v6911_v11 = vld [vmem:[%s8426_s4 + $0xd8] sm:$0xff]  }
 0x1bf   : > { %6086 = vmatprep.subr.bf16.mxu0 %v6905_v51 }
 0x1c0   : > { %6313 = vmatpush3.bf16.msra.mxu1 %v6904_v38 }
 0x1c1   : > { %6079 = vmatmul.mubr.bf16.vlgmr.msra.gmra.mrb[72].mxu0 %v1547_v61  ;;  %6314 = vmatprep.subr.bf16.mxu1 %v6906_v22  ;;  %v1688_v61 = vld [vmem:[#allocation2 + $0x3] sm:$0xff] }
 0x1c2   : > { %6082 = vmatprep.mubr.bf16.mxu0 %v7813_v60  ;;  %6087 = vmatpush3.bf16.msra.mxu0 %v6905_v51  ;;  %v1696_v38 = vpack.c.bf16 %v7579_v45, %v1688_v61  ;;  %v6912_v51 = vld [vmem:[%s8426_s4 + $0x348] sm:$0xff]   ;;  %v6917_v61 = vld [vmem:[%s8426_s4 + $0xf0] sm:$0xff]  }
 0x1c3   : > { %6088 = vmatprep.subr.bf16.mxu0 %v6907_v34 }
 0x1c4   : > { %6315 = vmatpush3.bf16.msra.mxu1 %v6906_v22  ;;  %v7845_v22 = vld [vmem:[#allocation2 + $0x6e] sm:$0xff] }
 0x1c5   : > { %6316 = vmatprep.subr.bf16.mxu1 %v6908_v28 }
 0x1c6   : > { %6089 = vmatpush3.bf16.msra.mxu0 %v6907_v34  ;;  %v6915_v34 = vld [vmem:[%s8426_s4 + $0xe8] sm:$0xff]  }
 0x1c7   : > { %6090 = vmatprep.subr.bf16.mxu0 %v6909_v21 }
 0x1c8   : > { %6317 = vmatpush3.bf16.msra.mxu1 %v6908_v28  ;;  %v7852_v28 = vpack.c.bf16 %v7845_v22, %v7658_v57  ;;  %v6918_v57 = vld [vmem:[%s8426_s4 + $0x360] sm:$0xff]  }
 0x1c9   : > { %6083 = vmatmul.mubr.bf16.gmra.mrb[76].mxu0 %v7827_v52  ;;  %6326 = vmatprep.subr.bf16.mxu1 %v6910_v6 }
 0x1ca   : > { %6091 = vmatpush3.bf16.msra.mxu0 %v6909_v21  ;;  %6102 = vmatprep.mubr.bf16.mxu0 %v1696_v38  ;;  %v6916_v21 = vld [vmem:[%s8426_s4 + $0x358] sm:$0xff]   ;;  %v6921_v38 = vld [vmem:[%s8426_s4 + $0x100] sm:$0xff]  }
 0x1cb   : > { %6319 = vmatmul.mubr.bf16.vlgmr.msra.gmra.mrb[0].mxu1 %v7813_v60  ;;  %6092 = vmatprep.subr.bf16.mxu0 %v6911_v11 }
 0x1cc   : > { %6322 = vmatprep.mubr.bf16.mxu1 %v7827_v52  ;;  %6327 = vmatpush3.bf16.msra.mxu1 %v6910_v6  ;;  %v1697_v6 = vpack.c.bf16 %v7623_v54, %v7562_v58  ;;  %v6919_v54 = vld [vmem:[%s8426_s4 + $0xf8] sm:$0xff]   ;;  %v6995_v58 = vld [vmem:[%s8426_s4 + $0x228] sm:$0xff]  }
 0x1cd   : > { %6328 = vmatprep.subr.bf16.mxu1 %v6912_v51 }
 0x1ce   : > { %6093 = vmatpush3.bf16.msra.mxu0 %v6911_v11  ;;  %v6920_v11 = vld [vmem:[%s8426_s4 + $0x368] sm:$0xff]  }
 0x1cf   : > { %6094 = vmatprep.subr.bf16.mxu0 %v6913_v36 }
 0x1d0   : > { %6329 = vmatpush3.bf16.msra.mxu1 %v6912_v51  ;;  %v6922_v51 = vld [vmem:[%s8426_s4 + $0x370] sm:$0xff]  }
 0x1d1   : > { %6330 = vmatprep.subr.bf16.mxu1 %v6914_v39 }
 0x1d2   : > { %6095 = vmatpush3.bf16.msra.mxu0 %v6913_v36  ;;  %v6923_v36 = vld [vmem:[%s8426_s4 + $0x108] sm:$0xff]  }
 0x1d3   : > { %6323 = vmatmul.mubr.bf16.gmra.mrb[4].mxu1 %v7852_v28  ;;  %6096 = vmatprep.subr.bf16.mxu0 %v6915_v34 }
 0x1d4   : > { %6331 = vmatpush3.bf16.msra.mxu1 %v6914_v39  ;;  %6342 = vmatprep.mubr.bf16.mxu1 %v1697_v6  ;;  %v7883_v39 = vpack.c.bf16 %v7633_v5, %v7612_v46  ;;  %v6926_v46 = vld [vmem:[%s8426_s4 + $0x380] sm:$0xff]  }
 0x1d5   : > { %6332 = vmatprep.subr.bf16.mxu1 %v6916_v21  ;;  %v1838_v5 = vld [vmem:[#allocation2 + $0x4] sm:$0xff] }
 0x1d6   : > { %6097 = vmatpush3.bf16.msra.mxu0 %v6915_v34  ;;  %v6924_v34 = vld [vmem:[%s8426_s4 + $0x378] sm:$0xff]  }
 0x1d7   : > { %6098 = vmatprep.subr.bf16.mxu0 %v6917_v61 }
 0x1d8   : > { %6333 = vmatpush3.bf16.msra.mxu1 %v6916_v21  ;;  %v6925_v21 = vld [vmem:[%s8426_s4 + $0x110] sm:$0xff]  }
 0x1d9   : > { %6334 = vmatprep.subr.bf16.mxu1 %v6918_v57 }
 0x1da   : > { %6099 = vmatpush3.bf16.msra.mxu0 %v6917_v61  ;;  %v6927_v61 = vld [vmem:[%s8426_s4 + $0x118] sm:$0xff]  }
 0x1db   : > { %6100 = vmatprep.subr.bf16.mxu0 %v6919_v54 }
 0x1dc   : > { %6335 = vmatpush3.bf16.msra.mxu1 %v6918_v57  ;;  %v1846_v57 = vpack.c.bf16 %v7458_v15, %v1838_v5  ;;  %v6937_v5 = vld [vmem:[%s8426_s4 + $0x140] sm:$0xff]  }
 0x1dd   : > { %6336 = vmatprep.subr.bf16.mxu1 %v6920_v11 }
 0x1de   : > { %6101 = vmatpush3.bf16.msra.mxu0 %v6919_v54  ;;  %v6928_v54 = vld [vmem:[%s8426_s4 + $0x388] sm:$0xff]  }
 0x1df   : > { %6110 = vmatprep.subr.bf16.mxu0 %v6921_v38 }
 0x1e0   : > { %6337 = vmatpush3.bf16.msra.mxu1 %v6920_v11  ;;  %v7915_v11 = vld [vmem:[#allocation2 + $0x6f] sm:$0xff] }
 0x1e1   : > { %6103 = vmatmul.mubr.bf16.vlgmr.msra.gmra.mrb[72].mxu0 %v1697_v6  ;;  %6338 = vmatprep.subr.bf16.mxu1 %v6922_v51  ;;  %v7897_v6 = vpack.c.bf16 %v7682_v20, %v7644_v55  ;;  %v6929_v55 = vld [vmem:[%s8426_s4 + $0x120] sm:$0xff]   ;;  %v6930_v20 = vld [vmem:[%s8426_s4 + $0x390] sm:$0xff]  }
 0x1e2   : > { %6106 = vmatprep.mubr.bf16.mxu0 %v7883_v39  ;;  %6111 = vmatpush3.bf16.msra.mxu0 %v6921_v38  ;;  %v6931_v38 = vld [vmem:[%s8426_s4 + $0x128] sm:$0xff]  }
 0x1e3   : > { %6112 = vmatprep.subr.bf16.mxu0 %v6923_v36 }
 0x1e4   : > { %6339 = vmatpush3.bf16.msra.mxu1 %v6922_v51  ;;  %v7922_v51 = vpack.c.bf16 %v7915_v11, %v7660_v50  ;;  %v6934_v50 = vld [vmem:[%s8426_s4 + $0x3a0] sm:$0xff]  }
 0x1e5   : > { %6340 = vmatprep.subr.bf16.mxu1 %v6924_v34 }
 0x1e6   : > { %6113 = vmatpush3.bf16.msra.mxu0 %v6923_v36  ;;  %v6932_v36 = vld [vmem:[%s8426_s4 + $0x398] sm:$0xff]  }
 0x1e7   : > { %6114 = vmatprep.subr.bf16.mxu0 %v6925_v21 }
 0x1e8   : > { %6341 = vmatpush3.bf16.msra.mxu1 %v6924_v34  ;;  %v1847_v34 = vpack.c.bf16 %v7635_v24, %v7564_v1  ;;  %v6935_v24 = vld [vmem:[%s8426_s4 + $0x138] sm:$0xff]  }
 0x1e9   : > { %6107 = vmatmul.mubr.bf16.gmra.mrb[76].mxu0 %v7897_v6  ;;  %6350 = vmatprep.subr.bf16.mxu1 %v6926_v46 }
 0x1ea   : > { %6115 = vmatpush3.bf16.msra.mxu0 %v6925_v21  ;;  %6126 = vmatprep.mubr.bf16.mxu0 %v1846_v57  ;;  %v6933_v21 = vld [vmem:[%s8426_s4 + $0x130] sm:$0xff]   ;;  %v6939_v57 = vld [vmem:[%s8426_s4 + $0x148] sm:$0xff]  }
 0x1eb   : > { %6343 = vmatmul.mubr.bf16.vlgmr.msra.gmra.mrb[0].mxu1 %v7883_v39  ;;  %6116 = vmatprep.subr.bf16.mxu0 %v6927_v61 }
 0x1ec   : > { %6346 = vmatprep.mubr.bf16.mxu1 %v7897_v6  ;;  %6351 = vmatpush3.bf16.msra.mxu1 %v6926_v46  ;;  %v6936_v46 = vld [vmem:[%s8426_s4 + $0x3a8] sm:$0xff]  }
 0x1ed   : > { %6352 = vmatprep.subr.bf16.mxu1 %v6928_v54 }
 0x1ee   : > { %6117 = vmatpush3.bf16.msra.mxu0 %v6927_v61  ;;  %v6938_v61 = vld [vmem:[%s8426_s4 + $0x3b0] sm:$0xff]  }
 0x1ef   : > { %6118 = vmatprep.subr.bf16.mxu0 %v6929_v55 }
 0x1f0   : > { %6353 = vmatpush3.bf16.msra.mxu1 %v6928_v54  ;;  %v7953_v54 = vpack.c.bf16 %v7701_v62, %v7614_v14  ;;  %v6942_v14 = vld [vmem:[%s8426_s4 + $0x3c0] sm:$0xff]   ;;  %v7967_v62 = vpack.c.bf16 %v7575_v19, %v7684_v37  ;;  %v6946_v37 = vld [vmem:[%s8426_s4 + $0x3d0] sm:$0xff]  }
 0x1f1   : > { %6354 = vmatprep.subr.bf16.mxu1 %v6930_v20  ;;  %v6945_v19 = vld [vmem:[%s8426_s4 + $0x160] sm:$0xff]  }
 0x1f2   : > { %6119 = vmatpush3.bf16.msra.mxu0 %v6929_v55  ;;  %v6940_v55 = vld [vmem:[%s8426_s4 + $0x3b8] sm:$0xff]  }
 0x1f3   : > { %6347 = vmatmul.mubr.bf16.gmra.mrb[4].mxu1 %v7922_v51  ;;  %6120 = vmatprep.subr.bf16.mxu0 %v6931_v38 }
 0x1f4   : > { %6355 = vmatpush3.bf16.msra.mxu1 %v6930_v20  ;;  %6366 = vmatprep.mubr.bf16.mxu1 %v1847_v34  ;;  %v6941_v20 = vld [vmem:[%s8426_s4 + $0x150] sm:$0xff]  }
 0x1f5   : > { %6356 = vmatprep.subr.bf16.mxu1 %v6932_v36 }
 0x1f6   : > { %6121 = vmatpush3.bf16.msra.mxu0 %v6931_v38  ;;  %v6943_v38 = vld [vmem:[%s8426_s4 + $0x158] sm:$0xff]  }
 0x1f7   : > { %6122 = vmatprep.subr.bf16.mxu0 %v6933_v21 }
 0x1f8   : > { %6357 = vmatpush3.bf16.msra.mxu1 %v6932_v36  ;;  %v6944_v36 = vld [vmem:[%s8426_s4 + $0x3c8] sm:$0xff]  }
 0x1f9   : > { %6358 = vmatprep.subr.bf16.mxu1 %v6934_v50 }
 0x1fa   : > { %6123 = vmatpush3.bf16.msra.mxu0 %v6933_v21  ;;  %v6952_v21 = vld [vmem:[%s8426_s4 + $0x3e8] sm:$0xff]  }
 0x1fb   : > { %6124 = vmatprep.subr.bf16.mxu0 %v6935_v24 }
 0x1fc   : > { %6359 = vmatpush3.bf16.msra.mxu1 %v6934_v50  ;;  %v6953_v50 = vld [vmem:[%s8426_s4 + $0x180] sm:$0xff]  }
 0x1fd   : > { %6360 = vmatprep.subr.bf16.mxu1 %v6936_v46 }
 0x1fe   : > { %6125 = vmatpush3.bf16.msra.mxu0 %v6935_v24  ;;  %v6954_v24 = vld [vmem:[%s8426_s4 + $0x3f0] sm:$0xff]  }
 0x1ff   : > { %6134 = vmatprep.subr.bf16.mxu0 %v6937_v5 }
 0x200   : > { %6361 = vmatpush3.bf16.msra.mxu1 %v6936_v46  ;;  %v6955_v46 = vld [vmem:[%s8426_s4 + $0x188] sm:$0xff]  }
 0x201   : > { %6127 = vmatmul.mubr.bf16.vlgmr.msra.gmra.mrb[72].mxu0 %v1847_v34  ;;  %6362 = vmatprep.subr.bf16.mxu1 %v6938_v61  ;;  %v6949_v34 = vld [vmem:[%s8426_s4 + $0x170] sm:$0xff]  }
 0x202   : > { %6130 = vmatprep.mubr.bf16.mxu0 %v7953_v54  ;;  %6135 = vmatpush3.bf16.msra.mxu0 %v6937_v5  ;;  %v6956_v5 = vld [vmem:[%s8426_s4 + $0x3f8] sm:$0xff]  }
 0x203   : > { %6136 = vmatprep.subr.bf16.mxu0 %v6939_v57 }
 0x204   : > { %6363 = vmatpush3.bf16.msra.mxu1 %v6938_v61  ;;  %v6957_v61 = vld [vmem:[%s8426_s4 + $0x190] sm:$0xff]  }
 0x205   : > { %6364 = vmatprep.subr.bf16.mxu1 %v6940_v55 }
 0x206   : > { %6137 = vmatpush3.bf16.msra.mxu0 %v6939_v57  ;;  %v6958_v57 = vld [vmem:[%s8426_s4 + $0x400] sm:$0xff]  }
 0x207   : > { %6138 = vmatprep.subr.bf16.mxu0 %v6941_v20 }
 0x208   : > { %6365 = vmatpush3.bf16.msra.mxu1 %v6940_v55  ;;  %v6960_v55 = vld [vmem:[%s8426_s4 + $0x408] sm:$0xff]  }
 0x209   : > { %6131 = vmatmul.mubr.bf16.gmra.mrb[76].mxu0 %v7967_v62  ;;  %6374 = vmatprep.subr.bf16.mxu1 %v6942_v14 }
 0x20a   : > { %6139 = vmatpush3.bf16.msra.mxu0 %v6941_v20  ;;  %6150 = vmatprep.mubr.bf16.mxu0 %v1989_v53  ;;  %v6948_v53 = vld [vmem:[%s8426_s4 + $0x3d8] sm:$0xff]   ;;  %v6961_v20 = vld [vmem:[%s8426_s4 + $0x1a0] sm:$0xff]  }
 0x20b   : > { %6367 = vmatmul.mubr.bf16.vlgmr.msra.gmra.mrb[0].mxu1 %v7953_v54  ;;  %6140 = vmatprep.subr.bf16.mxu0 %v6943_v38 }
 0x20c   : > { %6370 = vmatprep.mubr.bf16.mxu1 %v7967_v62  ;;  %6375 = vmatpush3.bf16.msra.mxu1 %v6942_v14  ;;  %v6962_v14 = vld [vmem:[%s8426_s4 + $0x410] sm:$0xff]  }
 0x20d   : > { %6376 = vmatprep.subr.bf16.mxu1 %v6944_v36 }
 0x20e   : > { %6141 = vmatpush3.bf16.msra.mxu0 %v6943_v38  ;;  %v8049_v38 = vld [vmem:[#allocation2 + $0x78] sm:$0xff] }
 0x20f   : > { %6142 = vmatprep.subr.bf16.mxu0 %v6945_v19  ;;  %v3404_v26 = vpack.c.bf16 %v8049_v38, %v7722_v43  ;;  %v6967_v43 = vld [vmem:[%s8426_s4 + $0x1b8] sm:$0xff]  }
 0x210   : > { %6377 = vmatpush3.bf16.msra.mxu1 %v6944_v36  ;;  %v6968_v36 = vld [vmem:[%s8426_s4 + $0x428] sm:$0xff]  }
 0x211   : > { %6378 = vmatprep.subr.bf16.mxu1 %v6946_v37 }
 0x212   : > { %6143 = vmatpush3.bf16.msra.mxu0 %v6945_v19  ;;  %v6969_v19 = vld [vmem:[%s8426_s4 + $0x1c0] sm:$0xff]  }
 0x213   : > { %6371 = vmatmul.mubr.bf16.gmra.mrb[4].mxu1 %v7992_v47  ;;  %6144 = vmatprep.subr.bf16.mxu0 %v6947_v7 }
 0x214   : > { %6379 = vmatpush3.bf16.msra.mxu1 %v6946_v37  ;;  %6390 = vmatprep.mubr.bf16.mxu1 %v7534_v13  ;;  %v6970_v37 = vld [vmem:[%s8426_s4 + $0x430] sm:$0xff]  }
 0x215   : > { %6380 = vmatprep.subr.bf16.mxu1 %v6948_v53 }
 0x216   : > { %6145 = vmatpush3.bf16.msra.mxu0 %v6947_v7  ;;  %v6971_v7 = vld [vmem:[%s8426_s4 + $0x1c8] sm:$0xff]  }
 0x217   : > { %6146 = vmatprep.subr.bf16.mxu0 %v6949_v34 }
 0x218   : > { %6381 = vmatpush3.bf16.msra.mxu1 %v6948_v53  ;;  %v6972_v53 = vld [vmem:[%s8426_s4 + $0x438] sm:$0xff]  }
 0x219   : > { %6382 = vmatprep.subr.bf16.mxu1 %v6950_v56 }
 0x21a   : > { %6147 = vmatpush3.bf16.msra.mxu0 %v6949_v34  ;;  %v6973_v34 = vld [vmem:[%s8426_s4 + $0x1d0] sm:$0xff]  }
 0x21b   : > { %6148 = vmatprep.subr.bf16.mxu0 %v6951_v48 }
 0x21c   : > { %6383 = vmatpush3.bf16.msra.mxu1 %v6950_v56  ;;  %v6974_v56 = vld [vmem:[%s8426_s4 + $0x440] sm:$0xff]  }
 0x21d   : > { %6384 = vmatprep.subr.bf16.mxu1 %v6952_v21 }
 0x21e   : > { %6149 = vmatpush3.bf16.msra.mxu0 %v6951_v48  ;;  %v6976_v48 = vld [vmem:[%s8426_s4 + $0x448] sm:$0xff]  }
 0x21f   : > { %6158 = vmatprep.subr.bf16.mxu0 %v6953_v50 }
 0x220   : > { %6385 = vmatpush3.bf16.msra.mxu1 %v6952_v21  ;;  %v6977_v21 = vld [vmem:[%s8426_s4 + $0x1e0] sm:$0xff]  }
 0x221   : > { %6151 = vmatmul.mubr.bf16.vlgmr.msra.gmra.mrb[72].mxu0 %v7534_v13  ;;  %6386 = vmatprep.subr.bf16.mxu1 %v6954_v24  ;;  %v6959_v13 = vld [vmem:[%s8426_s4 + $0x198] sm:$0xff]  }
 0x222   : > { %6154 = vmatprep.mubr.bf16.mxu0 %v7604_v16  ;;  %6159 = vmatpush3.bf16.msra.mxu0 %v6953_v50  ;;  %v6978_v50 = vld [vmem:[%s8426_s4 + $0x450] sm:$0xff]  }
 0x223   : > { %6160 = vmatprep.subr.bf16.mxu0 %v6955_v46 }
 0x224   : > { %6387 = vmatpush3.bf16.msra.mxu1 %v6954_v24  ;;  %v8110_v24 = vld [vmem:[#allocation2 + $0x79] sm:$0xff] }
 0x225   : > { %6388 = vmatprep.subr.bf16.mxu1 %v6956_v5  ;;  %v3544_v3 = vpack.c.bf16 %v8110_v24, %v7772_v0  ;;  %v6983_v0 = vld [vmem:[%s8426_s4 + $0x1f8] sm:$0xff]  }
 0x226   : > { %6161 = vmatpush3.bf16.msra.mxu0 %v6955_v46  ;;  %v6984_v46 = vld [vmem:[%s8426_s4 + $0x468] sm:$0xff]  }
 0x227   : > { %6162 = vmatprep.subr.bf16.mxu0 %v6957_v61 }
 0x228   : > { %6389 = vmatpush3.bf16.msra.mxu1 %v6956_v5  ;;  %v6985_v5 = vld [vmem:[%s8426_s4 + $0x200] sm:$0xff]  }
 0x229   : > { %6155 = vmatmul.mubr.bf16.gmra.mrb[76].mxu0 %v7692_v42  ;;  %6398 = vmatprep.subr.bf16.mxu1 %v6958_v57 }
 0x22a   : > { %6163 = vmatpush3.bf16.msra.mxu0 %v6957_v61  ;;  %6174 = vmatprep.mubr.bf16.mxu0 %v2132_v4  ;;  %v6964_v4 = vld [vmem:[%s8426_s4 + $0x418] sm:$0xff]   ;;  %v6986_v61 = vld [vmem:[%s8426_s4 + $0x470] sm:$0xff]  }
 0x22b   : > { %6391 = vmatmul.mubr.bf16.vlgmr.msra.gmra.mrb[0].mxu1 %v7604_v16  ;;  %6164 = vmatprep.subr.bf16.mxu0 %v6959_v13  ;;  %v6965_v16 = vld [vmem:[%s8426_s4 + $0x1b0] sm:$0xff]  }
 0x22c   : > { %6394 = vmatprep.mubr.bf16.mxu1 %v7692_v42  ;;  %6399 = vmatpush3.bf16.msra.mxu1 %v6958_v57  ;;  %v6966_v42 = vld [vmem:[%s8426_s4 + $0x420] sm:$0xff]   ;;  %v6987_v57 = vld [vmem:[%s8426_s4 + $0x208] sm:$0xff]  }
 0x22d   : > { %6400 = vmatprep.subr.bf16.mxu1 %v6960_v55 }
 0x22e   : > { %6165 = vmatpush3.bf16.msra.mxu0 %v6959_v13  ;;  %v6988_v13 = vld [vmem:[%s8426_s4 + $0x478] sm:$0xff]  }
 0x22f   : > { %6166 = vmatprep.subr.bf16.mxu0 %v6961_v20 }
 0x230   : > { %6401 = vmatpush3.bf16.msra.mxu1 %v6960_v55  ;;  %v6989_v55 = vld [vmem:[%s8426_s4 + $0x210] sm:$0xff]  }
 0x231   : > { %6402 = vmatprep.subr.bf16.mxu1 %v6962_v14 }
 0x232   : > { %6167 = vmatpush3.bf16.msra.mxu0 %v6961_v20  ;;  %v6990_v20 = vld [vmem:[%s8426_s4 + $0x480] sm:$0xff]  }
 0x233   : > { %6395 = vmatmul.mubr.bf16.gmra.mrb[4].mxu1 %v3404_v26  ;;  %6168 = vmatprep.subr.bf16.mxu0 %v6963_v23  ;;  %v6994_v26 = vld [vmem:[%s8426_s4 + $0x490] sm:$0xff]  }
 0x234   : > { %6403 = vmatpush3.bf16.msra.mxu1 %v6962_v14  ;;  %6414 = vmatprep.mubr.bf16.mxu1 %v7626_v8  ;;  %v6992_v14 = vld [vmem:[%s8426_s4 + $0x488] sm:$0xff]  }
 0x235   : > { %6404 = vmatprep.subr.bf16.mxu1 %v6964_v4 }
 0x236   : > { %6169 = vmatpush3.bf16.msra.mxu0 %v6963_v23  ;;  %v6993_v23 = vld [vmem:[%s8426_s4 + $0x220] sm:$0xff]  }
 0x237   : > { %6170 = vmatprep.subr.bf16.mxu0 %v6965_v16 }
 0x238   : > { %6405 = vmatpush3.bf16.msra.mxu1 %v6964_v4  ;;  %v8171_v4 = vld [vmem:[#allocation2 + $0x7a] sm:$0xff] }
 0x239   : > { %6406 = vmatprep.subr.bf16.mxu1 %v6966_v42  ;;  %v3684_v45 = vpack.c.bf16 %v8171_v4, %v7845_v22  ;;  %v6999_v22 = vld [vmem:[%s8426_s4 + $0x238] sm:$0xff]  }
 0x23a   : > { %6171 = vmatpush3.bf16.msra.mxu0 %v6965_v16  ;;  %v7000_v16 = vld [vmem:[%s8426_s4 + $0x4a8] sm:$0xff]  }
 0x23b   : > { %6172 = vmatprep.subr.bf16.mxu0 %v6967_v43 }
 0x23c   : > { %6407 = vmatpush3.bf16.msra.mxu1 %v6966_v42  ;;  %v7001_v42 = vld [vmem:[%s8426_s4 + $0x240] sm:$0xff]  }
 0x23d   : > { %6408 = vmatprep.subr.bf16.mxu1 %v6968_v36 }
 0x23e   : > { %6173 = vmatpush3.bf16.msra.mxu0 %v6967_v43  ;;  %v7002_v43 = vld [vmem:[%s8426_s4 + $0x4b0] sm:$0xff]  }
 0x23f   : > { %6182 = vmatprep.subr.bf16.mxu0 %v6969_v19 }
 0x240   : > { %6409 = vmatpush3.bf16.msra.mxu1 %v6968_v36  ;;  %v7003_v36 = vld [vmem:[%s8426_s4 + $0x248] sm:$0xff]  }
 0x241   : > { %6175 = vmatmul.mubr.bf16.vlgmr.msra.gmra.mrb[72].mxu0 %v7626_v8  ;;  %6410 = vmatprep.subr.bf16.mxu1 %v6970_v37  ;;  %v6975_v8 = vld [vmem:[%s8426_s4 + $0x1d8] sm:$0xff]  }
 0x242   : > { %6178 = vmatprep.mubr.bf16.mxu0 %v7662_v17  ;;  %6183 = vmatpush3.bf16.msra.mxu0 %v6969_v19  ;;  %v7004_v19 = vld [vmem:[%s8426_s4 + $0x4b8] sm:$0xff]  }
 0x243   : > { %6184 = vmatprep.subr.bf16.mxu0 %v6971_v7 }
 0x244   : > { %6411 = vmatpush3.bf16.msra.mxu1 %v6970_v37  ;;  %v7005_v37 = vld [vmem:[%s8426_s4 + $0x250] sm:$0xff]  }
 0x245   : > { %6412 = vmatprep.subr.bf16.mxu1 %v6972_v53 }
 0x246   : > { %6185 = vmatpush3.bf16.msra.mxu0 %v6971_v7  ;;  %v7006_v7 = vld [vmem:[%s8426_s4 + $0x4c0] sm:$0xff]  }
 0x247   : > { %6186 = vmatprep.subr.bf16.mxu0 %v6973_v34 }
 0x248   : > { %6413 = vmatpush3.bf16.msra.mxu1 %v6972_v53  ;;  %v7008_v53 = vld [vmem:[%s8426_s4 + $0x4c8] sm:$0xff]  }
 0x249   : > { %6179 = vmatmul.mubr.bf16.gmra.mrb[76].mxu0 %v7695_v44  ;;  %6422 = vmatprep.subr.bf16.mxu1 %v6974_v56 }
 0x24a   : > { %6187 = vmatpush3.bf16.msra.mxu0 %v6973_v34  ;;  %6198 = vmatprep.mubr.bf16.mxu0 %v2275_v30  ;;  %v6980_v30 = vld [vmem:[%s8426_s4 + $0x458] sm:$0xff]   ;;  %v8430_v34 = vpack.c.bf16 %v7564_v1, %v7458_v15  ;;  %v7011_v15 = vld [vmem:[%s8426_s4 + $0x268] sm:$0xff]  }
 0x24b   : > { %6415 = vmatmul.mubr.bf16.vlgmr.msra.gmra.mrb[0].mxu1 %v7662_v17  ;;  %6188 = vmatprep.subr.bf16.mxu0 %v6975_v8  ;;  %v6981_v17 = vld [vmem:[%s8426_s4 + $0x1f0] sm:$0xff]  }
 0x24c   : > { %6418 = vmatprep.mubr.bf16.mxu1 %v7695_v44  ;;  %6423 = vmatpush3.bf16.msra.mxu1 %v6974_v56  ;;  %v6982_v44 = vld [vmem:[%s8426_s4 + $0x460] sm:$0xff]  }
 0x24d   : > { %6424 = vmatprep.subr.bf16.mxu1 %v6976_v48  ;;  %v7009_v56 = vld [vmem:[%s8426_s4 + $0x260] sm:$0xff]  }
 0x24e   : > { %6189 = vmatpush3.bf16.msra.mxu0 %v6975_v8  ;;  %v7010_v8 = vld [vmem:[%s8426_s4 + $0x4d0] sm:$0xff]  }
 0x24f   : > { %6190 = vmatprep.subr.bf16.mxu0 %v6977_v21 }
 0x250   : > { %6425 = vmatpush3.bf16.msra.mxu1 %v6976_v48  ;;  %v8232_v48 = vld [vmem:[#allocation2 + $0x7b] sm:$0xff] }
 0x251   : > { %6426 = vmatprep.subr.bf16.mxu1 %v6978_v50  ;;  %v3824_v1 = vpack.c.bf16 %v8232_v48, %v7915_v11  ;;  %v7014_v11 = vld [vmem:[%s8426_s4 + $0x4e0] sm:$0xff]  }
 0x252   : > { %6191 = vmatpush3.bf16.msra.mxu0 %v6977_v21  ;;  %v7015_v21 = vld [vmem:[%s8426_s4 + $0x278] sm:$0xff]  }
 0x253   : > { %6419 = vmatmul.mubr.bf16.gmra.mrb[4].mxu1 %v3544_v3  ;;  %6192 = vmatprep.subr.bf16.mxu0 %v6979_v18  ;;  %v7018_v3 = vld [vmem:[%s8426_s4 + $0x4f8] sm:$0xff]  }
 0x254   : > { %6427 = vmatpush3.bf16.msra.mxu1 %v6978_v50  ;;  %6438 = vmatprep.mubr.bf16.mxu1 %v7639_v2  ;;  %v7016_v50 = vld [vmem:[%s8426_s4 + $0x4e8] sm:$0xff]  }
 0x255   : > { %6428 = vmatprep.subr.bf16.mxu1 %v6980_v30 }
 0x256   : > { %6193 = vmatpush3.bf16.msra.mxu0 %v6979_v18  ;;  %v7017_v18 = vld [vmem:[%s8426_s4 + $0x4f0] sm:$0xff]  }
 0x257   : > { %6194 = vmatprep.subr.bf16.mxu0 %v6981_v17 }
 0x258   : > { %6429 = vmatpush3.bf16.msra.mxu1 %v6980_v30  ;;  %v7019_v30 = vld [vmem:[%s8426_s4 + $0x500] sm:$0xff]  }
 0x259   : > { %6430 = vmatprep.subr.bf16.mxu1 %v6982_v44 }
 0x25a   : > { %6195 = vmatpush3.bf16.msra.mxu0 %v6981_v17  ;;  %v7021_v17 = vld [vmem:[%s8426_s4 + $0x510] sm:$0xff]  }
 0x25b   : > { %6196 = vmatprep.subr.bf16.mxu0 %v6983_v0 }
 0x25c   : > { %6431 = vmatpush3.bf16.msra.mxu1 %v6982_v44  ;;  %v8275_v44 = vld [vmem:[#allocation2 + $0x7c] sm:$0xff] }
 0x25d   : > { %6432 = vmatprep.subr.bf16.mxu1 %v6984_v46 }
 0x25e   : > { %6197 = vmatpush3.bf16.msra.mxu0 %v6983_v0  ;;  %v7059_v0 = vld [vmem:[#allocation2 + $0x70] sm:$0xff] }
 0x25f   : > { %6206 = vmatprep.subr.bf16.mxu0 %v6985_v5 }
 0x260   : > { %6433 = vmatpush3.bf16.msra.mxu1 %v6984_v46  ;;  %v3964_v46 = vpack.c.bf16 %v8275_v44, %v7059_v0 }
 0x261   : > { %6199 = vmatmul.mubr.bf16.vlgmr.msra.gmra.mrb[72].mxu0 %v7639_v2  ;;  %6434 = vmatprep.subr.bf16.mxu1 %v6986_v61  ;;  %v6991_v2 = vld [vmem:[%s8426_s4 + $0x218] sm:$0xff]  }
 0x262   : > { %6202 = vmatprep.mubr.bf16.mxu0 %v7666_v12  ;;  %6207 = vmatpush3.bf16.msra.mxu0 %v6985_v5  ;;  %v7022_v5 = vld [vmem:[%s8426_s4 + $0x518] sm:$0xff]  }
 0x263   : > { %6208 = vmatprep.subr.bf16.mxu0 %v6987_v57 }
 0x264   : > { %6435 = vmatpush3.bf16.msra.mxu1 %v6986_v61  ;;  %v7025_v61 = vld [vmem:[%s8426_s4 + $0x530] sm:$0xff]  }
 0x265   : > { %6436 = vmatprep.subr.bf16.mxu1 %v6988_v13 }
 0x266   : > { %6209 = vmatpush3.bf16.msra.mxu0 %v6987_v57  ;;  %v7027_v57 = vld [vmem:[%s8426_s4 + $0x540] sm:$0xff]  }
 0x267   : > { %6210 = vmatprep.subr.bf16.mxu0 %v6989_v55 }
 0x268   : > { %6437 = vmatpush3.bf16.msra.mxu1 %v6988_v13  ;;  %v7028_v13 = vld [vmem:[%s8426_s4 + $0x548] sm:$0xff]  }
 0x269   : > { %6203 = vmatmul.mubr.bf16.gmra.mrb[76].mxu0 %v7705_v31  ;;  %6446 = vmatprep.subr.bf16.mxu1 %v6990_v20 }
 0x26a   : > { %6211 = vmatpush3.bf16.msra.mxu0 %v6989_v55  ;;  %6222 = vmatprep.mubr.bf16.mxu0 %v2418_v33  ;;  %v6996_v33 = vld [vmem:[%s8426_s4 + $0x498] sm:$0xff]   ;;  %v7029_v55 = vld [vmem:[%s8426_s4 + $0x550] sm:$0xff]  }
 0x26b   : > { %6439 = vmatmul.mubr.bf16.vlgmr.msra.gmra.mrb[0].mxu1 %v7666_v12  ;;  %6212 = vmatprep.subr.bf16.mxu0 %v6991_v2  ;;  %v6997_v12 = vld [vmem:[%s8426_s4 + $0x230] sm:$0xff]  }
 0x26c   : > { %6442 = vmatprep.mubr.bf16.mxu1 %v7705_v31  ;;  %6447 = vmatpush3.bf16.msra.mxu1 %v6990_v20  ;;  %v6998_v31 = vld [vmem:[%s8426_s4 + $0x4a0] sm:$0xff]  }
 0x26d   : > { %6448 = vmatprep.subr.bf16.mxu1 %v6992_v14  ;;  %v4103_v20 = vld [vmem:[#allocation2 + $0x84] sm:$0xff] }
 0x26e   : > { %6213 = vmatpush3.bf16.msra.mxu0 %v6991_v2  ;;  %v4104_v2 = vpack.c.bf16 %v4103_v20, %v8049_v38  ;;  %v7033_v38 = vld [vmem:[%s8426_s4 + $0x570] sm:$0xff]  }
 0x26f   : > { %6214 = vmatprep.subr.bf16.mxu0 %v6993_v23 }
 0x270   : > { %6449 = vmatpush3.bf16.msra.mxu1 %v6992_v14  ;;  %v7030_v14 = vld [vmem:[%s8426_s4 + $0x558] sm:$0xff]  }
 0x271   : > { %6450 = vmatprep.subr.bf16.mxu1 %v6994_v26 }
 0x272   : > { %6215 = vmatpush3.bf16.msra.mxu0 %v6993_v23  ;;  %v7035_v23 = vld [vmem:[%s8426_s4 + $0x580] sm:$0xff]  }
 0x273   : > { %6443 = vmatmul.mubr.bf16.gmra.mrb[4].mxu1 %v3684_v45  ;;  %6216 = vmatprep.subr.bf16.mxu0 %v6995_v58  ;;  %v4243_v45 = vld [vmem:[#allocation2 + $0x85] sm:$0xff] }
 0x274   : > { %6451 = vmatpush3.bf16.msra.mxu1 %v6994_v26  ;;  %6462 = vmatprep.mubr.bf16.mxu1 %v7648_v29  ;;  %v7036_v26 = vld [vmem:[%s8426_s4 + $0x588] sm:$0xff]  }
 0x275   : > { %6452 = vmatprep.subr.bf16.mxu1 %v6996_v33 }
 0x276   : > { %6217 = vmatpush3.bf16.msra.mxu0 %v6995_v58  ;;  %v7037_v58 = vld [vmem:[%s8426_s4 + $0x590] sm:$0xff]  }
 0x277   : > { %6218 = vmatprep.subr.bf16.mxu0 %v6997_v12 }
 0x278   : > { %6453 = vmatpush3.bf16.msra.mxu1 %v6996_v33  ;;  %v4244_v33 = vpack.c.bf16 %v4243_v45, %v8110_v24  ;;  %v7041_v24 = vld [vmem:[%s8426_s4 + $0x5b0] sm:$0xff]  }
 0x279   : > { %6454 = vmatprep.subr.bf16.mxu1 %v6998_v31 }
 0x27a   : > { %6219 = vmatpush3.bf16.msra.mxu0 %v6997_v12  ;;  %v7038_v12 = vld [vmem:[%s8426_s4 + $0x598] sm:$0xff]  }
 0x27b   : > { %6220 = vmatprep.subr.bf16.mxu0 %v6999_v22 }
 0x27c   : > { %6455 = vmatpush3.bf16.msra.mxu1 %v6998_v31  ;;  %v7043_v31 = vld [vmem:[%s8426_s4 + $0x5c0] sm:$0xff]  }
 0x27d   : > { %6456 = vmatprep.subr.bf16.mxu1 %v7000_v16 }
 0x27e   : > { %6221 = vmatpush3.bf16.msra.mxu0 %v6999_v22  ;;  %v7044_v22 = vld [vmem:[%s8426_s4 + $0x5c8] sm:$0xff]  }
 0x27f   : > { %6230 = vmatprep.subr.bf16.mxu0 %v7001_v42 }
 0x280   : > { %6457 = vmatpush3.bf16.msra.mxu1 %v7000_v16  ;;  %v7045_v16 = vld [vmem:[%s8426_s4 + $0x5d0] sm:$0xff]  }
 0x281   : > { %6223 = vmatmul.mubr.bf16.vlgmr.msra.gmra.mrb[72].mxu0 %v7648_v29  ;;  %6458 = vmatprep.subr.bf16.mxu1 %v7002_v43  ;;  %v7007_v29 = vld [vmem:[%s8426_s4 + $0x258] sm:$0xff]  }
 0x282   : > { %6226 = vmatprep.mubr.bf16.mxu0 %v7670_v9  ;;  %6231 = vmatpush3.bf16.msra.mxu0 %v7001_v42  ;;  %v4383_v42 = vld [vmem:[#allocation2 + $0x86] sm:$0xff] }
 0x283   : > { %6232 = vmatprep.subr.bf16.mxu0 %v7003_v36 }
 0x284   : > { %6459 = vmatpush3.bf16.msra.mxu1 %v7002_v43  ;;  %v4384_v43 = vpack.c.bf16 %v4383_v42, %v8171_v4  ;;  %v7049_v4 = vld [vmem:[%s8426_s4 + $0x5f0] sm:$0xff]  }
 0x285   : > { %6460 = vmatprep.subr.bf16.mxu1 %v7004_v19 }
 0x286   : > { %6233 = vmatpush3.bf16.msra.mxu0 %v7003_v36  ;;  %v7046_v36 = vld [vmem:[%s8426_s4 + $0x5d8] sm:$0xff]  }
 0x287   : > { %6234 = vmatprep.subr.bf16.mxu0 %v7005_v37 }
 0x288   : > { %6461 = vmatpush3.bf16.msra.mxu1 %v7004_v19  ;;  %v7051_v19 = vld [vmem:[%s8426_s4 + $0x600] sm:$0xff]  }
 0x289   : > { %6227 = vmatmul.mubr.bf16.gmra.mrb[76].mxu0 %v7709_v27  ;;  %6470 = vmatprep.subr.bf16.mxu1 %v7006_v7 }
 0x28a   : > { %6235 = vmatpush3.bf16.msra.mxu0 %v7005_v37  ;;  %6246 = vmatprep.mubr.bf16.mxu0 %v8430_v34  ;;  %v7052_v37 = vld [vmem:[%s8426_s4 + $0x608] sm:$0xff]   ;;  %v7054_v34 = vld [vmem:[%s8426_s4 + $0x618] sm:$0xff]  }
 0x28b   : > { %6463 = vmatmul.mubr.bf16.vlgmr.msra.gmra.mrb[0].mxu1 %v7670_v9  ;;  %6236 = vmatprep.subr.bf16.mxu0 %v7007_v29  ;;  %v7012_v9 = vld [vmem:[%s8426_s4 + $0x4d8] sm:$0xff]  }
 0x28c   : > { %6466 = vmatprep.mubr.bf16.mxu1 %v7709_v27  ;;  %6471 = vmatpush3.bf16.msra.mxu1 %v7006_v7  ;;  %v7013_v27 = vld [vmem:[%s8426_s4 + $0x270] sm:$0xff]  }
 0x28d   : > { %6472 = vmatprep.subr.bf16.mxu1 %v7008_v53  ;;  %v7053_v7 = vld [vmem:[%s8426_s4 + $0x610] sm:$0xff]  }
 0x28e   : > { %6237 = vmatpush3.bf16.msra.mxu0 %v7007_v29  ;;  %v4523_v29 = vld [vmem:[#allocation2 + $0x87] sm:$0xff] }
 0x28f   : > { %6238 = vmatprep.subr.bf16.mxu0 %v7009_v56 }
 0x290   : > { %6473 = vmatpush3.bf16.msra.mxu1 %v7008_v53  ;;  %v4524_v53 = vpack.c.bf16 %v4523_v29, %v8232_v48 }
 0x291   : > { %6474 = vmatprep.subr.bf16.mxu1 %v7010_v8 }
 0x292   : > { %6239 = vmatpush3.bf16.msra.mxu0 %v7009_v56  ;;  %v7057_v56 = vld [vmem:[%s8426_s4 + $0x630] sm:$0xff]  }
 0x293   : > { %6467 = vmatmul.mubr.bf16.gmra.mrb[4].mxu1 %v3824_v1  ;;  %6240 = vmatprep.subr.bf16.mxu0 %v7011_v15 }
 0x294   : > { %6475 = vmatpush3.bf16.msra.mxu1 %v7010_v8  ;;  %6486 = vmatprep.mubr.bf16.mxu1 %v7652_v10  ;;  %v4663_v8 = vld [vmem:[#allocation2 + $0x88] sm:$0xff] }
 0x295   : > { %6476 = vmatprep.subr.bf16.mxu1 %v7012_v9  ;;  %v4664_v48 = vpack.c.bf16 %v4663_v8, %v8275_v44 }
 0x296   : > { %6241 = vmatpush3.bf16.msra.mxu0 %v7011_v15 }
 0x297   : > { %6242 = vmatprep.subr.bf16.mxu0 %v7013_v27 }
 0x298   : > { %6477 = vmatpush3.bf16.msra.mxu1 %v7012_v9 }
 0x299   : > { %6478 = vmatprep.subr.bf16.mxu1 %v7014_v11 }
 0x29a   : > { %6243 = vmatpush3.bf16.msra.mxu0 %v7013_v27 }
 0x29b   : > { %6244 = vmatprep.subr.bf16.mxu0 %v7015_v21 }
 0x29c   : > { %6479 = vmatpush3.bf16.msra.mxu1 %v7014_v11 }
 0x29d   : > { %6480 = vmatprep.subr.bf16.mxu1 %v7016_v50 }
 0x29e   : > { %6245 = vmatpush3.bf16.msra.mxu0 %v7015_v21 }
 0x2a0   : > { %6481 = vmatpush3.bf16.msra.mxu1 %v7016_v50 }
 0x2a1   : > { %6247 = vmatmul.mubr.bf16.vlgmr.msra.gmra.mrb[72].mxu0 %v7652_v10  ;;  %6482 = vmatprep.subr.bf16.mxu1 %v7017_v18  ;;  %v7020_v10 = vld [vmem:[%s8426_s4 + $0x508] sm:$0xff]  }
 0x2a2   : > { %6250 = vmatprep.mubr.bf16.mxu0 %v7713_v40 }
 0x2a4   : > { %6483 = vmatpush3.bf16.msra.mxu1 %v7017_v18 }
 0x2a5   : > { %6484 = vmatprep.subr.bf16.mxu1 %v7018_v3 }
 0x2a8   : > { %6485 = vmatpush3.bf16.msra.mxu1 %v7018_v3 }
 0x2a9   : > { %6251 = vmatmul.mubr.bf16.gmra.mrb[76].mxu0 %v7717_v59  ;;  %6494 = vmatprep.subr.bf16.mxu1 %v7019_v30 }
 0x2ab   : > { %6487 = vmatmul.mubr.bf16.vlgmr.msra.gmra.mrb[0].mxu1 %v7713_v40  ;;  %v7023_v40 = vld [vmem:[%s8426_s4 + $0x520] sm:$0xff]  }
 0x2ac   : > { %6490 = vmatprep.mubr.bf16.mxu1 %v7717_v59  ;;  %6495 = vmatpush3.bf16.msra.mxu1 %v7019_v30  ;;  %v7024_v59 = vld [vmem:[%s8426_s4 + $0x528] sm:$0xff]   ;;  %v5558_v30 = vld [vmem:[%s8427_s5] ss:$0 sm:$0xff] }
 0x2ad   : > { %6496 = vmatprep.subr.bf16.mxu1 %v7020_v10 }
 0x2b0   : > { %6497 = vmatpush3.bf16.msra.mxu1 %v7020_v10 }
 0x2b1   : > { %6498 = vmatprep.subr.bf16.mxu1 %v7021_v17 }
 0x2b3   : > { %6491 = vmatmul.mubr.bf16.gmra.mrb[4].mxu1 %v3964_v46 }
 0x2b4   : > { %6499 = vmatpush3.bf16.msra.mxu1 %v7021_v17  ;;  %6510 = vmatprep.mubr.bf16.mxu1 %v7593_v41  ;;  %v7026_v41 = vld [vmem:[%s8426_s4 + $0x538] sm:$0xff]  }
 0x2b5   : > { %6500 = vmatprep.subr.bf16.mxu1 %v7022_v5 }
 0x2b8   : > { %6501 = vmatpush3.bf16.msra.mxu1 %v7022_v5 }
 0x2b9   : > { %6502 = vmatprep.subr.bf16.mxu1 %v7023_v40 }
 0x2bc   : > { %6503 = vmatpush3.bf16.msra.mxu1 %v7023_v40 }
 0x2bd   : > { %6504 = vmatprep.subr.bf16.mxu1 %v7024_v59 }
 0x2c0   : > { %6505 = vmatpush3.bf16.msra.mxu1 %v7024_v59 }
 0x2c1   : > { %6506 = vmatprep.subr.bf16.mxu1 %v7025_v61 }
 0x2c4   : > { %6507 = vmatpush3.bf16.msra.mxu1 %v7025_v61 }
 0x2c5   : > { %6508 = vmatprep.subr.bf16.mxu1 %v7026_v41 }
 0x2c8   : > { %6509 = vmatpush3.bf16.msra.mxu1 %v7026_v41 }
 0x2c9   : > { %6518 = vmatprep.subr.bf16.mxu1 %v7027_v57 }
 0x2cb   : > { %6511 = vmatmul.mubr.bf16.vlgmr.msra.gmra.mrb[0].mxu1 %v7677_v49  ;;  %v7031_v49 = vld [vmem:[%s8426_s4 + $0x560] sm:$0xff]  }
 0x2cc   : > { %6514 = vmatprep.mubr.bf16.mxu1 %v7729_v25  ;;  %6519 = vmatpush3.bf16.msra.mxu1 %v7027_v57  ;;  %v7032_v25 = vld [vmem:[%s8426_s4 + $0x568] sm:$0xff]  }
 0x2cd   : > { %6520 = vmatprep.subr.bf16.mxu1 %v7028_v13 }
 0x2d0   : > { %6521 = vmatpush3.bf16.msra.mxu1 %v7028_v13 }
 0x2d1   : > { %6522 = vmatprep.subr.bf16.mxu1 %v7029_v55 }
 0x2d3   : > { %6515 = vmatmul.mubr.bf16.gmra.mrb[4].mxu1 %v4104_v2 }
 0x2d4   : > { %6523 = vmatpush3.bf16.msra.mxu1 %v7029_v55  ;;  %6534 = vmatprep.mubr.bf16.mxu1 %v7590_v35  ;;  %v7034_v35 = vld [vmem:[%s8426_s4 + $0x578] sm:$0xff]  }
 0x2d5   : > { %6524 = vmatprep.subr.bf16.mxu1 %v7030_v14 }
 0x2d8   : > { %6525 = vmatpush3.bf16.msra.mxu1 %v7030_v14 }
 0x2d9   : > { %6526 = vmatprep.subr.bf16.mxu1 %v7031_v49 }
 0x2dc   : > { %6527 = vmatpush3.bf16.msra.mxu1 %v7031_v49 }
 0x2dd   : > { %6528 = vmatprep.subr.bf16.mxu1 %v7032_v25 }
 0x2e0   : > { %6529 = vmatpush3.bf16.msra.mxu1 %v7032_v25 }
 0x2e1   : > { %6530 = vmatprep.subr.bf16.mxu1 %v7033_v38 }
 0x2e4   : > { %6531 = vmatpush3.bf16.msra.mxu1 %v7033_v38 }
 0x2e5   : > { %6532 = vmatprep.subr.bf16.mxu1 %v7034_v35 }
 0x2e8   : > { %6533 = vmatpush3.bf16.msra.mxu1 %v7034_v35 }
 0x2e9   : > { %6542 = vmatprep.subr.bf16.mxu1 %v7035_v23 }
 0x2eb   : > { %6535 = vmatmul.mubr.bf16.vlgmr.msra.gmra.mrb[0].mxu1 %v7674_v63  ;;  %v7039_v63 = vld [vmem:[%s8426_s4 + $0x5a0] sm:$0xff]  }
 0x2ec   : > { %6538 = vmatprep.mubr.bf16.mxu1 %v7782_v32  ;;  %6543 = vmatpush3.bf16.msra.mxu1 %v7035_v23  ;;  %v7040_v32 = vld [vmem:[%s8426_s4 + $0x5a8] sm:$0xff]  }
 0x2ed   : > { %6544 = vmatprep.subr.bf16.mxu1 %v7036_v26 }
 0x2f0   : > { %6545 = vmatpush3.bf16.msra.mxu1 %v7036_v26 }
 0x2f1   : > { %6546 = vmatprep.subr.bf16.mxu1 %v7037_v58 }
 0x2f3   : > { %6539 = vmatmul.mubr.bf16.gmra.mrb[4].mxu1 %v4244_v33 }
 0x2f4   : > { %6547 = vmatpush3.bf16.msra.mxu1 %v7037_v58  ;;  %6558 = vmatprep.mubr.bf16.mxu1 %v7813_v60  ;;  %v7042_v60 = vld [vmem:[%s8426_s4 + $0x5b8] sm:$0xff]  }
 0x2f5   : > { %6548 = vmatprep.subr.bf16.mxu1 %v7038_v12 }
 0x2f8   : > { %6549 = vmatpush3.bf16.msra.mxu1 %v7038_v12 }
 0x2f9   : > { %6550 = vmatprep.subr.bf16.mxu1 %v7039_v63 }
 0x2fc   : > { %6551 = vmatpush3.bf16.msra.mxu1 %v7039_v63 }
 0x2fd   : > { %6552 = vmatprep.subr.bf16.mxu1 %v7040_v32 }
 0x300   : > { %6553 = vmatpush3.bf16.msra.mxu1 %v7040_v32 }
 0x301   : > { %6554 = vmatprep.subr.bf16.mxu1 %v7041_v24 }
 0x304   : > { %6555 = vmatpush3.bf16.msra.mxu1 %v7041_v24 }
 0x305   : > { %6556 = vmatprep.subr.bf16.mxu1 %v7042_v60 }
 0x308   : > { %6557 = vmatpush3.bf16.msra.mxu1 %v7042_v60 }
 0x309   : > { %6566 = vmatprep.subr.bf16.mxu1 %v7043_v31 }
 0x30b   : > { %6559 = vmatmul.mubr.bf16.vlgmr.msra.gmra.mrb[0].mxu1 %v7827_v52  ;;  %v7047_v52 = vld [vmem:[%s8426_s4 + $0x5e0] sm:$0xff]  }
 0x30c   : > { %6562 = vmatprep.mubr.bf16.mxu1 %v7852_v28  ;;  %6567 = vmatpush3.bf16.msra.mxu1 %v7043_v31  ;;  %v7048_v28 = vld [vmem:[%s8426_s4 + $0x5e8] sm:$0xff]  }
 0x30d   : > { %6568 = vmatprep.subr.bf16.mxu1 %v7044_v22 }
 0x310   : > { %6569 = vmatpush3.bf16.msra.mxu1 %v7044_v22 }
 0x311   : > { %6570 = vmatprep.subr.bf16.mxu1 %v7045_v16 }
 0x313   : > { %6563 = vmatmul.mubr.bf16.gmra.mrb[4].mxu1 %v4384_v43 }
 0x314   : > { %6571 = vmatpush3.bf16.msra.mxu1 %v7045_v16  ;;  %6582 = vmatprep.mubr.bf16.mxu1 %v7883_v39  ;;  %v7050_v39 = vld [vmem:[%s8426_s4 + $0x5f8] sm:$0xff]  }
 0x315   : > { %6572 = vmatprep.subr.bf16.mxu1 %v7046_v36 }
 0x318   : > { %6573 = vmatpush3.bf16.msra.mxu1 %v7046_v36 }
 0x319   : > { %6574 = vmatprep.subr.bf16.mxu1 %v7047_v52 }
 0x31c   : > { %6575 = vmatpush3.bf16.msra.mxu1 %v7047_v52 }
 0x31d   : > { %6576 = vmatprep.subr.bf16.mxu1 %v7048_v28 }
 0x320   : > { %6577 = vmatpush3.bf16.msra.mxu1 %v7048_v28 }
 0x321   : > { %6578 = vmatprep.subr.bf16.mxu1 %v7049_v4 }
 0x324   : > { %6579 = vmatpush3.bf16.msra.mxu1 %v7049_v4 }
 0x325   : > { %6580 = vmatprep.subr.bf16.mxu1 %v7050_v39 }
 0x328   : > { %6581 = vmatpush3.bf16.msra.mxu1 %v7050_v39 }
 0x329   : > { %6590 = vmatprep.subr.bf16.mxu1 %v7051_v19 }
 0x32b   : > { %6583 = vmatmul.mubr.bf16.vlgmr.msra.gmra.mrb[0].mxu1 %v7897_v6  ;;  %v7055_v6 = vld [vmem:[%s8426_s4 + $0x620] sm:$0xff]  }
 0x32c   : > { %6586 = vmatprep.mubr.bf16.mxu1 %v7922_v51  ;;  %6591 = vmatpush3.bf16.msra.mxu1 %v7051_v19  ;;  %v7056_v51 = vld [vmem:[%s8426_s4 + $0x628] sm:$0xff]  }
 0x32d   : > { %6592 = vmatprep.subr.bf16.mxu1 %v7052_v37 }
 0x330   : > { %6593 = vmatpush3.bf16.msra.mxu1 %v7052_v37 }
 0x331   : > { %6594 = vmatprep.subr.bf16.mxu1 %v7053_v7 }
 0x333   : > { %6587 = vmatmul.mubr.bf16.gmra.mrb[4].mxu1 %v4524_v53 }
 0x334   : > { %6595 = vmatpush3.bf16.msra.mxu1 %v7053_v7  ;;  %6606 = vmatprep.mubr.bf16.mxu1 %v7953_v54  ;;  %v7058_v54 = vld [vmem:[%s8426_s4 + $0x638] sm:$0xff]  }
 0x335   : > { %6596 = vmatprep.subr.bf16.mxu1 %v7054_v34 }
 0x338   : > { %6597 = vmatpush3.bf16.msra.mxu1 %v7054_v34 }
 0x339   : > { %6598 = vmatprep.subr.bf16.mxu1 %v7055_v6 }
 0x33c   : > { %6599 = vmatpush3.bf16.msra.mxu1 %v7055_v6 }
 0x33d   : > { %6600 = vmatprep.subr.bf16.mxu1 %v7056_v51 }
 0x340   : > { %6601 = vmatpush3.bf16.msra.mxu1 %v7056_v51 }
 0x341   : > { %6602 = vmatprep.subr.bf16.mxu1 %v7057_v56 }
 0x344   : > { %6603 = vmatpush3.bf16.msra.mxu1 %v7057_v56 }
 0x345   : > { %6604 = vmatprep.subr.bf16.mxu1 %v7058_v54 }
 0x348   : > { %6605 = vmatpush3.bf16.msra.mxu1 %v7058_v54 }
 0x34b   : > { %6607 = vmatmul.mubr.bf16.vlgmr.msra.gmra.mrb[0].mxu1 %v7967_v62 }
 0x34c   : > { %6610 = vmatprep.mubr.bf16.mxu1 %v7992_v47  ;;  %v5559_v47 = vld [vmem:[%s8428_s6] ss:$0 sm:$0xff] }
 0x353   : > { %6611 = vmatmul.mubr.bf16.gmra.mrb[4].mxu1 %v4664_v48 }
 0x374   : > { %v6248_v15 = vpop.f32.mrb[72].mxu0 }
 0x375   : > { %v2664_v1 = vpop.f32.mrb[73].mxu0 }
 0x376   : > { %v6249_v9 = vpop.f32.mrb[74].mxu0 }
 0x377   : > { %v2667_v27 = vpop.f32.mrb[75].mxu0 }
 0x37c   : > { %v6252_v11 = vpop.f32.mrb[76].mxu0 }
 0x37d   : > { %v2680_v21 = vpop.f32.mrb[77].mxu0 }
 0x37e   : > { %v6253_v50 = vpop.f32.mrb[78].mxu0 }
 0x37f   : > { %v2683_v18 = vpop.f32.mrb[79].mxu0 }
 0x41e   : > { %v6608_v3 = vpop.f32.mrb[0].mxu1 }
 0x41f   : > { %v6614_v62 = vadd.f32 %v6608_v3, %v6248_v15  ;;  %v4764_v10 = vpop.f32.mrb[1].mxu1 }
 0x420   : > { %v6615_v17 = vadd.f32 %v4764_v10, %v2664_v1  ;;  %v6609_v44 = vpop.f32.mrb[2].mxu1 }
 0x421   : > { %v4812_v0 = vmul.f32 %v6614_v62, %v5558_v30  ;;  %v6616_v46 = vadd.f32 %v6609_v44, %v6249_v9  ;;  %v4767_v5 = vpop.f32.mrb[3].mxu1 }
 0x422   : > { %v4810_v40 = vmul.f32 %v6615_v17, %v5558_v30  ;;  %v6617_v59 = vadd.f32 %v4767_v5, %v2667_v27 }
 0x423   : > { %v4827_v61 = vadd.f32 %v5559_v47, %v4812_v0  ;;  %v4813_v41 = vmul.f32 %v6616_v46, %v5558_v30 }
 0x424   : > { %v4825_v57 = vadd.f32 %v5559_v47, %v4810_v40  ;;  %v4811_v13 = vmul.f32 %v6617_v59, %v5558_v30 }
 0x425   : > { %v4828_v55 = vadd.f32 %v5559_v47, %v4813_v41  ;;  %v4835_v14 = vmax.f32 %v4827_v61, 0.0 }
 0x426   : > { %v4826_v20 = vadd.f32 %v5559_v47, %v4811_v13  ;;  %v6612_v2 = vpop.f32.mrb[4].mxu1  ;;  %v4833_v35 = vmax.f32 %v4825_v57, 0.0 }
 0x427   : > { %v4836_v49 = vmax.f32 %v4828_v55, 0.0  ;;  %v6618_v25 = vadd.f32 %v6612_v2, %v6252_v11  ;;  %v4780_v38 = vpop.f32.mrb[5].mxu1 }
 0x428   : > { %v4834_v23 = vmax.f32 %v4826_v20, 0.0  ;;  %v6619_v26 = vadd.f32 %v4780_v38, %v2680_v21  ;;  %v6613_v58 = vpop.f32.mrb[6].mxu1 }
 0x429   : > { %v4842_v45 = vmax.f32 %v4835_v14, %v4836_v49  ;;  %v4816_v33 = vmul.f32 %v6618_v25, %v5558_v30  ;;  %v6620_v12 = vadd.f32 %v6613_v58, %v6253_v50  ;;  %v4783_v63 = vpop.f32.mrb[7].mxu1 }
 0x42a   : > { %v4841_v32 = vmax.f32 %v4833_v35, %v4834_v23  ;;  %v4814_v24 = vmul.f32 %v6619_v26, %v5558_v30  ;;  %v6621_v60 = vadd.f32 %v4783_v63, %v2683_v18 }
 0x42b   : > { %v4831_v31 = vadd.f32 %v5559_v47, %v4816_v33  ;;  %v4817_v22 = vmul.f32 %v6620_v12, %v5558_v30 }
 0x42c   : > { %v5574_v16 = vpack.c.bf16 %v4842_v45, %v4841_v32  ;;  %v4829_v42 = vadd.f32 %v5559_v47, %v4814_v24  ;;  %v4815_v43 = vmul.f32 %v6621_v60, %v5558_v30 }
 0x42d   : > { %v4832_v36 = vadd.f32 %v5559_v47, %v4817_v22  ;;  %v4839_v28 = vmax.f32 %v4831_v31, 0.0 }
 0x42e   : > { %5575 = vst [vmem:[%s278_s14] sm:$0xff] %v5574_v16   ;;  %v4830_v52 = vadd.f32 %v5559_v47, %v4815_v43  ;;  %v4837_v39 = vmax.f32 %v4829_v42, 0.0 }
 0x42f   : > { %v4840_v4 = vmax.f32 %v4832_v36, 0.0 }
 0x430   : > { %v4838_v19 = vmax.f32 %v4830_v52, 0.0 }
 0x431   : > { %v4844_v37 = vmax.f32 %v4839_v28, %v4840_v4 }
 0x432   : > { %v4843_v7 = vmax.f32 %v4837_v39, %v4838_v19 }
 0x434   : > { %v5579_v29 = vpack.c.bf16 %v4844_v37, %v4843_v7 }
 0x436   : > { %5581 = vst [vmem:[%s278_s14 + $0x8] sm:$0xff] %v5579_v29  }
 0x437 PF: > { %s17_s24 = sadd.s32 1, %s7066_s24  }
 0x438   : > { %p14_p4 = scmp.ge.s32.totalorder %s17_s24, 4  }
 0x43a   :  { %16 = sbr.rel (!%p14_p4) target bundleno = 1 (0x1), region = 102 }

</bundles_post_ra>
